<compile_context>
chip_gen: v7x
topology: tpu7x:2x2x1
jax: 0.10.0
libtpu: 0.0.40
codegen_flags: <defaults>
</compile_context>

<pallas_src>
import functools

import jax
import jax.numpy as jnp
import numpy as np
from jax import lax
from jax.experimental import pallas as pl
from jax.experimental.pallas import tpu as pltpu

_BN_EPS = 1e-5


# -----------------------------------------------------------------------------
# In-kernel helpers (traced inside the single fused Pallas kernel)
# -----------------------------------------------------------------------------
def _shift_rows(x, direction, seg_len):
    """Shift rows of a flattened (N*seg_len, C) activation by +/-1 position.

    direction=+1 -> row r holds x[r-1]  (i.e. x[l-1]), zero where l == 0
    direction=-1 -> row r holds x[r+1]  (i.e. x[l+1]), zero where l == seg_len-1
    The l-position mask (l = r % seg_len) implements conv padding AND prevents
    the roll wraparound from leaking across batch elements.
    """
    m, c = x.shape
    shift = 1 if direction > 0 else m - 1            # roll(-1) == roll(m-1)
    rolled = pltpu.roll(x, shift, axis=0)
    pos = lax.broadcasted_iota(jnp.int32, (m, c), 0) % seg_len
    edge = 0 if direction > 0 else seg_len - 1
    return jnp.where(pos == edge, 0.0, rolled)


def _conv3(parts, w_parts, seg_len):
    """Conv1d(k=3, pad=1) over a multi-part (channel-split) input."""
    acc = None
    for xp, w in zip(parts, w_parts):
        a = (jnp.dot(_shift_rows(xp, +1, seg_len), w[0],
                     preferred_element_type=jnp.float32)
             + jnp.dot(xp, w[1], preferred_element_type=jnp.float32)
             + jnp.dot(_shift_rows(xp, -1, seg_len), w[2],
                       preferred_element_type=jnp.float32))
        acc = a if acc is None else acc + a
    return acc


def _residual_block(parts, seg_len, p):
    """relu(bn2(conv2(relu(bn1(conv1(x))))) + res_conv(x)).

    `parts` is a list of channel-chunks of the input (1 chunk for encoders /
    bottleneck, 2 chunks [upsampled, skip] for decoders — this replaces the
    torch.cat along channels with split-weight matmuls).
    """
    w1, s1, b1, w2, s2, b2, wr, br = p
    splits = [t.shape[-1] for t in parts]
    w1_parts, wr_parts, off = [], [], 0
    for c in splits:
        w1_parts.append(w1[:, off:off + c, :])
        wr_parts.append(wr[off:off + c, :])
        off += c

    h = _conv3(parts, w1_parts, seg_len)
    h = jnp.maximum(h * s1 + b1, 0.0)                # bn1 (folded) + ReLU

    res = br
    for xp, wrp in zip(parts, wr_parts):             # 1x1 residual conv
        res = res + jnp.dot(xp, wrp, preferred_element_type=jnp.float32)

    out = _conv3([h], [w2], seg_len) * s2 + b2 + res  # bn2 (folded) + skip
    return jnp.maximum(out, 0.0)


def _maxpool2(x):
    """MaxPool1d(2) on flattened rows via iota-built even/odd selection matmuls."""
    m, _ = x.shape
    mo = m // 2
    r = lax.broadcasted_iota(jnp.int32, (mo, m), 0)
    s = lax.broadcasted_iota(jnp.int32, (mo, m), 1)
    pe = jnp.where(s == 2 * r, 1.0, 0.0)
    po = jnp.where(s == 2 * r + 1, 1.0, 0.0)
    return jnp.maximum(jnp.dot(pe, x, preferred_element_type=jnp.float32),
                       jnp.dot(po, x, preferred_element_type=jnp.float32))


def _conv_transpose2(x, w, b):
    """ConvTranspose1d(k=2, s=2): two matmuls + iota-matmul row interleave."""
    m, _ = x.shape
    y0 = jnp.dot(x, w[0], preferred_element_type=jnp.float32) + b
    y1 = jnp.dot(x, w[1], preferred_element_type=jnp.float32) + b
    mo = 2 * m
    r = lax.broadcasted_iota(jnp.int32, (mo, m), 0)
    s = lax.broadcasted_iota(jnp.int32, (mo, m), 1)
    e0 = jnp.where(r == 2 * s, 1.0, 0.0)
    e1 = jnp.where(r == 2 * s + 1, 1.0, 0.0)
    return (jnp.dot(e0, y0, preferred_element_type=jnp.float32)
            + jnp.dot(e1, y1, preferred_element_type=jnp.float32))


# -----------------------------------------------------------------------------
# The single fused kernel
# -----------------------------------------------------------------------------
def _unet1d_kernel(*refs, n_batch):
    out_ref = refs[-1]
    it = iter(refs[:-1])
    x = next(it)[...]                                 # (N*L, Cin)

    def take(n):
        return [next(it)[...] for _ in range(n)]

    enc1_p = take(8)
    enc2_p = take(8)
    bott_p = take(8)
    up2_w, up2_b = take(2)
    dec2_p = take(8)
    up1_w, up1_b = take(2)
    dec1_p = take(8)
    fin_w, fin_b = take(2)

    L = x.shape[0] // n_batch

    enc1 = _residual_block([x], L, enc1_p)                          # (N*L,   F)
    enc2 = _residual_block([_maxpool2(enc1)], L // 2, enc2_p)       # (N*L/2, 2F)
    bott = _residual_block([_maxpool2(enc2)], L // 4, bott_p)       # (N*L/4, 4F)

    up2 = _conv_transpose2(bott, up2_w, up2_b)                      # (N*L/2, 2F)
    dec2 = _residual_block([up2, enc2], L // 2, dec2_p)             # (N*L/2, 2F)

    up1 = _conv_transpose2(dec2, up1_w, up1_b)                      # (N*L,   F)
    dec1 = _residual_block([up1, enc1], L, dec1_p)                  # (N*L,   F)

    out = jax.nn.sigmoid(
        jnp.dot(dec1, fin_w, preferred_element_type=jnp.float32) + fin_b)
    out_ref[...] = out.astype(out_ref.dtype)


# -----------------------------------------------------------------------------
# Wrapper
# -----------------------------------------------------------------------------
def _pack_resblock(p):
    return [p["w1"], p["scale1"], p["shift1"], p["w2"], p["scale2"], p["shift2"],
            p["wr"], p["br"]]


def _flatten_params(params):
    flat = []
    flat += _pack_resblock(params["enc1"])
    flat += _pack_resblock(params["enc2"])
    flat += _pack_resblock(params["bott"])
    flat += [params["up2_w"], params["up2_b"]]
    flat += _pack_resblock(params["dec2"])
    flat += [params["up1_w"], params["up1_b"]]
    flat += _pack_resblock(params["dec1"])
    flat += [params["final_w"], params["final_b"]]
    return flat


@jax.jit
def unet1d_forward(x_ncl, params):
    n, cin, length = x_ncl.shape
    cout = params["final_w"].shape[-1]
    # NCL -> channels-last, batch folded into the matmul M dimension.
    x2d = jnp.transpose(x_ncl, (0, 2, 1)).reshape(n * length, cin)
    flat = _flatten_params(params)

    vmem_spec = pl.BlockSpec(memory_space=pltpu.MemorySpace.VMEM)
    out2d = pl.pallas_call(
        functools.partial(_unet1d_kernel, n_batch=n),
        out_shape=jax.ShapeDtypeStruct((n * length, cout), jnp.float32),
        in_specs=[vmem_spec] * (1 + len(flat)),
        out_specs=vmem_spec,
    )(x2d, *flat)

    return out2d.reshape(n, length, cout).transpose(0, 2, 1)        # NLC -> NCL


# -----------------------------------------------------------------------------
# Deterministic parameter construction (synthetic; eval-mode BN folded)
# -----------------------------------------------------------------------------
def _conv_params(key, cin, cout, k):
    k1, k2 = jax.random.split(key)
    w = jax.random.normal(k1, (k, cin, cout), jnp.float32) / np.sqrt(cin * k)
    b = 0.1 * jax.random.normal(k2, (1, cout), jnp.float32)
    return w, b


def _bn_params(key, cout):
    k1, k2 = jax.random.split(key)
    gamma = 1.0 + 0.1 * jax.random.normal(k1, (1, cout), jnp.float32)
    beta = 0.1 * jax.random.normal(k2, (1, cout), jnp.float32)
    return gamma, beta


def _resblock_params(key, cin, cout):
    ks = jax.random.split(key, 5)
    w1, b1 = _conv_params(ks[0], cin, cout, 3)
    g1, be1 = _bn_params(ks[1], cout)
    w2, b2 = _conv_params(ks[2], cout, cout, 3)
    g2, be2 = _bn_params(ks[3], cout)
    if cin != cout:
        wr3, br = _conv_params(ks[4], cin, cout, 1)
        wr = wr3[0]                                   # (cin, cout)
    else:
        wr = jnp.eye(cout, dtype=jnp.float32)         # nn.Identity residual
        br = jnp.zeros((1, cout), jnp.float32)
    # Fold conv bias + eval-mode BN (mean=0, var=1) into per-channel scale/shift.
    s1 = g1 / jnp.sqrt(1.0 + _BN_EPS)
    s2 = g2 / jnp.sqrt(1.0 + _BN_EPS)
    return dict(w1=w1, scale1=s1, shift1=be1 + s1 * b1,
                w2=w2, scale2=s2, shift2=be2 + s2 * b2,
                wr=wr, br=br)


def make_unet1d_params(key, in_channels=1, out_channels=1, features=8):
    ks = jax.random.split(key, 8)
    up2_w, up2_b = _conv_params(ks[3], 4 * features, 2 * features, 2)
    up1_w, up1_b = _conv_params(ks[5], 2 * features, features, 2)
    fw, fb = _conv_params(ks[7], features, out_channels, 1)
    return dict(
        enc1=_resblock_params(ks[0], in_channels, features),
        enc2=_resblock_params(ks[1], features, 2 * features),
        bott=_resblock_params(ks[2], 2 * features, 4 * features),
        up2_w=up2_w, up2_b=up2_b,
        dec2=_resblock_params(ks[4], 4 * features, 2 * features),
        up1_w=up1_w, up1_b=up1_b,
        dec1=_resblock_params(ks[6], 2 * features, features),
        final_w=fw[0], final_b=fb,
    )


# -----------------------------------------------------------------------------
# Pure-JAX reference (correctness check only)
# -----------------------------------------------------------------------------
def _ref_conv3(x, w):
    L = x.shape[1]
    xp = jnp.pad(x, ((0, 0), (1, 1), (0, 0)))
    return sum(jnp.einsum("nlc,cd->nld", xp[:, k:k + L], w[k]) for k in range(3))


def _ref_resblock(x, p):
    h = jnp.maximum(_ref_conv3(x, p["w1"]) * p["scale1"] + p["shift1"], 0.0)
    res = jnp.einsum("nlc,cd->nld", x, p["wr"]) + p["br"]
    out = _ref_conv3(h, p["w2"]) * p["scale2"] + p["shift2"] + res
    return jnp.maximum(out, 0.0)


def _ref_maxpool2(x):
    n, l, c = x.shape
    return jnp.max(x.reshape(n, l // 2, 2, c), axis=2)


def _ref_convtranspose2(x, w, b):
    n, l, _ = x.shape
    cout = w.shape[-1]
    y0 = jnp.einsum("nlc,cd->nld", x, w[0]) + b
    y1 = jnp.einsum("nlc,cd->nld", x, w[1]) + b
    return jnp.stack([y0, y1], axis=2).reshape(n, 2 * l, cout)


def unet1d_reference(x_ncl, params):
    x = jnp.transpose(x_ncl, (0, 2, 1))
    enc1 = _ref_resblock(x, params["enc1"])
    enc2 = _ref_resblock(_ref_maxpool2(enc1), params["enc2"])
    bott = _ref_resblock(_ref_maxpool2(enc2), params["bott"])
    dec2 = _ref_convtranspose2(bott, params["up2_w"], params["up2_b"])
    dec2 = _ref_resblock(jnp.concatenate([dec2, enc2], axis=-1), params["dec2"])
    dec1 = _ref_convtranspose2(dec2, params["up1_w"], params["up1_b"])
    dec1 = _ref_resblock(jnp.concatenate([dec1, enc1], axis=-1), params["dec1"])
    out = jax.nn.sigmoid(
        jnp.einsum("nlc,cd->nld", dec1, params["final_w"]) + params["final_b"])
    return jnp.transpose(out, (0, 2, 1))


# -----------------------------------------------------------------------------
if __name__ == "__main__":
    key = jax.random.PRNGKey(0)
    kx, kp = jax.random.split(key)

    N, Cin, L = 2, 1, 32          # PyTorch NCL input (batch, channels, length)
    features = 8
    x = jax.random.normal(kx, (N, Cin, L), jnp.float32)
    params = make_unet1d_params(kp, in_channels=Cin, out_channels=1,
                                features=features)

    out = jax.block_until_ready(unet1d_forward(x, params))
    ref = jax.block_until_ready(unet1d_reference(x, params))

    assert out.shape == (N, 1, L), out.shape
    np.testing.assert_allclose(np.asarray(out), np.asarray(ref),
                               rtol=1e-4, atol=1e-4)
    print("KERNEL_OK")
</pallas_src>

<mosaic_0001>
module attributes {stable_mosaic.version = 11 : i64} {
  func.func @_unet1d_kernel(%arg0: memref<64x1xf32, #tpu.memory_space<vmem>>, %arg1: memref<3x1x8xf32, #tpu.memory_space<vmem>>, %arg2: memref<1x8xf32, #tpu.memory_space<vmem>>, %arg3: memref<1x8xf32, #tpu.memory_space<vmem>>, %arg4: memref<3x8x8xf32, #tpu.memory_space<vmem>>, %arg5: memref<1x8xf32, #tpu.memory_space<vmem>>, %arg6: memref<1x8xf32, #tpu.memory_space<vmem>>, %arg7: memref<1x8xf32, #tpu.memory_space<vmem>>, %arg8: memref<1x8xf32, #tpu.memory_space<vmem>>, %arg9: memref<3x8x16xf32, #tpu.memory_space<vmem>>, %arg10: memref<1x16xf32, #tpu.memory_space<vmem>>, %arg11: memref<1x16xf32, #tpu.memory_space<vmem>>, %arg12: memref<3x16x16xf32, #tpu.memory_space<vmem>>, %arg13: memref<1x16xf32, #tpu.memory_space<vmem>>, %arg14: memref<1x16xf32, #tpu.memory_space<vmem>>, %arg15: memref<8x16xf32, #tpu.memory_space<vmem>>, %arg16: memref<1x16xf32, #tpu.memory_space<vmem>>, %arg17: memref<3x16x32xf32, #tpu.memory_space<vmem>>, %arg18: memref<1x32xf32, #tpu.memory_space<vmem>>, %arg19: memref<1x32xf32, #tpu.memory_space<vmem>>, %arg20: memref<3x32x32xf32, #tpu.memory_space<vmem>>, %arg21: memref<1x32xf32, #tpu.memory_space<vmem>>, %arg22: memref<1x32xf32, #tpu.memory_space<vmem>>, %arg23: memref<16x32xf32, #tpu.memory_space<vmem>>, %arg24: memref<1x32xf32, #tpu.memory_space<vmem>>, %arg25: memref<2x32x16xf32, #tpu.memory_space<vmem>>, %arg26: memref<1x16xf32, #tpu.memory_space<vmem>>, %arg27: memref<3x32x16xf32, #tpu.memory_space<vmem>>, %arg28: memref<1x16xf32, #tpu.memory_space<vmem>>, %arg29: memref<1x16xf32, #tpu.memory_space<vmem>>, %arg30: memref<3x16x16xf32, #tpu.memory_space<vmem>>, %arg31: memref<1x16xf32, #tpu.memory_space<vmem>>, %arg32: memref<1x16xf32, #tpu.memory_space<vmem>>, %arg33: memref<32x16xf32, #tpu.memory_space<vmem>>, %arg34: memref<1x16xf32, #tpu.memory_space<vmem>>, %arg35: memref<2x16x8xf32, #tpu.memory_space<vmem>>, %arg36: memref<1x8xf32, #tpu.memory_space<vmem>>, %arg37: memref<3x16x8xf32, #tpu.memory_space<vmem>>, %arg38: memref<1x8xf32, #tpu.memory_space<vmem>>, %arg39: memref<1x8xf32, #tpu.memory_space<vmem>>, %arg40: memref<3x8x8xf32, #tpu.memory_space<vmem>>, %arg41: memref<1x8xf32, #tpu.memory_space<vmem>>, %arg42: memref<1x8xf32, #tpu.memory_space<vmem>>, %arg43: memref<16x8xf32, #tpu.memory_space<vmem>>, %arg44: memref<1x8xf32, #tpu.memory_space<vmem>>, %arg45: memref<8x1xf32, #tpu.memory_space<vmem>>, %arg46: memref<1x1xf32, #tpu.memory_space<vmem>>, %arg47: memref<64x1xf32, #tpu.memory_space<vmem>>) attributes {dimension_semantics = [], scalar_prefetch = 0 : i64, scratch_operands = 0 : i64, tpu.core_type = #tpu.core_type<tc>} {
    %c0 = arith.constant 0 : index
    %c0_0 = arith.constant 0 : index
    %0 = vector.load %arg0[%c0, %c0_0] : memref<64x1xf32, #tpu.memory_space<vmem>>, vector<64x1xf32>
    %c0_1 = arith.constant 0 : index
    %c0_2 = arith.constant 0 : index
    %c0_3 = arith.constant 0 : index
    %1 = vector.load %arg1[%c0_1, %c0_2, %c0_3] : memref<3x1x8xf32, #tpu.memory_space<vmem>>, vector<3x1x8xf32>
    %c0_4 = arith.constant 0 : index
    %c0_5 = arith.constant 0 : index
    %2 = vector.load %arg2[%c0_4, %c0_5] : memref<1x8xf32, #tpu.memory_space<vmem>>, vector<1x8xf32>
    %c0_6 = arith.constant 0 : index
    %c0_7 = arith.constant 0 : index
    %3 = vector.load %arg3[%c0_6, %c0_7] : memref<1x8xf32, #tpu.memory_space<vmem>>, vector<1x8xf32>
    %c0_8 = arith.constant 0 : index
    %c0_9 = arith.constant 0 : index
    %c0_10 = arith.constant 0 : index
    %4 = vector.load %arg4[%c0_8, %c0_9, %c0_10] : memref<3x8x8xf32, #tpu.memory_space<vmem>>, vector<3x8x8xf32>
    %c0_11 = arith.constant 0 : index
    %c0_12 = arith.constant 0 : index
    %5 = vector.load %arg5[%c0_11, %c0_12] : memref<1x8xf32, #tpu.memory_space<vmem>>, vector<1x8xf32>
    %c0_13 = arith.constant 0 : index
    %c0_14 = arith.constant 0 : index
    %6 = vector.load %arg6[%c0_13, %c0_14] : memref<1x8xf32, #tpu.memory_space<vmem>>, vector<1x8xf32>
    %c0_15 = arith.constant 0 : index
    %c0_16 = arith.constant 0 : index
    %7 = vector.load %arg7[%c0_15, %c0_16] : memref<1x8xf32, #tpu.memory_space<vmem>>, vector<1x8xf32>
    %c0_17 = arith.constant 0 : index
    %c0_18 = arith.constant 0 : index
    %8 = vector.load %arg8[%c0_17, %c0_18] : memref<1x8xf32, #tpu.memory_space<vmem>>, vector<1x8xf32>
    %c0_19 = arith.constant 0 : index
    %c0_20 = arith.constant 0 : index
    %c0_21 = arith.constant 0 : index
    %9 = vector.load %arg9[%c0_19, %c0_20, %c0_21] : memref<3x8x16xf32, #tpu.memory_space<vmem>>, vector<3x8x16xf32>
    %c0_22 = arith.constant 0 : index
    %c0_23 = arith.constant 0 : index
    %10 = vector.load %arg10[%c0_22, %c0_23] : memref<1x16xf32, #tpu.memory_space<vmem>>, vector<1x16xf32>
    %c0_24 = arith.constant 0 : index
    %c0_25 = arith.constant 0 : index
    %11 = vector.load %arg11[%c0_24, %c0_25] : memref<1x16xf32, #tpu.memory_space<vmem>>, vector<1x16xf32>
    %c0_26 = arith.constant 0 : index
    %c0_27 = arith.constant 0 : index
    %c0_28 = arith.constant 0 : index
    %12 = vector.load %arg12[%c0_26, %c0_27, %c0_28] : memref<3x16x16xf32, #tpu.memory_space<vmem>>, vector<3x16x16xf32>
    %c0_29 = arith.constant 0 : index
    %c0_30 = arith.constant 0 : index
    %13 = vector.load %arg13[%c0_29, %c0_30] : memref<1x16xf32, #tpu.memory_space<vmem>>, vector<1x16xf32>
    %c0_31 = arith.constant 0 : index
    %c0_32 = arith.constant 0 : index
    %14 = vector.load %arg14[%c0_31, %c0_32] : memref<1x16xf32, #tpu.memory_space<vmem>>, vector<1x16xf32>
    %c0_33 = arith.constant 0 : index
    %c0_34 = arith.constant 0 : index
    %15 = vector.load %arg15[%c0_33, %c0_34] : memref<8x16xf32, #tpu.memory_space<vmem>>, vector<8x16xf32>
    %c0_35 = arith.constant 0 : index
    %c0_36 = arith.constant 0 : index
    %16 = vector.load %arg16[%c0_35, %c0_36] : memref<1x16xf32, #tpu.memory_space<vmem>>, vector<1x16xf32>
    %c0_37 = arith.constant 0 : index
    %c0_38 = arith.constant 0 : index
    %c0_39 = arith.constant 0 : index
    %17 = vector.load %arg17[%c0_37, %c0_38, %c0_39] : memref<3x16x32xf32, #tpu.memory_space<vmem>>, vector<3x16x32xf32>
    %c0_40 = arith.constant 0 : index
    %c0_41 = arith.constant 0 : index
    %18 = vector.load %arg18[%c0_40, %c0_41] : memref<1x32xf32, #tpu.memory_space<vmem>>, vector<1x32xf32>
    %c0_42 = arith.constant 0 : index
    %c0_43 = arith.constant 0 : index
    %19 = vector.load %arg19[%c0_42, %c0_43] : memref<1x32xf32, #tpu.memory_space<vmem>>, vector<1x32xf32>
    %c0_44 = arith.constant 0 : index
    %c0_45 = arith.constant 0 : index
    %c0_46 = arith.constant 0 : index
    %20 = vector.load %arg20[%c0_44, %c0_45, %c0_46] : memref<3x32x32xf32, #tpu.memory_space<vmem>>, vector<3x32x32xf32>
    %c0_47 = arith.constant 0 : index
    %c0_48 = arith.constant 0 : index
    %21 = vector.load %arg21[%c0_47, %c0_48] : memref<1x32xf32, #tpu.memory_space<vmem>>, vector<1x32xf32>
    %c0_49 = arith.constant 0 : index
    %c0_50 = arith.constant 0 : index
    %22 = vector.load %arg22[%c0_49, %c0_50] : memref<1x32xf32, #tpu.memory_space<vmem>>, vector<1x32xf32>
    %c0_51 = arith.constant 0 : index
    %c0_52 = arith.constant 0 : index
    %23 = vector.load %arg23[%c0_51, %c0_52] : memref<16x32xf32, #tpu.memory_space<vmem>>, vector<16x32xf32>
    %c0_53 = arith.constant 0 : index
    %c0_54 = arith.constant 0 : index
    %24 = vector.load %arg24[%c0_53, %c0_54] : memref<1x32xf32, #tpu.memory_space<vmem>>, vector<1x32xf32>
    %c0_55 = arith.constant 0 : index
    %c0_56 = arith.constant 0 : index
    %c0_57 = arith.constant 0 : index
    %25 = vector.load %arg25[%c0_55, %c0_56, %c0_57] : memref<2x32x16xf32, #tpu.memory_space<vmem>>, vector<2x32x16xf32>
    %c0_58 = arith.constant 0 : index
    %c0_59 = arith.constant 0 : index
    %26 = vector.load %arg26[%c0_58, %c0_59] : memref<1x16xf32, #tpu.memory_space<vmem>>, vector<1x16xf32>
    %c0_60 = arith.constant 0 : index
    %c0_61 = arith.constant 0 : index
    %c0_62 = arith.constant 0 : index
    %27 = vector.load %arg27[%c0_60, %c0_61, %c0_62] : memref<3x32x16xf32, #tpu.memory_space<vmem>>, vector<3x32x16xf32>
    %c0_63 = arith.constant 0 : index
    %c0_64 = arith.constant 0 : index
    %28 = vector.load %arg28[%c0_63, %c0_64] : memref<1x16xf32, #tpu.memory_space<vmem>>, vector<1x16xf32>
    %c0_65 = arith.constant 0 : index
    %c0_66 = arith.constant 0 : index
    %29 = vector.load %arg29[%c0_65, %c0_66] : memref<1x16xf32, #tpu.memory_space<vmem>>, vector<1x16xf32>
    %c0_67 = arith.constant 0 : index
    %c0_68 = arith.constant 0 : index
    %c0_69 = arith.constant 0 : index
    %30 = vector.load %arg30[%c0_67, %c0_68, %c0_69] : memref<3x16x16xf32, #tpu.memory_space<vmem>>, vector<3x16x16xf32>
    %c0_70 = arith.constant 0 : index
    %c0_71 = arith.constant 0 : index
    %31 = vector.load %arg31[%c0_70, %c0_71] : memref<1x16xf32, #tpu.memory_space<vmem>>, vector<1x16xf32>
    %c0_72 = arith.constant 0 : index
    %c0_73 = arith.constant 0 : index
    %32 = vector.load %arg32[%c0_72, %c0_73] : memref<1x16xf32, #tpu.memory_space<vmem>>, vector<1x16xf32>
    %c0_74 = arith.constant 0 : index
    %c0_75 = arith.constant 0 : index
    %33 = vector.load %arg33[%c0_74, %c0_75] : memref<32x16xf32, #tpu.memory_space<vmem>>, vector<32x16xf32>
    %c0_76 = arith.constant 0 : index
    %c0_77 = arith.constant 0 : index
    %34 = vector.load %arg34[%c0_76, %c0_77] : memref<1x16xf32, #tpu.memory_space<vmem>>, vector<1x16xf32>
    %c0_78 = arith.constant 0 : index
    %c0_79 = arith.constant 0 : index
    %c0_80 = arith.constant 0 : index
    %35 = vector.load %arg35[%c0_78, %c0_79, %c0_80] : memref<2x16x8xf32, #tpu.memory_space<vmem>>, vector<2x16x8xf32>
    %c0_81 = arith.constant 0 : index
    %c0_82 = arith.constant 0 : index
    %36 = vector.load %arg36[%c0_81, %c0_82] : memref<1x8xf32, #tpu.memory_space<vmem>>, vector<1x8xf32>
    %c0_83 = arith.constant 0 : index
    %c0_84 = arith.constant 0 : index
    %c0_85 = arith.constant 0 : index
    %37 = vector.load %arg37[%c0_83, %c0_84, %c0_85] : memref<3x16x8xf32, #tpu.memory_space<vmem>>, vector<3x16x8xf32>
    %c0_86 = arith.constant 0 : index
    %c0_87 = arith.constant 0 : index
    %38 = vector.load %arg38[%c0_86, %c0_87] : memref<1x8xf32, #tpu.memory_space<vmem>>, vector<1x8xf32>
    %c0_88 = arith.constant 0 : index
    %c0_89 = arith.constant 0 : index
    %39 = vector.load %arg39[%c0_88, %c0_89] : memref<1x8xf32, #tpu.memory_space<vmem>>, vector<1x8xf32>
    %c0_90 = arith.constant 0 : index
    %c0_91 = arith.constant 0 : index
    %c0_92 = arith.constant 0 : index
    %40 = vector.load %arg40[%c0_90, %c0_91, %c0_92] : memref<3x8x8xf32, #tpu.memory_space<vmem>>, vector<3x8x8xf32>
    %c0_93 = arith.constant 0 : index
    %c0_94 = arith.constant 0 : index
    %41 = vector.load %arg41[%c0_93, %c0_94] : memref<1x8xf32, #tpu.memory_space<vmem>>, vector<1x8xf32>
    %c0_95 = arith.constant 0 : index
    %c0_96 = arith.constant 0 : index
    %42 = vector.load %arg42[%c0_95, %c0_96] : memref<1x8xf32, #tpu.memory_space<vmem>>, vector<1x8xf32>
    %c0_97 = arith.constant 0 : index
    %c0_98 = arith.constant 0 : index
    %43 = vector.load %arg43[%c0_97, %c0_98] : memref<16x8xf32, #tpu.memory_space<vmem>>, vector<16x8xf32>
    %c0_99 = arith.constant 0 : index
    %c0_100 = arith.constant 0 : index
    %44 = vector.load %arg44[%c0_99, %c0_100] : memref<1x8xf32, #tpu.memory_space<vmem>>, vector<1x8xf32>
    %c0_101 = arith.constant 0 : index
    %c0_102 = arith.constant 0 : index
    %45 = vector.load %arg45[%c0_101, %c0_102] : memref<8x1xf32, #tpu.memory_space<vmem>>, vector<8x1xf32>
    %c0_103 = arith.constant 0 : index
    %c0_104 = arith.constant 0 : index
    %46 = vector.load %arg46[%c0_103, %c0_104] : memref<1x1xf32, #tpu.memory_space<vmem>>, vector<1x1xf32>
    %c1_i32 = arith.constant 1 : i32
    %47 = tpu.dynamic_rotate %0 by %c1_i32 dim 0 : vector<64x1xf32>, i32 -> vector<64x1xf32>
    %48 = tpu.iota {dimensions = array<i32: 0>} : vector<64x1xi32>
    %c32_i32 = arith.constant 32 : i32
    %c0_i32 = arith.constant 0 : i32
    %49 = arith.cmpi eq, %c32_i32, %c0_i32 : i32
    %c1_i32_105 = arith.constant 1 : i32
    %50 = arith.select %49, %c1_i32_105, %c32_i32 : i32
    %51 = vector.broadcast %50 : i32 to vector<64x1xi32>
    %52 = arith.remsi %48, %51 : vector<64x1xi32>
    %c0_i32_106 = arith.constant 0 : i32
    %53 = vector.broadcast %c0_i32_106 : i32 to vector<64x1xi32>
    %54 = arith.cmpi ne, %52, %53 : vector<64x1xi32>
    %c0_i32_107 = arith.constant 0 : i32
    %55 = vector.broadcast %c0_i32_107 : i32 to vector<64x1xi32>
    %56 = arith.cmpi slt, %52, %55 : vector<64x1xi32>
    %c0_i32_108 = arith.constant 0 : i32
    %57 = arith.cmpi slt, %50, %c0_i32_108 : i32
    %58 = vector.broadcast %57 : i1 to vector<64x1xi1>
    %59 = vector.broadcast %58 : vector<64x1xi1> to vector<64x1xi1>
    %60 = arith.xori %56, %59 : vector<64x1xi1>
    %61 = arith.andi %60, %54 : vector<64x1xi1>
    %62 = vector.broadcast %50 : i32 to vector<64x1xi32>
    %63 = arith.addi %52, %62 : vector<64x1xi32>
    %64 = arith.select %61, %63, %52 : vector<64x1xi1>, vector<64x1xi32>
    %c0_i32_109 = arith.constant 0 : i32
    %65 = vector.broadcast %c0_i32_109 : i32 to vector<64x1xi32>
    %66 = arith.cmpi eq, %64, %65 : vector<64x1xi32>
    %cst = arith.constant 0.000000e+00 : f32
    %67 = vector.broadcast %cst : f32 to vector<64x1xf32>
    %68 = arith.select %66, %67, %47 : vector<64x1xi1>, vector<64x1xf32>
    %69 = vector.extract_strided_slice %1 {offsets = [0, 0, 0], sizes = [1, 1, 8], strides = [1, 1, 1]} : vector<3x1x8xf32> to vector<1x1x8xf32>
    %70 = vector.shape_cast %69 : vector<1x1x8xf32> to vector<1x8xf32>
    %cst_110 = arith.constant dense<0.000000e+00> : vector<64x8xf32>
    %71 = tpu.matmul %68, %70, %cst_110 {dimension_numbers = #tpu.dot_dimension_numbers<[1], [0], [0], [1], [0, 0, 1, 1], [], []>} : vector<64x1xf32>, vector<1x8xf32>, vector<64x8xf32> -> vector<64x8xf32>
    %72 = vector.extract_strided_slice %1 {offsets = [1, 0, 0], sizes = [1, 1, 8], strides = [1, 1, 1]} : vector<3x1x8xf32> to vector<1x1x8xf32>
    %73 = vector.shape_cast %72 : vector<1x1x8xf32> to vector<1x8xf32>
    %cst_111 = arith.constant dense<0.000000e+00> : vector<64x8xf32>
    %74 = tpu.matmul %0, %73, %cst_111 {dimension_numbers = #tpu.dot_dimension_numbers<[1], [0], [0], [1], [0, 0, 1, 1], [], []>} : vector<64x1xf32>, vector<1x8xf32>, vector<64x8xf32> -> vector<64x8xf32>
    %75 = arith.addf %71, %74 : vector<64x8xf32>
    %c63_i32 = arith.constant 63 : i32
    %76 = tpu.dynamic_rotate %0 by %c63_i32 dim 0 : vector<64x1xf32>, i32 -> vector<64x1xf32>
    %77 = tpu.iota {dimensions = array<i32: 0>} : vector<64x1xi32>
    %c32_i32_112 = arith.constant 32 : i32
    %c0_i32_113 = arith.constant 0 : i32
    %78 = arith.cmpi eq, %c32_i32_112, %c0_i32_113 : i32
    %c1_i32_114 = arith.constant 1 : i32
    %79 = arith.select %78, %c1_i32_114, %c32_i32_112 : i32
    %80 = vector.broadcast %79 : i32 to vector<64x1xi32>
    %81 = arith.remsi %77, %80 : vector<64x1xi32>
    %c0_i32_115 = arith.constant 0 : i32
    %82 = vector.broadcast %c0_i32_115 : i32 to vector<64x1xi32>
    %83 = arith.cmpi ne, %81, %82 : vector<64x1xi32>
    %c0_i32_116 = arith.constant 0 : i32
    %84 = vector.broadcast %c0_i32_116 : i32 to vector<64x1xi32>
    %85 = arith.cmpi slt, %81, %84 : vector<64x1xi32>
    %c0_i32_117 = arith.constant 0 : i32
    %86 = arith.cmpi slt, %79, %c0_i32_117 : i32
    %87 = vector.broadcast %86 : i1 to vector<64x1xi1>
    %88 = vector.broadcast %87 : vector<64x1xi1> to vector<64x1xi1>
    %89 = arith.xori %85, %88 : vector<64x1xi1>
    %90 = arith.andi %89, %83 : vector<64x1xi1>
    %91 = vector.broadcast %79 : i32 to vector<64x1xi32>
    %92 = arith.addi %81, %91 : vector<64x1xi32>
    %93 = arith.select %90, %92, %81 : vector<64x1xi1>, vector<64x1xi32>
    %c31_i32 = arith.constant 31 : i32
    %94 = vector.broadcast %c31_i32 : i32 to vector<64x1xi32>
    %95 = arith.cmpi eq, %93, %94 : vector<64x1xi32>
    %cst_118 = arith.constant 0.000000e+00 : f32
    %96 = vector.broadcast %cst_118 : f32 to vector<64x1xf32>
    %97 = arith.select %95, %96, %76 : vector<64x1xi1>, vector<64x1xf32>
    %98 = vector.extract_strided_slice %1 {offsets = [2, 0, 0], sizes = [1, 1, 8], strides = [1, 1, 1]} : vector<3x1x8xf32> to vector<1x1x8xf32>
    %99 = vector.shape_cast %98 : vector<1x1x8xf32> to vector<1x8xf32>
    %cst_119 = arith.constant dense<0.000000e+00> : vector<64x8xf32>
    %100 = tpu.matmul %97, %99, %cst_119 {dimension_numbers = #tpu.dot_dimension_numbers<[1], [0], [0], [1], [0, 0, 1, 1], [], []>} : vector<64x1xf32>, vector<1x8xf32>, vector<64x8xf32> -> vector<64x8xf32>
    %101 = arith.addf %75, %100 : vector<64x8xf32>
    %102 = vector.broadcast %2 : vector<1x8xf32> to vector<64x8xf32>
    %103 = arith.mulf %101, %102 : vector<64x8xf32>
    %104 = vector.broadcast %3 : vector<1x8xf32> to vector<64x8xf32>
    %105 = arith.addf %103, %104 : vector<64x8xf32>
    %cst_120 = arith.constant 0.000000e+00 : f32
    %106 = vector.broadcast %cst_120 : f32 to vector<64x8xf32>
    %107 = arith.maximumf %105, %106 : vector<64x8xf32>
    %cst_121 = arith.constant dense<0.000000e+00> : vector<64x8xf32>
    %108 = tpu.matmul %0, %7, %cst_121 {dimension_numbers = #tpu.dot_dimension_numbers<[1], [0], [0], [1], [0, 0, 1, 1], [], []>} : vector<64x1xf32>, vector<1x8xf32>, vector<64x8xf32> -> vector<64x8xf32>
    %109 = vector.broadcast %8 : vector<1x8xf32> to vector<64x8xf32>
    %110 = arith.addf %109, %108 : vector<64x8xf32>
    %c1_i32_122 = arith.constant 1 : i32
    %111 = tpu.dynamic_rotate %107 by %c1_i32_122 dim 0 : vector<64x8xf32>, i32 -> vector<64x8xf32>
    %112 = tpu.iota {dimensions = array<i32: 0>} : vector<64x8xi32>
    %c32_i32_123 = arith.constant 32 : i32
    %c0_i32_124 = arith.constant 0 : i32
    %113 = arith.cmpi eq, %c32_i32_123, %c0_i32_124 : i32
    %c1_i32_125 = arith.constant 1 : i32
    %114 = arith.select %113, %c1_i32_125, %c32_i32_123 : i32
    %115 = vector.broadcast %114 : i32 to vector<64x8xi32>
    %116 = arith.remsi %112, %115 : vector<64x8xi32>
    %c0_i32_126 = arith.constant 0 : i32
    %117 = vector.broadcast %c0_i32_126 : i32 to vector<64x8xi32>
    %118 = arith.cmpi ne, %116, %117 : vector<64x8xi32>
    %c0_i32_127 = arith.constant 0 : i32
    %119 = vector.broadcast %c0_i32_127 : i32 to vector<64x8xi32>
    %120 = arith.cmpi slt, %116, %119 : vector<64x8xi32>
    %c0_i32_128 = arith.constant 0 : i32
    %121 = arith.cmpi slt, %114, %c0_i32_128 : i32
    %122 = vector.broadcast %121 : i1 to vector<64x8xi1>
    %123 = vector.broadcast %122 : vector<64x8xi1> to vector<64x8xi1>
    %124 = arith.xori %120, %123 : vector<64x8xi1>
    %125 = arith.andi %124, %118 : vector<64x8xi1>
    %126 = vector.broadcast %114 : i32 to vector<64x8xi32>
    %127 = arith.addi %116, %126 : vector<64x8xi32>
    %128 = arith.select %125, %127, %116 : vector<64x8xi1>, vector<64x8xi32>
    %c0_i32_129 = arith.constant 0 : i32
    %129 = vector.broadcast %c0_i32_129 : i32 to vector<64x8xi32>
    %130 = arith.cmpi eq, %128, %129 : vector<64x8xi32>
    %cst_130 = arith.constant 0.000000e+00 : f32
    %131 = vector.broadcast %cst_130 : f32 to vector<64x8xf32>
    %132 = arith.select %130, %131, %111 : vector<64x8xi1>, vector<64x8xf32>
    %133 = vector.extract_strided_slice %4 {offsets = [0, 0, 0], sizes = [1, 8, 8], strides = [1, 1, 1]} : vector<3x8x8xf32> to vector<1x8x8xf32>
    %134 = vector.shape_cast %133 : vector<1x8x8xf32> to vector<8x8xf32>
    %cst_131 = arith.constant dense<0.000000e+00> : vector<64x8xf32>
    %135 = tpu.matmul %132, %134, %cst_131 {dimension_numbers = #tpu.dot_dimension_numbers<[1], [0], [0], [1], [0, 0, 1, 1], [], []>} : vector<64x8xf32>, vector<8x8xf32>, vector<64x8xf32> -> vector<64x8xf32>
    %136 = vector.extract_strided_slice %4 {offsets = [1, 0, 0], sizes = [1, 8, 8], strides = [1, 1, 1]} : vector<3x8x8xf32> to vector<1x8x8xf32>
    %137 = vector.shape_cast %136 : vector<1x8x8xf32> to vector<8x8xf32>
    %cst_132 = arith.constant dense<0.000000e+00> : vector<64x8xf32>
    %138 = tpu.matmul %107, %137, %cst_132 {dimension_numbers = #tpu.dot_dimension_numbers<[1], [0], [0], [1], [0, 0, 1, 1], [], []>} : vector<64x8xf32>, vector<8x8xf32>, vector<64x8xf32> -> vector<64x8xf32>
    %139 = arith.addf %135, %138 : vector<64x8xf32>
    %c63_i32_133 = arith.constant 63 : i32
    %140 = tpu.dynamic_rotate %107 by %c63_i32_133 dim 0 : vector<64x8xf32>, i32 -> vector<64x8xf32>
    %141 = tpu.iota {dimensions = array<i32: 0>} : vector<64x8xi32>
    %c32_i32_134 = arith.constant 32 : i32
    %c0_i32_135 = arith.constant 0 : i32
    %142 = arith.cmpi eq, %c32_i32_134, %c0_i32_135 : i32
    %c1_i32_136 = arith.constant 1 : i32
    %143 = arith.select %142, %c1_i32_136, %c32_i32_134 : i32
    %144 = vector.broadcast %143 : i32 to vector<64x8xi32>
    %145 = arith.remsi %141, %144 : vector<64x8xi32>
    %c0_i32_137 = arith.constant 0 : i32
    %146 = vector.broadcast %c0_i32_137 : i32 to vector<64x8xi32>
    %147 = arith.cmpi ne, %145, %146 : vector<64x8xi32>
    %c0_i32_138 = arith.constant 0 : i32
    %148 = vector.broadcast %c0_i32_138 : i32 to vector<64x8xi32>
    %149 = arith.cmpi slt, %145, %148 : vector<64x8xi32>
    %c0_i32_139 = arith.constant 0 : i32
    %150 = arith.cmpi slt, %143, %c0_i32_139 : i32
    %151 = vector.broadcast %150 : i1 to vector<64x8xi1>
    %152 = vector.broadcast %151 : vector<64x8xi1> to vector<64x8xi1>
    %153 = arith.xori %149, %152 : vector<64x8xi1>
    %154 = arith.andi %153, %147 : vector<64x8xi1>
    %155 = vector.broadcast %143 : i32 to vector<64x8xi32>
    %156 = arith.addi %145, %155 : vector<64x8xi32>
    %157 = arith.select %154, %156, %145 : vector<64x8xi1>, vector<64x8xi32>
    %c31_i32_140 = arith.constant 31 : i32
    %158 = vector.broadcast %c31_i32_140 : i32 to vector<64x8xi32>
    %159 = arith.cmpi eq, %157, %158 : vector<64x8xi32>
    %cst_141 = arith.constant 0.000000e+00 : f32
    %160 = vector.broadcast %cst_141 : f32 to vector<64x8xf32>
    %161 = arith.select %159, %160, %140 : vector<64x8xi1>, vector<64x8xf32>
    %162 = vector.extract_strided_slice %4 {offsets = [2, 0, 0], sizes = [1, 8, 8], strides = [1, 1, 1]} : vector<3x8x8xf32> to vector<1x8x8xf32>
    %163 = vector.shape_cast %162 : vector<1x8x8xf32> to vector<8x8xf32>
    %cst_142 = arith.constant dense<0.000000e+00> : vector<64x8xf32>
    %164 = tpu.matmul %161, %163, %cst_142 {dimension_numbers = #tpu.dot_dimension_numbers<[1], [0], [0], [1], [0, 0, 1, 1], [], []>} : vector<64x8xf32>, vector<8x8xf32>, vector<64x8xf32> -> vector<64x8xf32>
    %165 = arith.addf %139, %164 : vector<64x8xf32>
    %166 = vector.broadcast %5 : vector<1x8xf32> to vector<64x8xf32>
    %167 = arith.mulf %165, %166 : vector<64x8xf32>
    %168 = vector.broadcast %6 : vector<1x8xf32> to vector<64x8xf32>
    %169 = arith.addf %167, %168 : vector<64x8xf32>
    %170 = arith.addf %169, %110 : vector<64x8xf32>
    %cst_143 = arith.constant 0.000000e+00 : f32
    %171 = vector.broadcast %cst_143 : f32 to vector<64x8xf32>
    %172 = arith.maximumf %170, %171 : vector<64x8xf32>
    %173 = tpu.iota {dimensions = array<i32: 0>} : vector<32x64xi32>
    %174 = tpu.iota {dimensions = array<i32: 1>} : vector<32x64xi32>
    %c2_i32 = arith.constant 2 : i32
    %175 = vector.broadcast %c2_i32 : i32 to vector<32x64xi32>
    %176 = arith.muli %175, %173 : vector<32x64xi32>
    %177 = arith.cmpi eq, %174, %176 : vector<32x64xi32>
    %cst_144 = arith.constant 1.000000e+00 : f32
    %cst_145 = arith.constant 0.000000e+00 : f32
    %178 = vector.broadcast %cst_144 : f32 to vector<32x64xf32>
    %179 = vector.broadcast %cst_145 : f32 to vector<32x64xf32>
    %180 = arith.select %177, %178, %179 : vector<32x64xi1>, vector<32x64xf32>
    %c2_i32_146 = arith.constant 2 : i32
    %181 = vector.broadcast %c2_i32_146 : i32 to vector<32x64xi32>
    %182 = arith.muli %181, %173 : vector<32x64xi32>
    %c1_i32_147 = arith.constant 1 : i32
    %183 = vector.broadcast %c1_i32_147 : i32 to vector<32x64xi32>
    %184 = arith.addi %182, %183 : vector<32x64xi32>
    %185 = arith.cmpi eq, %174, %184 : vector<32x64xi32>
    %cst_148 = arith.constant 1.000000e+00 : f32
    %cst_149 = arith.constant 0.000000e+00 : f32
    %186 = vector.broadcast %cst_148 : f32 to vector<32x64xf32>
    %187 = vector.broadcast %cst_149 : f32 to vector<32x64xf32>
    %188 = arith.select %185, %186, %187 : vector<32x64xi1>, vector<32x64xf32>
    %cst_150 = arith.constant dense<0.000000e+00> : vector<32x8xf32>
    %189 = tpu.matmul %180, %172, %cst_150 {dimension_numbers = #tpu.dot_dimension_numbers<[1], [0], [0], [1], [0, 0, 1, 1], [], []>} : vector<32x64xf32>, vector<64x8xf32>, vector<32x8xf32> -> vector<32x8xf32>
    %cst_151 = arith.constant dense<0.000000e+00> : vector<32x8xf32>
    %190 = tpu.matmul %188, %172, %cst_151 {dimension_numbers = #tpu.dot_dimension_numbers<[1], [0], [0], [1], [0, 0, 1, 1], [], []>} : vector<32x64xf32>, vector<64x8xf32>, vector<32x8xf32> -> vector<32x8xf32>
    %191 = arith.maximumf %189, %190 : vector<32x8xf32>
    %c1_i32_152 = arith.constant 1 : i32
    %192 = tpu.dynamic_rotate %191 by %c1_i32_152 dim 0 : vector<32x8xf32>, i32 -> vector<32x8xf32>
    %193 = tpu.iota {dimensions = array<i32: 0>} : vector<32x8xi32>
    %c16_i32 = arith.constant 16 : i32
    %c0_i32_153 = arith.constant 0 : i32
    %194 = arith.cmpi eq, %c16_i32, %c0_i32_153 : i32
    %c1_i32_154 = arith.constant 1 : i32
    %195 = arith.select %194, %c1_i32_154, %c16_i32 : i32
    %196 = vector.broadcast %195 : i32 to vector<32x8xi32>
    %197 = arith.remsi %193, %196 : vector<32x8xi32>
    %c0_i32_155 = arith.constant 0 : i32
    %198 = vector.broadcast %c0_i32_155 : i32 to vector<32x8xi32>
    %199 = arith.cmpi ne, %197, %198 : vector<32x8xi32>
    %c0_i32_156 = arith.constant 0 : i32
    %200 = vector.broadcast %c0_i32_156 : i32 to vector<32x8xi32>
    %201 = arith.cmpi slt, %197, %200 : vector<32x8xi32>
    %c0_i32_157 = arith.constant 0 : i32
    %202 = arith.cmpi slt, %195, %c0_i32_157 : i32
    %203 = vector.broadcast %202 : i1 to vector<32x8xi1>
    %204 = vector.broadcast %203 : vector<32x8xi1> to vector<32x8xi1>
    %205 = arith.xori %201, %204 : vector<32x8xi1>
    %206 = arith.andi %205, %199 : vector<32x8xi1>
    %207 = vector.broadcast %195 : i32 to vector<32x8xi32>
    %208 = arith.addi %197, %207 : vector<32x8xi32>
    %209 = arith.select %206, %208, %197 : vector<32x8xi1>, vector<32x8xi32>
    %c0_i32_158 = arith.constant 0 : i32
    %210 = vector.broadcast %c0_i32_158 : i32 to vector<32x8xi32>
    %211 = arith.cmpi eq, %209, %210 : vector<32x8xi32>
    %cst_159 = arith.constant 0.000000e+00 : f32
    %212 = vector.broadcast %cst_159 : f32 to vector<32x8xf32>
    %213 = arith.select %211, %212, %192 : vector<32x8xi1>, vector<32x8xf32>
    %214 = vector.extract_strided_slice %9 {offsets = [0, 0, 0], sizes = [1, 8, 16], strides = [1, 1, 1]} : vector<3x8x16xf32> to vector<1x8x16xf32>
    %215 = vector.shape_cast %214 : vector<1x8x16xf32> to vector<8x16xf32>
    %cst_160 = arith.constant dense<0.000000e+00> : vector<32x16xf32>
    %216 = tpu.matmul %213, %215, %cst_160 {dimension_numbers = #tpu.dot_dimension_numbers<[1], [0], [0], [1], [0, 0, 1, 1], [], []>} : vector<32x8xf32>, vector<8x16xf32>, vector<32x16xf32> -> vector<32x16xf32>
    %217 = vector.extract_strided_slice %9 {offsets = [1, 0, 0], sizes = [1, 8, 16], strides = [1, 1, 1]} : vector<3x8x16xf32> to vector<1x8x16xf32>
    %218 = vector.shape_cast %217 : vector<1x8x16xf32> to vector<8x16xf32>
    %cst_161 = arith.constant dense<0.000000e+00> : vector<32x16xf32>
    %219 = tpu.matmul %191, %218, %cst_161 {dimension_numbers = #tpu.dot_dimension_numbers<[1], [0], [0], [1], [0, 0, 1, 1], [], []>} : vector<32x8xf32>, vector<8x16xf32>, vector<32x16xf32> -> vector<32x16xf32>
    %220 = arith.addf %216, %219 : vector<32x16xf32>
    %c31_i32_162 = arith.constant 31 : i32
    %221 = tpu.dynamic_rotate %191 by %c31_i32_162 dim 0 : vector<32x8xf32>, i32 -> vector<32x8xf32>
    %222 = tpu.iota {dimensions = array<i32: 0>} : vector<32x8xi32>
    %c16_i32_163 = arith.constant 16 : i32
    %c0_i32_164 = arith.constant 0 : i32
    %223 = arith.cmpi eq, %c16_i32_163, %c0_i32_164 : i32
    %c1_i32_165 = arith.constant 1 : i32
    %224 = arith.select %223, %c1_i32_165, %c16_i32_163 : i32
    %225 = vector.broadcast %224 : i32 to vector<32x8xi32>
    %226 = arith.remsi %222, %225 : vector<32x8xi32>
    %c0_i32_166 = arith.constant 0 : i32
    %227 = vector.broadcast %c0_i32_166 : i32 to vector<32x8xi32>
    %228 = arith.cmpi ne, %226, %227 : vector<32x8xi32>
    %c0_i32_167 = arith.constant 0 : i32
    %229 = vector.broadcast %c0_i32_167 : i32 to vector<32x8xi32>
    %230 = arith.cmpi slt, %226, %229 : vector<32x8xi32>
    %c0_i32_168 = arith.constant 0 : i32
    %231 = arith.cmpi slt, %224, %c0_i32_168 : i32
    %232 = vector.broadcast %231 : i1 to vector<32x8xi1>
    %233 = vector.broadcast %232 : vector<32x8xi1> to vector<32x8xi1>
    %234 = arith.xori %230, %233 : vector<32x8xi1>
    %235 = arith.andi %234, %228 : vector<32x8xi1>
    %236 = vector.broadcast %224 : i32 to vector<32x8xi32>
    %237 = arith.addi %226, %236 : vector<32x8xi32>
    %238 = arith.select %235, %237, %226 : vector<32x8xi1>, vector<32x8xi32>
    %c15_i32 = arith.constant 15 : i32
    %239 = vector.broadcast %c15_i32 : i32 to vector<32x8xi32>
    %240 = arith.cmpi eq, %238, %239 : vector<32x8xi32>
    %cst_169 = arith.constant 0.000000e+00 : f32
    %241 = vector.broadcast %cst_169 : f32 to vector<32x8xf32>
    %242 = arith.select %240, %241, %221 : vector<32x8xi1>, vector<32x8xf32>
    %243 = vector.extract_strided_slice %9 {offsets = [2, 0, 0], sizes = [1, 8, 16], strides = [1, 1, 1]} : vector<3x8x16xf32> to vector<1x8x16xf32>
    %244 = vector.shape_cast %243 : vector<1x8x16xf32> to vector<8x16xf32>
    %cst_170 = arith.constant dense<0.000000e+00> : vector<32x16xf32>
    %245 = tpu.matmul %242, %244, %cst_170 {dimension_numbers = #tpu.dot_dimension_numbers<[1], [0], [0], [1], [0, 0, 1, 1], [], []>} : vector<32x8xf32>, vector<8x16xf32>, vector<32x16xf32> -> vector<32x16xf32>
    %246 = arith.addf %220, %245 : vector<32x16xf32>
    %247 = vector.broadcast %10 : vector<1x16xf32> to vector<32x16xf32>
    %248 = arith.mulf %246, %247 : vector<32x16xf32>
    %249 = vector.broadcast %11 : vector<1x16xf32> to vector<32x16xf32>
    %250 = arith.addf %248, %249 : vector<32x16xf32>
    %cst_171 = arith.constant 0.000000e+00 : f32
    %251 = vector.broadcast %cst_171 : f32 to vector<32x16xf32>
    %252 = arith.maximumf %250, %251 : vector<32x16xf32>
    %cst_172 = arith.constant dense<0.000000e+00> : vector<32x16xf32>
    %253 = tpu.matmul %191, %15, %cst_172 {dimension_numbers = #tpu.dot_dimension_numbers<[1], [0], [0], [1], [0, 0, 1, 1], [], []>} : vector<32x8xf32>, vector<8x16xf32>, vector<32x16xf32> -> vector<32x16xf32>
    %254 = vector.broadcast %16 : vector<1x16xf32> to vector<32x16xf32>
    %255 = arith.addf %254, %253 : vector<32x16xf32>
    %c1_i32_173 = arith.constant 1 : i32
    %256 = tpu.dynamic_rotate %252 by %c1_i32_173 dim 0 : vector<32x16xf32>, i32 -> vector<32x16xf32>
    %257 = tpu.iota {dimensions = array<i32: 0>} : vector<32x16xi32>
    %c16_i32_174 = arith.constant 16 : i32
    %c0_i32_175 = arith.constant 0 : i32
    %258 = arith.cmpi eq, %c16_i32_174, %c0_i32_175 : i32
    %c1_i32_176 = arith.constant 1 : i32
    %259 = arith.select %258, %c1_i32_176, %c16_i32_174 : i32
    %260 = vector.broadcast %259 : i32 to vector<32x16xi32>
    %261 = arith.remsi %257, %260 : vector<32x16xi32>
    %c0_i32_177 = arith.constant 0 : i32
    %262 = vector.broadcast %c0_i32_177 : i32 to vector<32x16xi32>
    %263 = arith.cmpi ne, %261, %262 : vector<32x16xi32>
    %c0_i32_178 = arith.constant 0 : i32
    %264 = vector.broadcast %c0_i32_178 : i32 to vector<32x16xi32>
    %265 = arith.cmpi slt, %261, %264 : vector<32x16xi32>
    %c0_i32_179 = arith.constant 0 : i32
    %266 = arith.cmpi slt, %259, %c0_i32_179 : i32
    %267 = vector.broadcast %266 : i1 to vector<32x16xi1>
    %268 = vector.broadcast %267 : vector<32x16xi1> to vector<32x16xi1>
    %269 = arith.xori %265, %268 : vector<32x16xi1>
    %270 = arith.andi %269, %263 : vector<32x16xi1>
    %271 = vector.broadcast %259 : i32 to vector<32x16xi32>
    %272 = arith.addi %261, %271 : vector<32x16xi32>
    %273 = arith.select %270, %272, %261 : vector<32x16xi1>, vector<32x16xi32>
    %c0_i32_180 = arith.constant 0 : i32
    %274 = vector.broadcast %c0_i32_180 : i32 to vector<32x16xi32>
    %275 = arith.cmpi eq, %273, %274 : vector<32x16xi32>
    %cst_181 = arith.constant 0.000000e+00 : f32
    %276 = vector.broadcast %cst_181 : f32 to vector<32x16xf32>
    %277 = arith.select %275, %276, %256 : vector<32x16xi1>, vector<32x16xf32>
    %278 = vector.extract_strided_slice %12 {offsets = [0, 0, 0], sizes = [1, 16, 16], strides = [1, 1, 1]} : vector<3x16x16xf32> to vector<1x16x16xf32>
    %279 = vector.shape_cast %278 : vector<1x16x16xf32> to vector<16x16xf32>
    %cst_182 = arith.constant dense<0.000000e+00> : vector<32x16xf32>
    %280 = tpu.matmul %277, %279, %cst_182 {dimension_numbers = #tpu.dot_dimension_numbers<[1], [0], [0], [1], [0, 0, 1, 1], [], []>} : vector<32x16xf32>, vector<16x16xf32>, vector<32x16xf32> -> vector<32x16xf32>
    %281 = vector.extract_strided_slice %12 {offsets = [1, 0, 0], sizes = [1, 16, 16], strides = [1, 1, 1]} : vector<3x16x16xf32> to vector<1x16x16xf32>
    %282 = vector.shape_cast %281 : vector<1x16x16xf32> to vector<16x16xf32>
    %cst_183 = arith.constant dense<0.000000e+00> : vector<32x16xf32>
    %283 = tpu.matmul %252, %282, %cst_183 {dimension_numbers = #tpu.dot_dimension_numbers<[1], [0], [0], [1], [0, 0, 1, 1], [], []>} : vector<32x16xf32>, vector<16x16xf32>, vector<32x16xf32> -> vector<32x16xf32>
    %284 = arith.addf %280, %283 : vector<32x16xf32>
    %c31_i32_184 = arith.constant 31 : i32
    %285 = tpu.dynamic_rotate %252 by %c31_i32_184 dim 0 : vector<32x16xf32>, i32 -> vector<32x16xf32>
    %286 = tpu.iota {dimensions = array<i32: 0>} : vector<32x16xi32>
    %c16_i32_185 = arith.constant 16 : i32
    %c0_i32_186 = arith.constant 0 : i32
    %287 = arith.cmpi eq, %c16_i32_185, %c0_i32_186 : i32
    %c1_i32_187 = arith.constant 1 : i32
    %288 = arith.select %287, %c1_i32_187, %c16_i32_185 : i32
    %289 = vector.broadcast %288 : i32 to vector<32x16xi32>
    %290 = arith.remsi %286, %289 : vector<32x16xi32>
    %c0_i32_188 = arith.constant 0 : i32
    %291 = vector.broadcast %c0_i32_188 : i32 to vector<32x16xi32>
    %292 = arith.cmpi ne, %290, %291 : vector<32x16xi32>
    %c0_i32_189 = arith.constant 0 : i32
    %293 = vector.broadcast %c0_i32_189 : i32 to vector<32x16xi32>
    %294 = arith.cmpi slt, %290, %293 : vector<32x16xi32>
    %c0_i32_190 = arith.constant 0 : i32
    %295 = arith.cmpi slt, %288, %c0_i32_190 : i32
    %296 = vector.broadcast %295 : i1 to vector<32x16xi1>
    %297 = vector.broadcast %296 : vector<32x16xi1> to vector<32x16xi1>
    %298 = arith.xori %294, %297 : vector<32x16xi1>
    %299 = arith.andi %298, %292 : vector<32x16xi1>
    %300 = vector.broadcast %288 : i32 to vector<32x16xi32>
    %301 = arith.addi %290, %300 : vector<32x16xi32>
    %302 = arith.select %299, %301, %290 : vector<32x16xi1>, vector<32x16xi32>
    %c15_i32_191 = arith.constant 15 : i32
    %303 = vector.broadcast %c15_i32_191 : i32 to vector<32x16xi32>
    %304 = arith.cmpi eq, %302, %303 : vector<32x16xi32>
    %cst_192 = arith.constant 0.000000e+00 : f32
    %305 = vector.broadcast %cst_192 : f32 to vector<32x16xf32>
    %306 = arith.select %304, %305, %285 : vector<32x16xi1>, vector<32x16xf32>
    %307 = vector.extract_strided_slice %12 {offsets = [2, 0, 0], sizes = [1, 16, 16], strides = [1, 1, 1]} : vector<3x16x16xf32> to vector<1x16x16xf32>
    %308 = vector.shape_cast %307 : vector<1x16x16xf32> to vector<16x16xf32>
    %cst_193 = arith.constant dense<0.000000e+00> : vector<32x16xf32>
    %309 = tpu.matmul %306, %308, %cst_193 {dimension_numbers = #tpu.dot_dimension_numbers<[1], [0], [0], [1], [0, 0, 1, 1], [], []>} : vector<32x16xf32>, vector<16x16xf32>, vector<32x16xf32> -> vector<32x16xf32>
    %310 = arith.addf %284, %309 : vector<32x16xf32>
    %311 = vector.broadcast %13 : vector<1x16xf32> to vector<32x16xf32>
    %312 = arith.mulf %310, %311 : vector<32x16xf32>
    %313 = vector.broadcast %14 : vector<1x16xf32> to vector<32x16xf32>
    %314 = arith.addf %312, %313 : vector<32x16xf32>
    %315 = arith.addf %314, %255 : vector<32x16xf32>
    %cst_194 = arith.constant 0.000000e+00 : f32
    %316 = vector.broadcast %cst_194 : f32 to vector<32x16xf32>
    %317 = arith.maximumf %315, %316 : vector<32x16xf32>
    %318 = tpu.iota {dimensions = array<i32: 0>} : vector<16x32xi32>
    %319 = tpu.iota {dimensions = array<i32: 1>} : vector<16x32xi32>
    %c2_i32_195 = arith.constant 2 : i32
    %320 = vector.broadcast %c2_i32_195 : i32 to vector<16x32xi32>
    %321 = arith.muli %320, %318 : vector<16x32xi32>
    %322 = arith.cmpi eq, %319, %321 : vector<16x32xi32>
    %cst_196 = arith.constant 1.000000e+00 : f32
    %cst_197 = arith.constant 0.000000e+00 : f32
    %323 = vector.broadcast %cst_196 : f32 to vector<16x32xf32>
    %324 = vector.broadcast %cst_197 : f32 to vector<16x32xf32>
    %325 = arith.select %322, %323, %324 : vector<16x32xi1>, vector<16x32xf32>
    %c2_i32_198 = arith.constant 2 : i32
    %326 = vector.broadcast %c2_i32_198 : i32 to vector<16x32xi32>
    %327 = arith.muli %326, %318 : vector<16x32xi32>
    %c1_i32_199 = arith.constant 1 : i32
    %328 = vector.broadcast %c1_i32_199 : i32 to vector<16x32xi32>
    %329 = arith.addi %327, %328 : vector<16x32xi32>
    %330 = arith.cmpi eq, %319, %329 : vector<16x32xi32>
    %cst_200 = arith.constant 1.000000e+00 : f32
    %cst_201 = arith.constant 0.000000e+00 : f32
    %331 = vector.broadcast %cst_200 : f32 to vector<16x32xf32>
    %332 = vector.broadcast %cst_201 : f32 to vector<16x32xf32>
    %333 = arith.select %330, %331, %332 : vector<16x32xi1>, vector<16x32xf32>
    %cst_202 = arith.constant dense<0.000000e+00> : vector<16x16xf32>
    %334 = tpu.matmul %325, %317, %cst_202 {dimension_numbers = #tpu.dot_dimension_numbers<[1], [0], [0], [1], [0, 0, 1, 1], [], []>} : vector<16x32xf32>, vector<32x16xf32>, vector<16x16xf32> -> vector<16x16xf32>
    %cst_203 = arith.constant dense<0.000000e+00> : vector<16x16xf32>
    %335 = tpu.matmul %333, %317, %cst_203 {dimension_numbers = #tpu.dot_dimension_numbers<[1], [0], [0], [1], [0, 0, 1, 1], [], []>} : vector<16x32xf32>, vector<32x16xf32>, vector<16x16xf32> -> vector<16x16xf32>
    %336 = arith.maximumf %334, %335 : vector<16x16xf32>
    %c1_i32_204 = arith.constant 1 : i32
    %337 = tpu.dynamic_rotate %336 by %c1_i32_204 dim 0 : vector<16x16xf32>, i32 -> vector<16x16xf32>
    %338 = tpu.iota {dimensions = array<i32: 0>} : vector<16x16xi32>
    %c8_i32 = arith.constant 8 : i32
    %c0_i32_205 = arith.constant 0 : i32
    %339 = arith.cmpi eq, %c8_i32, %c0_i32_205 : i32
    %c1_i32_206 = arith.constant 1 : i32
    %340 = arith.select %339, %c1_i32_206, %c8_i32 : i32
    %341 = vector.broadcast %340 : i32 to vector<16x16xi32>
    %342 = arith.remsi %338, %341 : vector<16x16xi32>
    %c0_i32_207 = arith.constant 0 : i32
    %343 = vector.broadcast %c0_i32_207 : i32 to vector<16x16xi32>
    %344 = arith.cmpi ne, %342, %343 : vector<16x16xi32>
    %c0_i32_208 = arith.constant 0 : i32
    %345 = vector.broadcast %c0_i32_208 : i32 to vector<16x16xi32>
    %346 = arith.cmpi slt, %342, %345 : vector<16x16xi32>
    %c0_i32_209 = arith.constant 0 : i32
    %347 = arith.cmpi slt, %340, %c0_i32_209 : i32
    %348 = vector.broadcast %347 : i1 to vector<16x16xi1>
    %349 = vector.broadcast %348 : vector<16x16xi1> to vector<16x16xi1>
    %350 = arith.xori %346, %349 : vector<16x16xi1>
    %351 = arith.andi %350, %344 : vector<16x16xi1>
    %352 = vector.broadcast %340 : i32 to vector<16x16xi32>
    %353 = arith.addi %342, %352 : vector<16x16xi32>
    %354 = arith.select %351, %353, %342 : vector<16x16xi1>, vector<16x16xi32>
    %c0_i32_210 = arith.constant 0 : i32
    %355 = vector.broadcast %c0_i32_210 : i32 to vector<16x16xi32>
    %356 = arith.cmpi eq, %354, %355 : vector<16x16xi32>
    %cst_211 = arith.constant 0.000000e+00 : f32
    %357 = vector.broadcast %cst_211 : f32 to vector<16x16xf32>
    %358 = arith.select %356, %357, %337 : vector<16x16xi1>, vector<16x16xf32>
    %359 = vector.extract_strided_slice %17 {offsets = [0, 0, 0], sizes = [1, 16, 32], strides = [1, 1, 1]} : vector<3x16x32xf32> to vector<1x16x32xf32>
    %360 = vector.shape_cast %359 : vector<1x16x32xf32> to vector<16x32xf32>
    %cst_212 = arith.constant dense<0.000000e+00> : vector<16x32xf32>
    %361 = tpu.matmul %358, %360, %cst_212 {dimension_numbers = #tpu.dot_dimension_numbers<[1], [0], [0], [1], [0, 0, 1, 1], [], []>} : vector<16x16xf32>, vector<16x32xf32>, vector<16x32xf32> -> vector<16x32xf32>
    %362 = vector.extract_strided_slice %17 {offsets = [1, 0, 0], sizes = [1, 16, 32], strides = [1, 1, 1]} : vector<3x16x32xf32> to vector<1x16x32xf32>
    %363 = vector.shape_cast %362 : vector<1x16x32xf32> to vector<16x32xf32>
    %cst_213 = arith.constant dense<0.000000e+00> : vector<16x32xf32>
    %364 = tpu.matmul %336, %363, %cst_213 {dimension_numbers = #tpu.dot_dimension_numbers<[1], [0], [0], [1], [0, 0, 1, 1], [], []>} : vector<16x16xf32>, vector<16x32xf32>, vector<16x32xf32> -> vector<16x32xf32>
    %365 = arith.addf %361, %364 : vector<16x32xf32>
    %c15_i32_214 = arith.constant 15 : i32
    %366 = tpu.dynamic_rotate %336 by %c15_i32_214 dim 0 : vector<16x16xf32>, i32 -> vector<16x16xf32>
    %367 = tpu.iota {dimensions = array<i32: 0>} : vector<16x16xi32>
    %c8_i32_215 = arith.constant 8 : i32
    %c0_i32_216 = arith.constant 0 : i32
    %368 = arith.cmpi eq, %c8_i32_215, %c0_i32_216 : i32
    %c1_i32_217 = arith.constant 1 : i32
    %369 = arith.select %368, %c1_i32_217, %c8_i32_215 : i32
    %370 = vector.broadcast %369 : i32 to vector<16x16xi32>
    %371 = arith.remsi %367, %370 : vector<16x16xi32>
    %c0_i32_218 = arith.constant 0 : i32
    %372 = vector.broadcast %c0_i32_218 : i32 to vector<16x16xi32>
    %373 = arith.cmpi ne, %371, %372 : vector<16x16xi32>
    %c0_i32_219 = arith.constant 0 : i32
    %374 = vector.broadcast %c0_i32_219 : i32 to vector<16x16xi32>
    %375 = arith.cmpi slt, %371, %374 : vector<16x16xi32>
    %c0_i32_220 = arith.constant 0 : i32
    %376 = arith.cmpi slt, %369, %c0_i32_220 : i32
    %377 = vector.broadcast %376 : i1 to vector<16x16xi1>
    %378 = vector.broadcast %377 : vector<16x16xi1> to vector<16x16xi1>
    %379 = arith.xori %375, %378 : vector<16x16xi1>
    %380 = arith.andi %379, %373 : vector<16x16xi1>
    %381 = vector.broadcast %369 : i32 to vector<16x16xi32>
    %382 = arith.addi %371, %381 : vector<16x16xi32>
    %383 = arith.select %380, %382, %371 : vector<16x16xi1>, vector<16x16xi32>
    %c7_i32 = arith.constant 7 : i32
    %384 = vector.broadcast %c7_i32 : i32 to vector<16x16xi32>
    %385 = arith.cmpi eq, %383, %384 : vector<16x16xi32>
    %cst_221 = arith.constant 0.000000e+00 : f32
    %386 = vector.broadcast %cst_221 : f32 to vector<16x16xf32>
    %387 = arith.select %385, %386, %366 : vector<16x16xi1>, vector<16x16xf32>
    %388 = vector.extract_strided_slice %17 {offsets = [2, 0, 0], sizes = [1, 16, 32], strides = [1, 1, 1]} : vector<3x16x32xf32> to vector<1x16x32xf32>
    %389 = vector.shape_cast %388 : vector<1x16x32xf32> to vector<16x32xf32>
    %cst_222 = arith.constant dense<0.000000e+00> : vector<16x32xf32>
    %390 = tpu.matmul %387, %389, %cst_222 {dimension_numbers = #tpu.dot_dimension_numbers<[1], [0], [0], [1], [0, 0, 1, 1], [], []>} : vector<16x16xf32>, vector<16x32xf32>, vector<16x32xf32> -> vector<16x32xf32>
    %391 = arith.addf %365, %390 : vector<16x32xf32>
    %392 = vector.broadcast %18 : vector<1x32xf32> to vector<16x32xf32>
    %393 = arith.mulf %391, %392 : vector<16x32xf32>
    %394 = vector.broadcast %19 : vector<1x32xf32> to vector<16x32xf32>
    %395 = arith.addf %393, %394 : vector<16x32xf32>
    %cst_223 = arith.constant 0.000000e+00 : f32
    %396 = vector.broadcast %cst_223 : f32 to vector<16x32xf32>
    %397 = arith.maximumf %395, %396 : vector<16x32xf32>
    %cst_224 = arith.constant dense<0.000000e+00> : vector<16x32xf32>
    %398 = tpu.matmul %336, %23, %cst_224 {dimension_numbers = #tpu.dot_dimension_numbers<[1], [0], [0], [1], [0, 0, 1, 1], [], []>} : vector<16x16xf32>, vector<16x32xf32>, vector<16x32xf32> -> vector<16x32xf32>
    %399 = vector.broadcast %24 : vector<1x32xf32> to vector<16x32xf32>
    %400 = arith.addf %399, %398 : vector<16x32xf32>
    %c1_i32_225 = arith.constant 1 : i32
    %401 = tpu.dynamic_rotate %397 by %c1_i32_225 dim 0 : vector<16x32xf32>, i32 -> vector<16x32xf32>
    %402 = tpu.iota {dimensions = array<i32: 0>} : vector<16x32xi32>
    %c8_i32_226 = arith.constant 8 : i32
    %c0_i32_227 = arith.constant 0 : i32
    %403 = arith.cmpi eq, %c8_i32_226, %c0_i32_227 : i32
    %c1_i32_228 = arith.constant 1 : i32
    %404 = arith.select %403, %c1_i32_228, %c8_i32_226 : i32
    %405 = vector.broadcast %404 : i32 to vector<16x32xi32>
    %406 = arith.remsi %402, %405 : vector<16x32xi32>
    %c0_i32_229 = arith.constant 0 : i32
    %407 = vector.broadcast %c0_i32_229 : i32 to vector<16x32xi32>
    %408 = arith.cmpi ne, %406, %407 : vector<16x32xi32>
    %c0_i32_230 = arith.constant 0 : i32
    %409 = vector.broadcast %c0_i32_230 : i32 to vector<16x32xi32>
    %410 = arith.cmpi slt, %406, %409 : vector<16x32xi32>
    %c0_i32_231 = arith.constant 0 : i32
    %411 = arith.cmpi slt, %404, %c0_i32_231 : i32
    %412 = vector.broadcast %411 : i1 to vector<16x32xi1>
    %413 = vector.broadcast %412 : vector<16x32xi1> to vector<16x32xi1>
    %414 = arith.xori %410, %413 : vector<16x32xi1>
    %415 = arith.andi %414, %408 : vector<16x32xi1>
    %416 = vector.broadcast %404 : i32 to vector<16x32xi32>
    %417 = arith.addi %406, %416 : vector<16x32xi32>
    %418 = arith.select %415, %417, %406 : vector<16x32xi1>, vector<16x32xi32>
    %c0_i32_232 = arith.constant 0 : i32
    %419 = vector.broadcast %c0_i32_232 : i32 to vector<16x32xi32>
    %420 = arith.cmpi eq, %418, %419 : vector<16x32xi32>
    %cst_233 = arith.constant 0.000000e+00 : f32
    %421 = vector.broadcast %cst_233 : f32 to vector<16x32xf32>
    %422 = arith.select %420, %421, %401 : vector<16x32xi1>, vector<16x32xf32>
    %423 = vector.extract_strided_slice %20 {offsets = [0, 0, 0], sizes = [1, 32, 32], strides = [1, 1, 1]} : vector<3x32x32xf32> to vector<1x32x32xf32>
    %424 = vector.shape_cast %423 : vector<1x32x32xf32> to vector<32x32xf32>
    %cst_234 = arith.constant dense<0.000000e+00> : vector<16x32xf32>
    %425 = tpu.matmul %422, %424, %cst_234 {dimension_numbers = #tpu.dot_dimension_numbers<[1], [0], [0], [1], [0, 0, 1, 1], [], []>} : vector<16x32xf32>, vector<32x32xf32>, vector<16x32xf32> -> vector<16x32xf32>
    %426 = vector.extract_strided_slice %20 {offsets = [1, 0, 0], sizes = [1, 32, 32], strides = [1, 1, 1]} : vector<3x32x32xf32> to vector<1x32x32xf32>
    %427 = vector.shape_cast %426 : vector<1x32x32xf32> to vector<32x32xf32>
    %cst_235 = arith.constant dense<0.000000e+00> : vector<16x32xf32>
    %428 = tpu.matmul %397, %427, %cst_235 {dimension_numbers = #tpu.dot_dimension_numbers<[1], [0], [0], [1], [0, 0, 1, 1], [], []>} : vector<16x32xf32>, vector<32x32xf32>, vector<16x32xf32> -> vector<16x32xf32>
    %429 = arith.addf %425, %428 : vector<16x32xf32>
    %c15_i32_236 = arith.constant 15 : i32
    %430 = tpu.dynamic_rotate %397 by %c15_i32_236 dim 0 : vector<16x32xf32>, i32 -> vector<16x32xf32>
    %431 = tpu.iota {dimensions = array<i32: 0>} : vector<16x32xi32>
    %c8_i32_237 = arith.constant 8 : i32
    %c0_i32_238 = arith.constant 0 : i32
    %432 = arith.cmpi eq, %c8_i32_237, %c0_i32_238 : i32
    %c1_i32_239 = arith.constant 1 : i32
    %433 = arith.select %432, %c1_i32_239, %c8_i32_237 : i32
    %434 = vector.broadcast %433 : i32 to vector<16x32xi32>
    %435 = arith.remsi %431, %434 : vector<16x32xi32>
    %c0_i32_240 = arith.constant 0 : i32
    %436 = vector.broadcast %c0_i32_240 : i32 to vector<16x32xi32>
    %437 = arith.cmpi ne, %435, %436 : vector<16x32xi32>
    %c0_i32_241 = arith.constant 0 : i32
    %438 = vector.broadcast %c0_i32_241 : i32 to vector<16x32xi32>
    %439 = arith.cmpi slt, %435, %438 : vector<16x32xi32>
    %c0_i32_242 = arith.constant 0 : i32
    %440 = arith.cmpi slt, %433, %c0_i32_242 : i32
    %441 = vector.broadcast %440 : i1 to vector<16x32xi1>
    %442 = vector.broadcast %441 : vector<16x32xi1> to vector<16x32xi1>
    %443 = arith.xori %439, %442 : vector<16x32xi1>
    %444 = arith.andi %443, %437 : vector<16x32xi1>
    %445 = vector.broadcast %433 : i32 to vector<16x32xi32>
    %446 = arith.addi %435, %445 : vector<16x32xi32>
    %447 = arith.select %444, %446, %435 : vector<16x32xi1>, vector<16x32xi32>
    %c7_i32_243 = arith.constant 7 : i32
    %448 = vector.broadcast %c7_i32_243 : i32 to vector<16x32xi32>
    %449 = arith.cmpi eq, %447, %448 : vector<16x32xi32>
    %cst_244 = arith.constant 0.000000e+00 : f32
    %450 = vector.broadcast %cst_244 : f32 to vector<16x32xf32>
    %451 = arith.select %449, %450, %430 : vector<16x32xi1>, vector<16x32xf32>
    %452 = vector.extract_strided_slice %20 {offsets = [2, 0, 0], sizes = [1, 32, 32], strides = [1, 1, 1]} : vector<3x32x32xf32> to vector<1x32x32xf32>
    %453 = vector.shape_cast %452 : vector<1x32x32xf32> to vector<32x32xf32>
    %cst_245 = arith.constant dense<0.000000e+00> : vector<16x32xf32>
    %454 = tpu.matmul %451, %453, %cst_245 {dimension_numbers = #tpu.dot_dimension_numbers<[1], [0], [0], [1], [0, 0, 1, 1], [], []>} : vector<16x32xf32>, vector<32x32xf32>, vector<16x32xf32> -> vector<16x32xf32>
    %455 = arith.addf %429, %454 : vector<16x32xf32>
    %456 = vector.broadcast %21 : vector<1x32xf32> to vector<16x32xf32>
    %457 = arith.mulf %455, %456 : vector<16x32xf32>
    %458 = vector.broadcast %22 : vector<1x32xf32> to vector<16x32xf32>
    %459 = arith.addf %457, %458 : vector<16x32xf32>
    %460 = arith.addf %459, %400 : vector<16x32xf32>
    %cst_246 = arith.constant 0.000000e+00 : f32
    %461 = vector.broadcast %cst_246 : f32 to vector<16x32xf32>
    %462 = arith.maximumf %460, %461 : vector<16x32xf32>
    %463 = vector.extract_strided_slice %25 {offsets = [0, 0, 0], sizes = [1, 32, 16], strides = [1, 1, 1]} : vector<2x32x16xf32> to vector<1x32x16xf32>
    %464 = vector.shape_cast %463 : vector<1x32x16xf32> to vector<32x16xf32>
    %cst_247 = arith.constant dense<0.000000e+00> : vector<16x16xf32>
    %465 = tpu.matmul %462, %464, %cst_247 {dimension_numbers = #tpu.dot_dimension_numbers<[1], [0], [0], [1], [0, 0, 1, 1], [], []>} : vector<16x32xf32>, vector<32x16xf32>, vector<16x16xf32> -> vector<16x16xf32>
    %466 = vector.broadcast %26 : vector<1x16xf32> to vector<16x16xf32>
    %467 = arith.addf %465, %466 : vector<16x16xf32>
    %468 = vector.extract_strided_slice %25 {offsets = [1, 0, 0], sizes = [1, 32, 16], strides = [1, 1, 1]} : vector<2x32x16xf32> to vector<1x32x16xf32>
    %469 = vector.shape_cast %468 : vector<1x32x16xf32> to vector<32x16xf32>
    %cst_248 = arith.constant dense<0.000000e+00> : vector<16x16xf32>
    %470 = tpu.matmul %462, %469, %cst_248 {dimension_numbers = #tpu.dot_dimension_numbers<[1], [0], [0], [1], [0, 0, 1, 1], [], []>} : vector<16x32xf32>, vector<32x16xf32>, vector<16x16xf32> -> vector<16x16xf32>
    %471 = vector.broadcast %26 : vector<1x16xf32> to vector<16x16xf32>
    %472 = arith.addf %470, %471 : vector<16x16xf32>
    %473 = tpu.iota {dimensions = array<i32: 0>} : vector<32x16xi32>
    %474 = tpu.iota {dimensions = array<i32: 1>} : vector<32x16xi32>
    %c2_i32_249 = arith.constant 2 : i32
    %475 = vector.broadcast %c2_i32_249 : i32 to vector<32x16xi32>
    %476 = arith.muli %475, %474 : vector<32x16xi32>
    %477 = arith.cmpi eq, %473, %476 : vector<32x16xi32>
    %cst_250 = arith.constant 1.000000e+00 : f32
    %cst_251 = arith.constant 0.000000e+00 : f32
    %478 = vector.broadcast %cst_250 : f32 to vector<32x16xf32>
    %479 = vector.broadcast %cst_251 : f32 to vector<32x16xf32>
    %480 = arith.select %477, %478, %479 : vector<32x16xi1>, vector<32x16xf32>
    %c2_i32_252 = arith.constant 2 : i32
    %481 = vector.broadcast %c2_i32_252 : i32 to vector<32x16xi32>
    %482 = arith.muli %481, %474 : vector<32x16xi32>
    %c1_i32_253 = arith.constant 1 : i32
    %483 = vector.broadcast %c1_i32_253 : i32 to vector<32x16xi32>
    %484 = arith.addi %482, %483 : vector<32x16xi32>
    %485 = arith.cmpi eq, %473, %484 : vector<32x16xi32>
    %cst_254 = arith.constant 1.000000e+00 : f32
    %cst_255 = arith.constant 0.000000e+00 : f32
    %486 = vector.broadcast %cst_254 : f32 to vector<32x16xf32>
    %487 = vector.broadcast %cst_255 : f32 to vector<32x16xf32>
    %488 = arith.select %485, %486, %487 : vector<32x16xi1>, vector<32x16xf32>
    %cst_256 = arith.constant dense<0.000000e+00> : vector<32x16xf32>
    %489 = tpu.matmul %480, %467, %cst_256 {dimension_numbers = #tpu.dot_dimension_numbers<[1], [0], [0], [1], [0, 0, 1, 1], [], []>} : vector<32x16xf32>, vector<16x16xf32>, vector<32x16xf32> -> vector<32x16xf32>
    %cst_257 = arith.constant dense<0.000000e+00> : vector<32x16xf32>
    %490 = tpu.matmul %488, %472, %cst_257 {dimension_numbers = #tpu.dot_dimension_numbers<[1], [0], [0], [1], [0, 0, 1, 1], [], []>} : vector<32x16xf32>, vector<16x16xf32>, vector<32x16xf32> -> vector<32x16xf32>
    %491 = arith.addf %489, %490 : vector<32x16xf32>
    %492 = vector.extract_strided_slice %27 {offsets = [0, 0, 0], sizes = [3, 16, 16], strides = [1, 1, 1]} : vector<3x32x16xf32> to vector<3x16x16xf32>
    %493 = vector.extract_strided_slice %33 {offsets = [0, 0], sizes = [16, 16], strides = [1, 1]} : vector<32x16xf32> to vector<16x16xf32>
    %494 = vector.extract_strided_slice %27 {offsets = [0, 16, 0], sizes = [3, 16, 16], strides = [1, 1, 1]} : vector<3x32x16xf32> to vector<3x16x16xf32>
    %495 = vector.extract_strided_slice %33 {offsets = [16, 0], sizes = [16, 16], strides = [1, 1]} : vector<32x16xf32> to vector<16x16xf32>
    %c1_i32_258 = arith.constant 1 : i32
    %496 = tpu.dynamic_rotate %491 by %c1_i32_258 dim 0 : vector<32x16xf32>, i32 -> vector<32x16xf32>
    %497 = tpu.iota {dimensions = array<i32: 0>} : vector<32x16xi32>
    %c16_i32_259 = arith.constant 16 : i32
    %c0_i32_260 = arith.constant 0 : i32
    %498 = arith.cmpi eq, %c16_i32_259, %c0_i32_260 : i32
    %c1_i32_261 = arith.constant 1 : i32
    %499 = arith.select %498, %c1_i32_261, %c16_i32_259 : i32
    %500 = vector.broadcast %499 : i32 to vector<32x16xi32>
    %501 = arith.remsi %497, %500 : vector<32x16xi32>
    %c0_i32_262 = arith.constant 0 : i32
    %502 = vector.broadcast %c0_i32_262 : i32 to vector<32x16xi32>
    %503 = arith.cmpi ne, %501, %502 : vector<32x16xi32>
    %c0_i32_263 = arith.constant 0 : i32
    %504 = vector.broadcast %c0_i32_263 : i32 to vector<32x16xi32>
    %505 = arith.cmpi slt, %501, %504 : vector<32x16xi32>
    %c0_i32_264 = arith.constant 0 : i32
    %506 = arith.cmpi slt, %499, %c0_i32_264 : i32
    %507 = vector.broadcast %506 : i1 to vector<32x16xi1>
    %508 = vector.broadcast %507 : vector<32x16xi1> to vector<32x16xi1>
    %509 = arith.xori %505, %508 : vector<32x16xi1>
    %510 = arith.andi %509, %503 : vector<32x16xi1>
    %511 = vector.broadcast %499 : i32 to vector<32x16xi32>
    %512 = arith.addi %501, %511 : vector<32x16xi32>
    %513 = arith.select %510, %512, %501 : vector<32x16xi1>, vector<32x16xi32>
    %c0_i32_265 = arith.constant 0 : i32
    %514 = vector.broadcast %c0_i32_265 : i32 to vector<32x16xi32>
    %515 = arith.cmpi eq, %513, %514 : vector<32x16xi32>
    %cst_266 = arith.constant 0.000000e+00 : f32
    %516 = vector.broadcast %cst_266 : f32 to vector<32x16xf32>
    %517 = arith.select %515, %516, %496 : vector<32x16xi1>, vector<32x16xf32>
    %518 = vector.extract_strided_slice %492 {offsets = [0, 0, 0], sizes = [1, 16, 16], strides = [1, 1, 1]} : vector<3x16x16xf32> to vector<1x16x16xf32>
    %519 = vector.shape_cast %518 : vector<1x16x16xf32> to vector<16x16xf32>
    %cst_267 = arith.constant dense<0.000000e+00> : vector<32x16xf32>
    %520 = tpu.matmul %517, %519, %cst_267 {dimension_numbers = #tpu.dot_dimension_numbers<[1], [0], [0], [1], [0, 0, 1, 1], [], []>} : vector<32x16xf32>, vector<16x16xf32>, vector<32x16xf32> -> vector<32x16xf32>
    %521 = vector.extract_strided_slice %492 {offsets = [1, 0, 0], sizes = [1, 16, 16], strides = [1, 1, 1]} : vector<3x16x16xf32> to vector<1x16x16xf32>
    %522 = vector.shape_cast %521 : vector<1x16x16xf32> to vector<16x16xf32>
    %cst_268 = arith.constant dense<0.000000e+00> : vector<32x16xf32>
    %523 = tpu.matmul %491, %522, %cst_268 {dimension_numbers = #tpu.dot_dimension_numbers<[1], [0], [0], [1], [0, 0, 1, 1], [], []>} : vector<32x16xf32>, vector<16x16xf32>, vector<32x16xf32> -> vector<32x16xf32>
    %524 = arith.addf %520, %523 : vector<32x16xf32>
    %c31_i32_269 = arith.constant 31 : i32
    %525 = tpu.dynamic_rotate %491 by %c31_i32_269 dim 0 : vector<32x16xf32>, i32 -> vector<32x16xf32>
    %526 = tpu.iota {dimensions = array<i32: 0>} : vector<32x16xi32>
    %c16_i32_270 = arith.constant 16 : i32
    %c0_i32_271 = arith.constant 0 : i32
    %527 = arith.cmpi eq, %c16_i32_270, %c0_i32_271 : i32
    %c1_i32_272 = arith.constant 1 : i32
    %528 = arith.select %527, %c1_i32_272, %c16_i32_270 : i32
    %529 = vector.broadcast %528 : i32 to vector<32x16xi32>
    %530 = arith.remsi %526, %529 : vector<32x16xi32>
    %c0_i32_273 = arith.constant 0 : i32
    %531 = vector.broadcast %c0_i32_273 : i32 to vector<32x16xi32>
    %532 = arith.cmpi ne, %530, %531 : vector<32x16xi32>
    %c0_i32_274 = arith.constant 0 : i32
    %533 = vector.broadcast %c0_i32_274 : i32 to vector<32x16xi32>
    %534 = arith.cmpi slt, %530, %533 : vector<32x16xi32>
    %c0_i32_275 = arith.constant 0 : i32
    %535 = arith.cmpi slt, %528, %c0_i32_275 : i32
    %536 = vector.broadcast %535 : i1 to vector<32x16xi1>
    %537 = vector.broadcast %536 : vector<32x16xi1> to vector<32x16xi1>
    %538 = arith.xori %534, %537 : vector<32x16xi1>
    %539 = arith.andi %538, %532 : vector<32x16xi1>
    %540 = vector.broadcast %528 : i32 to vector<32x16xi32>
    %541 = arith.addi %530, %540 : vector<32x16xi32>
    %542 = arith.select %539, %541, %530 : vector<32x16xi1>, vector<32x16xi32>
    %c15_i32_276 = arith.constant 15 : i32
    %543 = vector.broadcast %c15_i32_276 : i32 to vector<32x16xi32>
    %544 = arith.cmpi eq, %542, %543 : vector<32x16xi32>
    %cst_277 = arith.constant 0.000000e+00 : f32
    %545 = vector.broadcast %cst_277 : f32 to vector<32x16xf32>
    %546 = arith.select %544, %545, %525 : vector<32x16xi1>, vector<32x16xf32>
    %547 = vector.extract_strided_slice %492 {offsets = [2, 0, 0], sizes = [1, 16, 16], strides = [1, 1, 1]} : vector<3x16x16xf32> to vector<1x16x16xf32>
    %548 = vector.shape_cast %547 : vector<1x16x16xf32> to vector<16x16xf32>
    %cst_278 = arith.constant dense<0.000000e+00> : vector<32x16xf32>
    %549 = tpu.matmul %546, %548, %cst_278 {dimension_numbers = #tpu.dot_dimension_numbers<[1], [0], [0], [1], [0, 0, 1, 1], [], []>} : vector<32x16xf32>, vector<16x16xf32>, vector<32x16xf32> -> vector<32x16xf32>
    %550 = arith.addf %524, %549 : vector<32x16xf32>
    %c1_i32_279 = arith.constant 1 : i32
    %551 = tpu.dynamic_rotate %317 by %c1_i32_279 dim 0 : vector<32x16xf32>, i32 -> vector<32x16xf32>
    %552 = tpu.iota {dimensions = array<i32: 0>} : vector<32x16xi32>
    %c16_i32_280 = arith.constant 16 : i32
    %c0_i32_281 = arith.constant 0 : i32
    %553 = arith.cmpi eq, %c16_i32_280, %c0_i32_281 : i32
    %c1_i32_282 = arith.constant 1 : i32
    %554 = arith.select %553, %c1_i32_282, %c16_i32_280 : i32
    %555 = vector.broadcast %554 : i32 to vector<32x16xi32>
    %556 = arith.remsi %552, %555 : vector<32x16xi32>
    %c0_i32_283 = arith.constant 0 : i32
    %557 = vector.broadcast %c0_i32_283 : i32 to vector<32x16xi32>
    %558 = arith.cmpi ne, %556, %557 : vector<32x16xi32>
    %c0_i32_284 = arith.constant 0 : i32
    %559 = vector.broadcast %c0_i32_284 : i32 to vector<32x16xi32>
    %560 = arith.cmpi slt, %556, %559 : vector<32x16xi32>
    %c0_i32_285 = arith.constant 0 : i32
    %561 = arith.cmpi slt, %554, %c0_i32_285 : i32
    %562 = vector.broadcast %561 : i1 to vector<32x16xi1>
    %563 = vector.broadcast %562 : vector<32x16xi1> to vector<32x16xi1>
    %564 = arith.xori %560, %563 : vector<32x16xi1>
    %565 = arith.andi %564, %558 : vector<32x16xi1>
    %566 = vector.broadcast %554 : i32 to vector<32x16xi32>
    %567 = arith.addi %556, %566 : vector<32x16xi32>
    %568 = arith.select %565, %567, %556 : vector<32x16xi1>, vector<32x16xi32>
    %c0_i32_286 = arith.constant 0 : i32
    %569 = vector.broadcast %c0_i32_286 : i32 to vector<32x16xi32>
    %570 = arith.cmpi eq, %568, %569 : vector<32x16xi32>
    %cst_287 = arith.constant 0.000000e+00 : f32
    %571 = vector.broadcast %cst_287 : f32 to vector<32x16xf32>
    %572 = arith.select %570, %571, %551 : vector<32x16xi1>, vector<32x16xf32>
    %573 = vector.extract_strided_slice %494 {offsets = [0, 0, 0], sizes = [1, 16, 16], strides = [1, 1, 1]} : vector<3x16x16xf32> to vector<1x16x16xf32>
    %574 = vector.shape_cast %573 : vector<1x16x16xf32> to vector<16x16xf32>
    %cst_288 = arith.constant dense<0.000000e+00> : vector<32x16xf32>
    %575 = tpu.matmul %572, %574, %cst_288 {dimension_numbers = #tpu.dot_dimension_numbers<[1], [0], [0], [1], [0, 0, 1, 1], [], []>} : vector<32x16xf32>, vector<16x16xf32>, vector<32x16xf32> -> vector<32x16xf32>
    %576 = vector.extract_strided_slice %494 {offsets = [1, 0, 0], sizes = [1, 16, 16], strides = [1, 1, 1]} : vector<3x16x16xf32> to vector<1x16x16xf32>
    %577 = vector.shape_cast %576 : vector<1x16x16xf32> to vector<16x16xf32>
    %cst_289 = arith.constant dense<0.000000e+00> : vector<32x16xf32>
    %578 = tpu.matmul %317, %577, %cst_289 {dimension_numbers = #tpu.dot_dimension_numbers<[1], [0], [0], [1], [0, 0, 1, 1], [], []>} : vector<32x16xf32>, vector<16x16xf32>, vector<32x16xf32> -> vector<32x16xf32>
    %579 = arith.addf %575, %578 : vector<32x16xf32>
    %c31_i32_290 = arith.constant 31 : i32
    %580 = tpu.dynamic_rotate %317 by %c31_i32_290 dim 0 : vector<32x16xf32>, i32 -> vector<32x16xf32>
    %581 = tpu.iota {dimensions = array<i32: 0>} : vector<32x16xi32>
    %c16_i32_291 = arith.constant 16 : i32
    %c0_i32_292 = arith.constant 0 : i32
    %582 = arith.cmpi eq, %c16_i32_291, %c0_i32_292 : i32
    %c1_i32_293 = arith.constant 1 : i32
    %583 = arith.select %582, %c1_i32_293, %c16_i32_291 : i32
    %584 = vector.broadcast %583 : i32 to vector<32x16xi32>
    %585 = arith.remsi %581, %584 : vector<32x16xi32>
    %c0_i32_294 = arith.constant 0 : i32
    %586 = vector.broadcast %c0_i32_294 : i32 to vector<32x16xi32>
    %587 = arith.cmpi ne, %585, %586 : vector<32x16xi32>
    %c0_i32_295 = arith.constant 0 : i32
    %588 = vector.broadcast %c0_i32_295 : i32 to vector<32x16xi32>
    %589 = arith.cmpi slt, %585, %588 : vector<32x16xi32>
    %c0_i32_296 = arith.constant 0 : i32
    %590 = arith.cmpi slt, %583, %c0_i32_296 : i32
    %591 = vector.broadcast %590 : i1 to vector<32x16xi1>
    %592 = vector.broadcast %591 : vector<32x16xi1> to vector<32x16xi1>
    %593 = arith.xori %589, %592 : vector<32x16xi1>
    %594 = arith.andi %593, %587 : vector<32x16xi1>
    %595 = vector.broadcast %583 : i32 to vector<32x16xi32>
    %596 = arith.addi %585, %595 : vector<32x16xi32>
    %597 = arith.select %594, %596, %585 : vector<32x16xi1>, vector<32x16xi32>
    %c15_i32_297 = arith.constant 15 : i32
    %598 = vector.broadcast %c15_i32_297 : i32 to vector<32x16xi32>
    %599 = arith.cmpi eq, %597, %598 : vector<32x16xi32>
    %cst_298 = arith.constant 0.000000e+00 : f32
    %600 = vector.broadcast %cst_298 : f32 to vector<32x16xf32>
    %601 = arith.select %599, %600, %580 : vector<32x16xi1>, vector<32x16xf32>
    %602 = vector.extract_strided_slice %494 {offsets = [2, 0, 0], sizes = [1, 16, 16], strides = [1, 1, 1]} : vector<3x16x16xf32> to vector<1x16x16xf32>
    %603 = vector.shape_cast %602 : vector<1x16x16xf32> to vector<16x16xf32>
    %cst_299 = arith.constant dense<0.000000e+00> : vector<32x16xf32>
    %604 = tpu.matmul %601, %603, %cst_299 {dimension_numbers = #tpu.dot_dimension_numbers<[1], [0], [0], [1], [0, 0, 1, 1], [], []>} : vector<32x16xf32>, vector<16x16xf32>, vector<32x16xf32> -> vector<32x16xf32>
    %605 = arith.addf %579, %604 : vector<32x16xf32>
    %606 = arith.addf %550, %605 : vector<32x16xf32>
    %607 = vector.broadcast %28 : vector<1x16xf32> to vector<32x16xf32>
    %608 = arith.mulf %606, %607 : vector<32x16xf32>
    %609 = vector.broadcast %29 : vector<1x16xf32> to vector<32x16xf32>
    %610 = arith.addf %608, %609 : vector<32x16xf32>
    %cst_300 = arith.constant 0.000000e+00 : f32
    %611 = vector.broadcast %cst_300 : f32 to vector<32x16xf32>
    %612 = arith.maximumf %610, %611 : vector<32x16xf32>
    %cst_301 = arith.constant dense<0.000000e+00> : vector<32x16xf32>
    %613 = tpu.matmul %491, %493, %cst_301 {dimension_numbers = #tpu.dot_dimension_numbers<[1], [0], [0], [1], [0, 0, 1, 1], [], []>} : vector<32x16xf32>, vector<16x16xf32>, vector<32x16xf32> -> vector<32x16xf32>
    %614 = vector.broadcast %34 : vector<1x16xf32> to vector<32x16xf32>
    %615 = arith.addf %614, %613 : vector<32x16xf32>
    %cst_302 = arith.constant dense<0.000000e+00> : vector<32x16xf32>
    %616 = tpu.matmul %317, %495, %cst_302 {dimension_numbers = #tpu.dot_dimension_numbers<[1], [0], [0], [1], [0, 0, 1, 1], [], []>} : vector<32x16xf32>, vector<16x16xf32>, vector<32x16xf32> -> vector<32x16xf32>
    %617 = arith.addf %615, %616 : vector<32x16xf32>
    %c1_i32_303 = arith.constant 1 : i32
    %618 = tpu.dynamic_rotate %612 by %c1_i32_303 dim 0 : vector<32x16xf32>, i32 -> vector<32x16xf32>
    %619 = tpu.iota {dimensions = array<i32: 0>} : vector<32x16xi32>
    %c16_i32_304 = arith.constant 16 : i32
    %c0_i32_305 = arith.constant 0 : i32
    %620 = arith.cmpi eq, %c16_i32_304, %c0_i32_305 : i32
    %c1_i32_306 = arith.constant 1 : i32
    %621 = arith.select %620, %c1_i32_306, %c16_i32_304 : i32
    %622 = vector.broadcast %621 : i32 to vector<32x16xi32>
    %623 = arith.remsi %619, %622 : vector<32x16xi32>
    %c0_i32_307 = arith.constant 0 : i32
    %624 = vector.broadcast %c0_i32_307 : i32 to vector<32x16xi32>
    %625 = arith.cmpi ne, %623, %624 : vector<32x16xi32>
    %c0_i32_308 = arith.constant 0 : i32
    %626 = vector.broadcast %c0_i32_308 : i32 to vector<32x16xi32>
    %627 = arith.cmpi slt, %623, %626 : vector<32x16xi32>
    %c0_i32_309 = arith.constant 0 : i32
    %628 = arith.cmpi slt, %621, %c0_i32_309 : i32
    %629 = vector.broadcast %628 : i1 to vector<32x16xi1>
    %630 = vector.broadcast %629 : vector<32x16xi1> to vector<32x16xi1>
    %631 = arith.xori %627, %630 : vector<32x16xi1>
    %632 = arith.andi %631, %625 : vector<32x16xi1>
    %633 = vector.broadcast %621 : i32 to vector<32x16xi32>
    %634 = arith.addi %623, %633 : vector<32x16xi32>
    %635 = arith.select %632, %634, %623 : vector<32x16xi1>, vector<32x16xi32>
    %c0_i32_310 = arith.constant 0 : i32
    %636 = vector.broadcast %c0_i32_310 : i32 to vector<32x16xi32>
    %637 = arith.cmpi eq, %635, %636 : vector<32x16xi32>
    %cst_311 = arith.constant 0.000000e+00 : f32
    %638 = vector.broadcast %cst_311 : f32 to vector<32x16xf32>
    %639 = arith.select %637, %638, %618 : vector<32x16xi1>, vector<32x16xf32>
    %640 = vector.extract_strided_slice %30 {offsets = [0, 0, 0], sizes = [1, 16, 16], strides = [1, 1, 1]} : vector<3x16x16xf32> to vector<1x16x16xf32>
    %641 = vector.shape_cast %640 : vector<1x16x16xf32> to vector<16x16xf32>
    %cst_312 = arith.constant dense<0.000000e+00> : vector<32x16xf32>
    %642 = tpu.matmul %639, %641, %cst_312 {dimension_numbers = #tpu.dot_dimension_numbers<[1], [0], [0], [1], [0, 0, 1, 1], [], []>} : vector<32x16xf32>, vector<16x16xf32>, vector<32x16xf32> -> vector<32x16xf32>
    %643 = vector.extract_strided_slice %30 {offsets = [1, 0, 0], sizes = [1, 16, 16], strides = [1, 1, 1]} : vector<3x16x16xf32> to vector<1x16x16xf32>
    %644 = vector.shape_cast %643 : vector<1x16x16xf32> to vector<16x16xf32>
    %cst_313 = arith.constant dense<0.000000e+00> : vector<32x16xf32>
    %645 = tpu.matmul %612, %644, %cst_313 {dimension_numbers = #tpu.dot_dimension_numbers<[1], [0], [0], [1], [0, 0, 1, 1], [], []>} : vector<32x16xf32>, vector<16x16xf32>, vector<32x16xf32> -> vector<32x16xf32>
    %646 = arith.addf %642, %645 : vector<32x16xf32>
    %c31_i32_314 = arith.constant 31 : i32
    %647 = tpu.dynamic_rotate %612 by %c31_i32_314 dim 0 : vector<32x16xf32>, i32 -> vector<32x16xf32>
    %648 = tpu.iota {dimensions = array<i32: 0>} : vector<32x16xi32>
    %c16_i32_315 = arith.constant 16 : i32
    %c0_i32_316 = arith.constant 0 : i32
    %649 = arith.cmpi eq, %c16_i32_315, %c0_i32_316 : i32
    %c1_i32_317 = arith.constant 1 : i32
    %650 = arith.select %649, %c1_i32_317, %c16_i32_315 : i32
    %651 = vector.broadcast %650 : i32 to vector<32x16xi32>
    %652 = arith.remsi %648, %651 : vector<32x16xi32>
    %c0_i32_318 = arith.constant 0 : i32
    %653 = vector.broadcast %c0_i32_318 : i32 to vector<32x16xi32>
    %654 = arith.cmpi ne, %652, %653 : vector<32x16xi32>
    %c0_i32_319 = arith.constant 0 : i32
    %655 = vector.broadcast %c0_i32_319 : i32 to vector<32x16xi32>
    %656 = arith.cmpi slt, %652, %655 : vector<32x16xi32>
    %c0_i32_320 = arith.constant 0 : i32
    %657 = arith.cmpi slt, %650, %c0_i32_320 : i32
    %658 = vector.broadcast %657 : i1 to vector<32x16xi1>
    %659 = vector.broadcast %658 : vector<32x16xi1> to vector<32x16xi1>
    %660 = arith.xori %656, %659 : vector<32x16xi1>
    %661 = arith.andi %660, %654 : vector<32x16xi1>
    %662 = vector.broadcast %650 : i32 to vector<32x16xi32>
    %663 = arith.addi %652, %662 : vector<32x16xi32>
    %664 = arith.select %661, %663, %652 : vector<32x16xi1>, vector<32x16xi32>
    %c15_i32_321 = arith.constant 15 : i32
    %665 = vector.broadcast %c15_i32_321 : i32 to vector<32x16xi32>
    %666 = arith.cmpi eq, %664, %665 : vector<32x16xi32>
    %cst_322 = arith.constant 0.000000e+00 : f32
    %667 = vector.broadcast %cst_322 : f32 to vector<32x16xf32>
    %668 = arith.select %666, %667, %647 : vector<32x16xi1>, vector<32x16xf32>
    %669 = vector.extract_strided_slice %30 {offsets = [2, 0, 0], sizes = [1, 16, 16], strides = [1, 1, 1]} : vector<3x16x16xf32> to vector<1x16x16xf32>
    %670 = vector.shape_cast %669 : vector<1x16x16xf32> to vector<16x16xf32>
    %cst_323 = arith.constant dense<0.000000e+00> : vector<32x16xf32>
    %671 = tpu.matmul %668, %670, %cst_323 {dimension_numbers = #tpu.dot_dimension_numbers<[1], [0], [0], [1], [0, 0, 1, 1], [], []>} : vector<32x16xf32>, vector<16x16xf32>, vector<32x16xf32> -> vector<32x16xf32>
    %672 = arith.addf %646, %671 : vector<32x16xf32>
    %673 = vector.broadcast %31 : vector<1x16xf32> to vector<32x16xf32>
    %674 = arith.mulf %672, %673 : vector<32x16xf32>
    %675 = vector.broadcast %32 : vector<1x16xf32> to vector<32x16xf32>
    %676 = arith.addf %674, %675 : vector<32x16xf32>
    %677 = arith.addf %676, %617 : vector<32x16xf32>
    %cst_324 = arith.constant 0.000000e+00 : f32
    %678 = vector.broadcast %cst_324 : f32 to vector<32x16xf32>
    %679 = arith.maximumf %677, %678 : vector<32x16xf32>
    %680 = vector.extract_strided_slice %35 {offsets = [0, 0, 0], sizes = [1, 16, 8], strides = [1, 1, 1]} : vector<2x16x8xf32> to vector<1x16x8xf32>
    %681 = vector.shape_cast %680 : vector<1x16x8xf32> to vector<16x8xf32>
    %cst_325 = arith.constant dense<0.000000e+00> : vector<32x8xf32>
    %682 = tpu.matmul %679, %681, %cst_325 {dimension_numbers = #tpu.dot_dimension_numbers<[1], [0], [0], [1], [0, 0, 1, 1], [], []>} : vector<32x16xf32>, vector<16x8xf32>, vector<32x8xf32> -> vector<32x8xf32>
    %683 = vector.broadcast %36 : vector<1x8xf32> to vector<32x8xf32>
    %684 = arith.addf %682, %683 : vector<32x8xf32>
    %685 = vector.extract_strided_slice %35 {offsets = [1, 0, 0], sizes = [1, 16, 8], strides = [1, 1, 1]} : vector<2x16x8xf32> to vector<1x16x8xf32>
    %686 = vector.shape_cast %685 : vector<1x16x8xf32> to vector<16x8xf32>
    %cst_326 = arith.constant dense<0.000000e+00> : vector<32x8xf32>
    %687 = tpu.matmul %679, %686, %cst_326 {dimension_numbers = #tpu.dot_dimension_numbers<[1], [0], [0], [1], [0, 0, 1, 1], [], []>} : vector<32x16xf32>, vector<16x8xf32>, vector<32x8xf32> -> vector<32x8xf32>
    %688 = vector.broadcast %36 : vector<1x8xf32> to vector<32x8xf32>
    %689 = arith.addf %687, %688 : vector<32x8xf32>
    %690 = tpu.iota {dimensions = array<i32: 0>} : vector<64x32xi32>
    %691 = tpu.iota {dimensions = array<i32: 1>} : vector<64x32xi32>
    %c2_i32_327 = arith.constant 2 : i32
    %692 = vector.broadcast %c2_i32_327 : i32 to vector<64x32xi32>
    %693 = arith.muli %692, %691 : vector<64x32xi32>
    %694 = arith.cmpi eq, %690, %693 : vector<64x32xi32>
    %cst_328 = arith.constant 1.000000e+00 : f32
    %cst_329 = arith.constant 0.000000e+00 : f32
    %695 = vector.broadcast %cst_328 : f32 to vector<64x32xf32>
    %696 = vector.broadcast %cst_329 : f32 to vector<64x32xf32>
    %697 = arith.select %694, %695, %696 : vector<64x32xi1>, vector<64x32xf32>
    %c2_i32_330 = arith.constant 2 : i32
    %698 = vector.broadcast %c2_i32_330 : i32 to vector<64x32xi32>
    %699 = arith.muli %698, %691 : vector<64x32xi32>
    %c1_i32_331 = arith.constant 1 : i32
    %700 = vector.broadcast %c1_i32_331 : i32 to vector<64x32xi32>
    %701 = arith.addi %699, %700 : vector<64x32xi32>
    %702 = arith.cmpi eq, %690, %701 : vector<64x32xi32>
    %cst_332 = arith.constant 1.000000e+00 : f32
    %cst_333 = arith.constant 0.000000e+00 : f32
    %703 = vector.broadcast %cst_332 : f32 to vector<64x32xf32>
    %704 = vector.broadcast %cst_333 : f32 to vector<64x32xf32>
    %705 = arith.select %702, %703, %704 : vector<64x32xi1>, vector<64x32xf32>
    %cst_334 = arith.constant dense<0.000000e+00> : vector<64x8xf32>
    %706 = tpu.matmul %697, %684, %cst_334 {dimension_numbers = #tpu.dot_dimension_numbers<[1], [0], [0], [1], [0, 0, 1, 1], [], []>} : vector<64x32xf32>, vector<32x8xf32>, vector<64x8xf32> -> vector<64x8xf32>
    %cst_335 = arith.constant dense<0.000000e+00> : vector<64x8xf32>
    %707 = tpu.matmul %705, %689, %cst_335 {dimension_numbers = #tpu.dot_dimension_numbers<[1], [0], [0], [1], [0, 0, 1, 1], [], []>} : vector<64x32xf32>, vector<32x8xf32>, vector<64x8xf32> -> vector<64x8xf32>
    %708 = arith.addf %706, %707 : vector<64x8xf32>
    %709 = vector.extract_strided_slice %37 {offsets = [0, 0, 0], sizes = [3, 8, 8], strides = [1, 1, 1]} : vector<3x16x8xf32> to vector<3x8x8xf32>
    %710 = vector.extract_strided_slice %43 {offsets = [0, 0], sizes = [8, 8], strides = [1, 1]} : vector<16x8xf32> to vector<8x8xf32>
    %711 = vector.extract_strided_slice %37 {offsets = [0, 8, 0], sizes = [3, 8, 8], strides = [1, 1, 1]} : vector<3x16x8xf32> to vector<3x8x8xf32>
    %712 = vector.extract_strided_slice %43 {offsets = [8, 0], sizes = [8, 8], strides = [1, 1]} : vector<16x8xf32> to vector<8x8xf32>
    %c1_i32_336 = arith.constant 1 : i32
    %713 = tpu.dynamic_rotate %708 by %c1_i32_336 dim 0 : vector<64x8xf32>, i32 -> vector<64x8xf32>
    %714 = tpu.iota {dimensions = array<i32: 0>} : vector<64x8xi32>
    %c32_i32_337 = arith.constant 32 : i32
    %c0_i32_338 = arith.constant 0 : i32
    %715 = arith.cmpi eq, %c32_i32_337, %c0_i32_338 : i32
    %c1_i32_339 = arith.constant 1 : i32
    %716 = arith.select %715, %c1_i32_339, %c32_i32_337 : i32
    %717 = vector.broadcast %716 : i32 to vector<64x8xi32>
    %718 = arith.remsi %714, %717 : vector<64x8xi32>
    %c0_i32_340 = arith.constant 0 : i32
    %719 = vector.broadcast %c0_i32_340 : i32 to vector<64x8xi32>
    %720 = arith.cmpi ne, %718, %719 : vector<64x8xi32>
    %c0_i32_341 = arith.constant 0 : i32
    %721 = vector.broadcast %c0_i32_341 : i32 to vector<64x8xi32>
    %722 = arith.cmpi slt, %718, %721 : vector<64x8xi32>
    %c0_i32_342 = arith.constant 0 : i32
    %723 = arith.cmpi slt, %716, %c0_i32_342 : i32
    %724 = vector.broadcast %723 : i1 to vector<64x8xi1>
    %725 = vector.broadcast %724 : vector<64x8xi1> to vector<64x8xi1>
    %726 = arith.xori %722, %725 : vector<64x8xi1>
    %727 = arith.andi %726, %720 : vector<64x8xi1>
    %728 = vector.broadcast %716 : i32 to vector<64x8xi32>
    %729 = arith.addi %718, %728 : vector<64x8xi32>
    %730 = arith.select %727, %729, %718 : vector<64x8xi1>, vector<64x8xi32>
    %c0_i32_343 = arith.constant 0 : i32
    %731 = vector.broadcast %c0_i32_343 : i32 to vector<64x8xi32>
    %732 = arith.cmpi eq, %730, %731 : vector<64x8xi32>
    %cst_344 = arith.constant 0.000000e+00 : f32
    %733 = vector.broadcast %cst_344 : f32 to vector<64x8xf32>
    %734 = arith.select %732, %733, %713 : vector<64x8xi1>, vector<64x8xf32>
    %735 = vector.extract_strided_slice %709 {offsets = [0, 0, 0], sizes = [1, 8, 8], strides = [1, 1, 1]} : vector<3x8x8xf32> to vector<1x8x8xf32>
    %736 = vector.shape_cast %735 : vector<1x8x8xf32> to vector<8x8xf32>
    %cst_345 = arith.constant dense<0.000000e+00> : vector<64x8xf32>
    %737 = tpu.matmul %734, %736, %cst_345 {dimension_numbers = #tpu.dot_dimension_numbers<[1], [0], [0], [1], [0, 0, 1, 1], [], []>} : vector<64x8xf32>, vector<8x8xf32>, vector<64x8xf32> -> vector<64x8xf32>
    %738 = vector.extract_strided_slice %709 {offsets = [1, 0, 0], sizes = [1, 8, 8], strides = [1, 1, 1]} : vector<3x8x8xf32> to vector<1x8x8xf32>
    %739 = vector.shape_cast %738 : vector<1x8x8xf32> to vector<8x8xf32>
    %cst_346 = arith.constant dense<0.000000e+00> : vector<64x8xf32>
    %740 = tpu.matmul %708, %739, %cst_346 {dimension_numbers = #tpu.dot_dimension_numbers<[1], [0], [0], [1], [0, 0, 1, 1], [], []>} : vector<64x8xf32>, vector<8x8xf32>, vector<64x8xf32> -> vector<64x8xf32>
    %741 = arith.addf %737, %740 : vector<64x8xf32>
    %c63_i32_347 = arith.constant 63 : i32
    %742 = tpu.dynamic_rotate %708 by %c63_i32_347 dim 0 : vector<64x8xf32>, i32 -> vector<64x8xf32>
    %743 = tpu.iota {dimensions = array<i32: 0>} : vector<64x8xi32>
    %c32_i32_348 = arith.constant 32 : i32
    %c0_i32_349 = arith.constant 0 : i32
    %744 = arith.cmpi eq, %c32_i32_348, %c0_i32_349 : i32
    %c1_i32_350 = arith.constant 1 : i32
    %745 = arith.select %744, %c1_i32_350, %c32_i32_348 : i32
    %746 = vector.broadcast %745 : i32 to vector<64x8xi32>
    %747 = arith.remsi %743, %746 : vector<64x8xi32>
    %c0_i32_351 = arith.constant 0 : i32
    %748 = vector.broadcast %c0_i32_351 : i32 to vector<64x8xi32>
    %749 = arith.cmpi ne, %747, %748 : vector<64x8xi32>
    %c0_i32_352 = arith.constant 0 : i32
    %750 = vector.broadcast %c0_i32_352 : i32 to vector<64x8xi32>
    %751 = arith.cmpi slt, %747, %750 : vector<64x8xi32>
    %c0_i32_353 = arith.constant 0 : i32
    %752 = arith.cmpi slt, %745, %c0_i32_353 : i32
    %753 = vector.broadcast %752 : i1 to vector<64x8xi1>
    %754 = vector.broadcast %753 : vector<64x8xi1> to vector<64x8xi1>
    %755 = arith.xori %751, %754 : vector<64x8xi1>
    %756 = arith.andi %755, %749 : vector<64x8xi1>
    %757 = vector.broadcast %745 : i32 to vector<64x8xi32>
    %758 = arith.addi %747, %757 : vector<64x8xi32>
    %759 = arith.select %756, %758, %747 : vector<64x8xi1>, vector<64x8xi32>
    %c31_i32_354 = arith.constant 31 : i32
    %760 = vector.broadcast %c31_i32_354 : i32 to vector<64x8xi32>
    %761 = arith.cmpi eq, %759, %760 : vector<64x8xi32>
    %cst_355 = arith.constant 0.000000e+00 : f32
    %762 = vector.broadcast %cst_355 : f32 to vector<64x8xf32>
    %763 = arith.select %761, %762, %742 : vector<64x8xi1>, vector<64x8xf32>
    %764 = vector.extract_strided_slice %709 {offsets = [2, 0, 0], sizes = [1, 8, 8], strides = [1, 1, 1]} : vector<3x8x8xf32> to vector<1x8x8xf32>
    %765 = vector.shape_cast %764 : vector<1x8x8xf32> to vector<8x8xf32>
    %cst_356 = arith.constant dense<0.000000e+00> : vector<64x8xf32>
    %766 = tpu.matmul %763, %765, %cst_356 {dimension_numbers = #tpu.dot_dimension_numbers<[1], [0], [0], [1], [0, 0, 1, 1], [], []>} : vector<64x8xf32>, vector<8x8xf32>, vector<64x8xf32> -> vector<64x8xf32>
    %767 = arith.addf %741, %766 : vector<64x8xf32>
    %c1_i32_357 = arith.constant 1 : i32
    %768 = tpu.dynamic_rotate %172 by %c1_i32_357 dim 0 : vector<64x8xf32>, i32 -> vector<64x8xf32>
    %769 = tpu.iota {dimensions = array<i32: 0>} : vector<64x8xi32>
    %c32_i32_358 = arith.constant 32 : i32
    %c0_i32_359 = arith.constant 0 : i32
    %770 = arith.cmpi eq, %c32_i32_358, %c0_i32_359 : i32
    %c1_i32_360 = arith.constant 1 : i32
    %771 = arith.select %770, %c1_i32_360, %c32_i32_358 : i32
    %772 = vector.broadcast %771 : i32 to vector<64x8xi32>
    %773 = arith.remsi %769, %772 : vector<64x8xi32>
    %c0_i32_361 = arith.constant 0 : i32
    %774 = vector.broadcast %c0_i32_361 : i32 to vector<64x8xi32>
    %775 = arith.cmpi ne, %773, %774 : vector<64x8xi32>
    %c0_i32_362 = arith.constant 0 : i32
    %776 = vector.broadcast %c0_i32_362 : i32 to vector<64x8xi32>
    %777 = arith.cmpi slt, %773, %776 : vector<64x8xi32>
    %c0_i32_363 = arith.constant 0 : i32
    %778 = arith.cmpi slt, %771, %c0_i32_363 : i32
    %779 = vector.broadcast %778 : i1 to vector<64x8xi1>
    %780 = vector.broadcast %779 : vector<64x8xi1> to vector<64x8xi1>
    %781 = arith.xori %777, %780 : vector<64x8xi1>
    %782 = arith.andi %781, %775 : vector<64x8xi1>
    %783 = vector.broadcast %771 : i32 to vector<64x8xi32>
    %784 = arith.addi %773, %783 : vector<64x8xi32>
    %785 = arith.select %782, %784, %773 : vector<64x8xi1>, vector<64x8xi32>
    %c0_i32_364 = arith.constant 0 : i32
    %786 = vector.broadcast %c0_i32_364 : i32 to vector<64x8xi32>
    %787 = arith.cmpi eq, %785, %786 : vector<64x8xi32>
    %cst_365 = arith.constant 0.000000e+00 : f32
    %788 = vector.broadcast %cst_365 : f32 to vector<64x8xf32>
    %789 = arith.select %787, %788, %768 : vector<64x8xi1>, vector<64x8xf32>
    %790 = vector.extract_strided_slice %711 {offsets = [0, 0, 0], sizes = [1, 8, 8], strides = [1, 1, 1]} : vector<3x8x8xf32> to vector<1x8x8xf32>
    %791 = vector.shape_cast %790 : vector<1x8x8xf32> to vector<8x8xf32>
    %cst_366 = arith.constant dense<0.000000e+00> : vector<64x8xf32>
    %792 = tpu.matmul %789, %791, %cst_366 {dimension_numbers = #tpu.dot_dimension_numbers<[1], [0], [0], [1], [0, 0, 1, 1], [], []>} : vector<64x8xf32>, vector<8x8xf32>, vector<64x8xf32> -> vector<64x8xf32>
    %793 = vector.extract_strided_slice %711 {offsets = [1, 0, 0], sizes = [1, 8, 8], strides = [1, 1, 1]} : vector<3x8x8xf32> to vector<1x8x8xf32>
    %794 = vector.shape_cast %793 : vector<1x8x8xf32> to vector<8x8xf32>
    %cst_367 = arith.constant dense<0.000000e+00> : vector<64x8xf32>
    %795 = tpu.matmul %172, %794, %cst_367 {dimension_numbers = #tpu.dot_dimension_numbers<[1], [0], [0], [1], [0, 0, 1, 1], [], []>} : vector<64x8xf32>, vector<8x8xf32>, vector<64x8xf32> -> vector<64x8xf32>
    %796 = arith.addf %792, %795 : vector<64x8xf32>
    %c63_i32_368 = arith.constant 63 : i32
    %797 = tpu.dynamic_rotate %172 by %c63_i32_368 dim 0 : vector<64x8xf32>, i32 -> vector<64x8xf32>
    %798 = tpu.iota {dimensions = array<i32: 0>} : vector<64x8xi32>
    %c32_i32_369 = arith.constant 32 : i32
    %c0_i32_370 = arith.constant 0 : i32
    %799 = arith.cmpi eq, %c32_i32_369, %c0_i32_370 : i32
    %c1_i32_371 = arith.constant 1 : i32
    %800 = arith.select %799, %c1_i32_371, %c32_i32_369 : i32
    %801 = vector.broadcast %800 : i32 to vector<64x8xi32>
    %802 = arith.remsi %798, %801 : vector<64x8xi32>
    %c0_i32_372 = arith.constant 0 : i32
    %803 = vector.broadcast %c0_i32_372 : i32 to vector<64x8xi32>
    %804 = arith.cmpi ne, %802, %803 : vector<64x8xi32>
    %c0_i32_373 = arith.constant 0 : i32
    %805 = vector.broadcast %c0_i32_373 : i32 to vector<64x8xi32>
    %806 = arith.cmpi slt, %802, %805 : vector<64x8xi32>
    %c0_i32_374 = arith.constant 0 : i32
    %807 = arith.cmpi slt, %800, %c0_i32_374 : i32
    %808 = vector.broadcast %807 : i1 to vector<64x8xi1>
    %809 = vector.broadcast %808 : vector<64x8xi1> to vector<64x8xi1>
    %810 = arith.xori %806, %809 : vector<64x8xi1>
    %811 = arith.andi %810, %804 : vector<64x8xi1>
    %812 = vector.broadcast %800 : i32 to vector<64x8xi32>
    %813 = arith.addi %802, %812 : vector<64x8xi32>
    %814 = arith.select %811, %813, %802 : vector<64x8xi1>, vector<64x8xi32>
    %c31_i32_375 = arith.constant 31 : i32
    %815 = vector.broadcast %c31_i32_375 : i32 to vector<64x8xi32>
    %816 = arith.cmpi eq, %814, %815 : vector<64x8xi32>
    %cst_376 = arith.constant 0.000000e+00 : f32
    %817 = vector.broadcast %cst_376 : f32 to vector<64x8xf32>
    %818 = arith.select %816, %817, %797 : vector<64x8xi1>, vector<64x8xf32>
    %819 = vector.extract_strided_slice %711 {offsets = [2, 0, 0], sizes = [1, 8, 8], strides = [1, 1, 1]} : vector<3x8x8xf32> to vector<1x8x8xf32>
    %820 = vector.shape_cast %819 : vector<1x8x8xf32> to vector<8x8xf32>
    %cst_377 = arith.constant dense<0.000000e+00> : vector<64x8xf32>
    %821 = tpu.matmul %818, %820, %cst_377 {dimension_numbers = #tpu.dot_dimension_numbers<[1], [0], [0], [1], [0, 0, 1, 1], [], []>} : vector<64x8xf32>, vector<8x8xf32>, vector<64x8xf32> -> vector<64x8xf32>
    %822 = arith.addf %796, %821 : vector<64x8xf32>
    %823 = arith.addf %767, %822 : vector<64x8xf32>
    %824 = vector.broadcast %38 : vector<1x8xf32> to vector<64x8xf32>
    %825 = arith.mulf %823, %824 : vector<64x8xf32>
    %826 = vector.broadcast %39 : vector<1x8xf32> to vector<64x8xf32>
    %827 = arith.addf %825, %826 : vector<64x8xf32>
    %cst_378 = arith.constant 0.000000e+00 : f32
    %828 = vector.broadcast %cst_378 : f32 to vector<64x8xf32>
    %829 = arith.maximumf %827, %828 : vector<64x8xf32>
    %cst_379 = arith.constant dense<0.000000e+00> : vector<64x8xf32>
    %830 = tpu.matmul %708, %710, %cst_379 {dimension_numbers = #tpu.dot_dimension_numbers<[1], [0], [0], [1], [0, 0, 1, 1], [], []>} : vector<64x8xf32>, vector<8x8xf32>, vector<64x8xf32> -> vector<64x8xf32>
    %831 = vector.broadcast %44 : vector<1x8xf32> to vector<64x8xf32>
    %832 = arith.addf %831, %830 : vector<64x8xf32>
    %cst_380 = arith.constant dense<0.000000e+00> : vector<64x8xf32>
    %833 = tpu.matmul %172, %712, %cst_380 {dimension_numbers = #tpu.dot_dimension_numbers<[1], [0], [0], [1], [0, 0, 1, 1], [], []>} : vector<64x8xf32>, vector<8x8xf32>, vector<64x8xf32> -> vector<64x8xf32>
    %834 = arith.addf %832, %833 : vector<64x8xf32>
    %c1_i32_381 = arith.constant 1 : i32
    %835 = tpu.dynamic_rotate %829 by %c1_i32_381 dim 0 : vector<64x8xf32>, i32 -> vector<64x8xf32>
    %836 = tpu.iota {dimensions = array<i32: 0>} : vector<64x8xi32>
    %c32_i32_382 = arith.constant 32 : i32
    %c0_i32_383 = arith.constant 0 : i32
    %837 = arith.cmpi eq, %c32_i32_382, %c0_i32_383 : i32
    %c1_i32_384 = arith.constant 1 : i32
    %838 = arith.select %837, %c1_i32_384, %c32_i32_382 : i32
    %839 = vector.broadcast %838 : i32 to vector<64x8xi32>
    %840 = arith.remsi %836, %839 : vector<64x8xi32>
    %c0_i32_385 = arith.constant 0 : i32
    %841 = vector.broadcast %c0_i32_385 : i32 to vector<64x8xi32>
    %842 = arith.cmpi ne, %840, %841 : vector<64x8xi32>
    %c0_i32_386 = arith.constant 0 : i32
    %843 = vector.broadcast %c0_i32_386 : i32 to vector<64x8xi32>
    %844 = arith.cmpi slt, %840, %843 : vector<64x8xi32>
    %c0_i32_387 = arith.constant 0 : i32
    %845 = arith.cmpi slt, %838, %c0_i32_387 : i32
    %846 = vector.broadcast %845 : i1 to vector<64x8xi1>
    %847 = vector.broadcast %846 : vector<64x8xi1> to vector<64x8xi1>
    %848 = arith.xori %844, %847 : vector<64x8xi1>
    %849 = arith.andi %848, %842 : vector<64x8xi1>
    %850 = vector.broadcast %838 : i32 to vector<64x8xi32>
    %851 = arith.addi %840, %850 : vector<64x8xi32>
    %852 = arith.select %849, %851, %840 : vector<64x8xi1>, vector<64x8xi32>
    %c0_i32_388 = arith.constant 0 : i32
    %853 = vector.broadcast %c0_i32_388 : i32 to vector<64x8xi32>
    %854 = arith.cmpi eq, %852, %853 : vector<64x8xi32>
    %cst_389 = arith.constant 0.000000e+00 : f32
    %855 = vector.broadcast %cst_389 : f32 to vector<64x8xf32>
    %856 = arith.select %854, %855, %835 : vector<64x8xi1>, vector<64x8xf32>
    %857 = vector.extract_strided_slice %40 {offsets = [0, 0, 0], sizes = [1, 8, 8], strides = [1, 1, 1]} : vector<3x8x8xf32> to vector<1x8x8xf32>
    %858 = vector.shape_cast %857 : vector<1x8x8xf32> to vector<8x8xf32>
    %cst_390 = arith.constant dense<0.000000e+00> : vector<64x8xf32>
    %859 = tpu.matmul %856, %858, %cst_390 {dimension_numbers = #tpu.dot_dimension_numbers<[1], [0], [0], [1], [0, 0, 1, 1], [], []>} : vector<64x8xf32>, vector<8x8xf32>, vector<64x8xf32> -> vector<64x8xf32>
    %860 = vector.extract_strided_slice %40 {offsets = [1, 0, 0], sizes = [1, 8, 8], strides = [1, 1, 1]} : vector<3x8x8xf32> to vector<1x8x8xf32>
    %861 = vector.shape_cast %860 : vector<1x8x8xf32> to vector<8x8xf32>
    %cst_391 = arith.constant dense<0.000000e+00> : vector<64x8xf32>
    %862 = tpu.matmul %829, %861, %cst_391 {dimension_numbers = #tpu.dot_dimension_numbers<[1], [0], [0], [1], [0, 0, 1, 1], [], []>} : vector<64x8xf32>, vector<8x8xf32>, vector<64x8xf32> -> vector<64x8xf32>
    %863 = arith.addf %859, %862 : vector<64x8xf32>
    %c63_i32_392 = arith.constant 63 : i32
    %864 = tpu.dynamic_rotate %829 by %c63_i32_392 dim 0 : vector<64x8xf32>, i32 -> vector<64x8xf32>
    %865 = tpu.iota {dimensions = array<i32: 0>} : vector<64x8xi32>
    %c32_i32_393 = arith.constant 32 : i32
    %c0_i32_394 = arith.constant 0 : i32
    %866 = arith.cmpi eq, %c32_i32_393, %c0_i32_394 : i32
    %c1_i32_395 = arith.constant 1 : i32
    %867 = arith.select %866, %c1_i32_395, %c32_i32_393 : i32
    %868 = vector.broadcast %867 : i32 to vector<64x8xi32>
    %869 = arith.remsi %865, %868 : vector<64x8xi32>
    %c0_i32_396 = arith.constant 0 : i32
    %870 = vector.broadcast %c0_i32_396 : i32 to vector<64x8xi32>
    %871 = arith.cmpi ne, %869, %870 : vector<64x8xi32>
    %c0_i32_397 = arith.constant 0 : i32
    %872 = vector.broadcast %c0_i32_397 : i32 to vector<64x8xi32>
    %873 = arith.cmpi slt, %869, %872 : vector<64x8xi32>
    %c0_i32_398 = arith.constant 0 : i32
    %874 = arith.cmpi slt, %867, %c0_i32_398 : i32
    %875 = vector.broadcast %874 : i1 to vector<64x8xi1>
    %876 = vector.broadcast %875 : vector<64x8xi1> to vector<64x8xi1>
    %877 = arith.xori %873, %876 : vector<64x8xi1>
    %878 = arith.andi %877, %871 : vector<64x8xi1>
    %879 = vector.broadcast %867 : i32 to vector<64x8xi32>
    %880 = arith.addi %869, %879 : vector<64x8xi32>
    %881 = arith.select %878, %880, %869 : vector<64x8xi1>, vector<64x8xi32>
    %c31_i32_399 = arith.constant 31 : i32
    %882 = vector.broadcast %c31_i32_399 : i32 to vector<64x8xi32>
    %883 = arith.cmpi eq, %881, %882 : vector<64x8xi32>
    %cst_400 = arith.constant 0.000000e+00 : f32
    %884 = vector.broadcast %cst_400 : f32 to vector<64x8xf32>
    %885 = arith.select %883, %884, %864 : vector<64x8xi1>, vector<64x8xf32>
    %886 = vector.extract_strided_slice %40 {offsets = [2, 0, 0], sizes = [1, 8, 8], strides = [1, 1, 1]} : vector<3x8x8xf32> to vector<1x8x8xf32>
    %887 = vector.shape_cast %886 : vector<1x8x8xf32> to vector<8x8xf32>
    %cst_401 = arith.constant dense<0.000000e+00> : vector<64x8xf32>
    %888 = tpu.matmul %885, %887, %cst_401 {dimension_numbers = #tpu.dot_dimension_numbers<[1], [0], [0], [1], [0, 0, 1, 1], [], []>} : vector<64x8xf32>, vector<8x8xf32>, vector<64x8xf32> -> vector<64x8xf32>
    %889 = arith.addf %863, %888 : vector<64x8xf32>
    %890 = vector.broadcast %41 : vector<1x8xf32> to vector<64x8xf32>
    %891 = arith.mulf %889, %890 : vector<64x8xf32>
    %892 = vector.broadcast %42 : vector<1x8xf32> to vector<64x8xf32>
    %893 = arith.addf %891, %892 : vector<64x8xf32>
    %894 = arith.addf %893, %834 : vector<64x8xf32>
    %cst_402 = arith.constant 0.000000e+00 : f32
    %895 = vector.broadcast %cst_402 : f32 to vector<64x8xf32>
    %896 = arith.maximumf %894, %895 : vector<64x8xf32>
    %cst_403 = arith.constant dense<0.000000e+00> : vector<64x1xf32>
    %897 = tpu.matmul %896, %45, %cst_403 {dimension_numbers = #tpu.dot_dimension_numbers<[1], [0], [0], [1], [0, 0, 1, 1], [], []>} : vector<64x8xf32>, vector<8x1xf32>, vector<64x1xf32> -> vector<64x1xf32>
    %898 = vector.broadcast %46 : vector<1x1xf32> to vector<64x1xf32>
    %899 = arith.addf %897, %898 : vector<64x1xf32>
    %900 = arith.negf %899 : vector<64x1xf32>
    %901 = math.exp %900 : vector<64x1xf32>
    %cst_404 = arith.constant 1.000000e+00 : f32
    %902 = vector.broadcast %cst_404 : f32 to vector<64x1xf32>
    %903 = arith.addf %902, %901 : vector<64x1xf32>
    %904 = arith.divf %902, %903 : vector<64x1xf32>
    %c0_405 = arith.constant 0 : index
    %c0_406 = arith.constant 0 : index
    %905 = vector.load %arg47[%c0_405, %c0_406] : memref<64x1xf32, #tpu.memory_space<vmem>>, vector<64x1xf32>
    tpu.vector_store %arg47[%c0_405, %c0_406], %904 {strides = array<i32>} : memref<64x1xf32, #tpu.memory_space<vmem>>, vector<64x1xf32>,
    return
  }
}

</mosaic_0001>

<bundles_post_ra>
// kernel: unet1d_forward.1
= control target key start
LH: loop header
LB: loop body
LE: loop exit
PB: predicated region body
PF: predicated region fallthrough
CT: control target
= control target key end

     0   :  { %s9339_s6 = smov 1   ;;  %s9340_s10 = smov 2   ;;  %s10844_s0 = inlined_call_operand.smem [shape: u32[48], index: -1, kind: input, shape index: {}] }
   0x1   :  { %s9399_s5 = sld [smem:[%s10844_s0]]   ;;  %s9341_s14 = smov 3  }
   0x2   :  { %s9404_s9 = sld [smem:[%s10844_s0 + %s9339_s6]]   ;;  %s9342_s18 = smov 4  }
   0x3   :  { %s9409_s13 = sld [smem:[%s10844_s0 + %s9340_s10]]   ;;  %s9343_s22 = smov 5  }
   0x4   :  { %s9414_s17 = sld [smem:[%s10844_s0 + %s9341_s14]]   ;;  %s9344_s26 = smov 6  }
   0x5   :  { %s9419_s21 = sld [smem:[%s10844_s0 + %s9342_s18]]   ;;  %s9345_s30 = smov 7  }
   0x6   :  { %s9424_s25 = sld [smem:[%s10844_s0 + %s9343_s22]]   ;;  %s9346_s4 = smov 8  }
   0x7   :  { %s9429_s29 = sld [smem:[%s10844_s0 + %s9344_s26]]   ;;  %s9347_s10 = smov 9  }
   0x8   :  { %s9434_s3 = sld [smem:[%s10844_s0 + %s9345_s30]]   ;;  %s9348_s15 = smov 10  }
   0x9   :  { %s9439_s8 = sld [smem:[%s10844_s0 + %s9346_s4]]   ;;  %s9349_s20 = smov 11  }
   0xa   :  { %s9444_s14 = sld [smem:[%s10844_s0 + %s9347_s10]]   ;;  %s9350_s26 = smov 12  }
   0xb   :  { %s9449_s19 = sld [smem:[%s10844_s0 + %s9348_s15]]   ;;  %s9351_s1 = smov 13  }
   0xc   :  { %s9454_s24 = sld [smem:[%s10844_s0 + %s9349_s20]]   ;;  %s9352_s7 = smov 14  }
   0xd   :  { %s9459_s30 = sld [smem:[%s10844_s0 + %s9350_s26]]   ;;  %s9353_s15 = smov 15  }
   0xe   :  { %s9464_s6 = sld [smem:[%s10844_s0 + %s9351_s1]]   ;;  %s9354_s22 = smov 16  }
   0xf   :  { %s9469_s12 = sld [smem:[%s10844_s0 + %s9352_s7]]   ;;  %s9355_s28 = smov 17  }
  0x10   :  { %s9474_s20 = sld [smem:[%s10844_s0 + %s9353_s15]]   ;;  %s9356_s7 = smov 18  }
  0x11   :  { %10859 = sst [smem:[#allocation13_spill]] %s9449_s19  ;;  %s9357_s15 = smov 19  }
  0x12   :  { %10860 = sst [smem:[#allocation14_spill]] %s9454_s24  ;;  %s9385_s16 = smov 47  }
  0x13   :  { %10861 = sst [smem:[#allocation15_spill]] %s9459_s30 }
  0x14   :  { %10862 = sst [smem:[#allocation16_spill]] %s9464_s6 }
  0x15   :  { %10863 = sst [smem:[#allocation17_spill]] %s9469_s12 }
  0x16   :  { %s9479_s27 = sld [smem:[%s10844_s0 + %s9354_s22]]   ;;  %s9358_s22 = smov 20  }
  0x17   :  { %s9484_s4 = sld [smem:[%s10844_s0 + %s9355_s28]]   ;;  %s9359_s28 = smov 21  }
  0x18   :  { %s9489_s12 = sld [smem:[%s10844_s0 + %s9356_s7]]   ;;  %s9360_s7 = smov 22  }
  0x19   :  { %s9494_s6 = sld [smem:[%s10844_s0 + %s9357_s15]]   ;;  %s9361_s15 = smov 23  }
  0x1c   :  { %10864 = sst [smem:[#allocation18_spill]] %s9479_s27 }
  0x1d   :  { %10865 = sst [smem:[#allocation19_spill]] %s9484_s4 }
  0x1e   :  { %10866 = sst [smem:[#allocation20_spill]] %s9489_s12 }
  0x1f   :  { %10867 = sst [smem:[#allocation21_spill]] %s9494_s6 }
  0x20   :  { %s9499_s27 = sld [smem:[%s10844_s0 + %s9358_s22]]   ;;  %s9362_s22 = smov 24  }
  0x21   :  { %s9504_s4 = sld [smem:[%s10844_s0 + %s9359_s28]]   ;;  %s9363_s28 = smov 25  }
  0x22   :  { %s9509_s12 = sld [smem:[%s10844_s0 + %s9360_s7]]   ;;  %s9364_s7 = smov 26  }
  0x23   :  { %s9514_s6 = sld [smem:[%s10844_s0 + %s9361_s15]]   ;;  %s9365_s15 = smov 27  }
  0x26   :  { %10868 = sst [smem:[#allocation22_spill]] %s9499_s27 }
  0x27   :  { %10869 = sst [smem:[#allocation23_spill]] %s9504_s4 }
  0x28   :  { %10870 = sst [smem:[#allocation24_spill]] %s9509_s12 }
  0x29   :  { %10871 = sst [smem:[#allocation25_spill]] %s9514_s6 }
  0x2a   :  { %s9519_s27 = sld [smem:[%s10844_s0 + %s9362_s22]]   ;;  %s9366_s22 = smov 28  }
  0x2b   :  { %s9524_s4 = sld [smem:[%s10844_s0 + %s9363_s28]]   ;;  %s9367_s28 = smov 29  }
  0x2c   :  { %s9529_s12 = sld [smem:[%s10844_s0 + %s9364_s7]]   ;;  %s9368_s7 = smov 30  }
  0x2d   :  { %s9534_s6 = sld [smem:[%s10844_s0 + %s9365_s15]]   ;;  %s9369_s15 = smov 31  }
  0x30   :  { %10872 = sst [smem:[#allocation26_spill]] %s9519_s27 }
  0x31   :  { %10873 = sst [smem:[#allocation27_spill]] %s9524_s4 }
  0x32   :  { %10874 = sst [smem:[#allocation28_spill]] %s9529_s12 }
  0x33   :  { %10875 = sst [smem:[#allocation29_spill]] %s9534_s6 }
  0x34   :  { %s9539_s27 = sld [smem:[%s10844_s0 + %s9366_s22]]   ;;  %s9370_s22 = smov 32  }
  0x35   :  { %s9544_s4 = sld [smem:[%s10844_s0 + %s9367_s28]]   ;;  %s9371_s28 = smov 33  }
  0x36   :  { %s9549_s12 = sld [smem:[%s10844_s0 + %s9368_s7]]   ;;  %s9372_s7 = smov 34  }
  0x37   :  { %s9554_s6 = sld [smem:[%s10844_s0 + %s9369_s15]]   ;;  %s9373_s15 = smov 35  }
  0x3a   :  { %10876 = sst [smem:[#allocation30_spill]] %s9539_s27 }
  0x3b   :  { %10877 = sst [smem:[#allocation31_spill]] %s9544_s4 }
  0x3c   :  { %10878 = sst [smem:[#allocation32_spill]] %s9549_s12 }
  0x3d   :  { %10879 = sst [smem:[#allocation33_spill]] %s9554_s6 }
  0x3e   :  { %s9559_s27 = sld [smem:[%s10844_s0 + %s9370_s22]]   ;;  %s9374_s22 = smov 36  }
  0x3f   :  { %s9564_s4 = sld [smem:[%s10844_s0 + %s9371_s28]]   ;;  %s9375_s28 = smov 37  }
  0x40   :  { %s9569_s12 = sld [smem:[%s10844_s0 + %s9372_s7]]   ;;  %s9376_s7 = smov 38  }
  0x41   :  { %s9574_s6 = sld [smem:[%s10844_s0 + %s9373_s15]]   ;;  %s9377_s15 = smov 39  }
  0x44   :  { %10880 = sst [smem:[#allocation34_spill]] %s9559_s27 }
  0x45   :  { %10881 = sst [smem:[#allocation35_spill]] %s9564_s4 }
  0x46   :  { %10882 = sst [smem:[#allocation36_spill]] %s9569_s12 }
  0x47   :  { %10883 = sst [smem:[#allocation37_spill]] %s9574_s6 }
  0x48   :  { %s9579_s27 = sld [smem:[%s10844_s0 + %s9374_s22]]   ;;  %s9378_s22 = smov 40  }
  0x49   :  { %s9584_s4 = sld [smem:[%s10844_s0 + %s9375_s28]]   ;;  %s9379_s28 = smov 41  }
  0x4a   :  { %s9589_s12 = sld [smem:[%s10844_s0 + %s9376_s7]]   ;;  %s9380_s7 = smov 42  }
  0x4b   :  { %s9594_s6 = sld [smem:[%s10844_s0 + %s9377_s15]]   ;;  %s9381_s15 = smov 43  }
  0x4c   :  { %s9614_s24 = sld [smem:[%s10844_s0 + %s9381_s15]]  }
  0x4e   :  { %10884 = sst [smem:[#allocation38_spill]] %s9579_s27 }
  0x4f   :  { %10885 = sst [smem:[#allocation39_spill]] %s9584_s4 }
  0x50   :  { %10886 = sst [smem:[#allocation40_spill]] %s9589_s12 }
  0x51   :  { %s9599_s27 = sld [smem:[%s10844_s0 + %s9378_s22]]   ;;  %s9382_s22 = smov 44  }
  0x52   :  { %s9604_s4 = sld [smem:[%s10844_s0 + %s9379_s28]]   ;;  %s9383_s28 = smov 45  }
  0x53   :  { %s9609_s12 = sld [smem:[%s10844_s0 + %s9380_s7]]   ;;  %s9384_s7 = smov 46  }
  0x54   :  { %10888 = sst [smem:[#allocation42_spill]] %s9614_s24 }
  0x55   :  { %s9624_s19 = sld [smem:[%s10844_s0 + %s9383_s28]]  }
  0x56   :  { %s7393_s30 = sld [smem:[%s10844_s0 + %s9384_s7]]  }
  0x57   :  { %10887 = sst [smem:[#allocation41_spill]] %s9599_s27 }
  0x58   :  { %s9619_s27 = sld [smem:[%s10844_s0 + %s9382_s22]]  }
  0x59   :  { %s9632_s24 = sld [smem:[%s10844_s0 + %s9385_s16]]  }
  0x5c   :  { %v100_v0 = vstv %s7393_s30 }
  0x5d   :  { %101 = vst [vmem:[#allocation2] sm:$0x1] %v100_v0 }
  0x5e   :  { %102 = vsyncpa [#allocation4], 0 }
  0x5f   :  { %103 = vsyncpa [#allocation6], 0 }
  0x60   :  { %104 = vsyncpa [#allocation9], 0  ;;  %s9386_s22 = smov [#allocation5]   ;;  %s9387_s26 = smov [#allocation3]  }
  0x61   :  { %s201_s23 = sshll.u32 %s9386_s22, 4  ;;  %s189_s28 = sshll.u32 %s9387_s26, 4  ;;  %s202_s23 = int_to_ptr.vmem [resolvable:$true] %s201_s23  ;;  %s190_s28 = int_to_ptr.vmem [resolvable:$true] %s189_s28 }
  0x62   :  { %s9245_s1 = scalar_lea.hbm %s9604_s4, 16 }
  0x63   :  { %p9246_p0 = scmp.ne.s32.totalorder %s9604_s4, %s9245_s1  ;;  %p9249_p1 = scmp.lt.u32.totalorder %s9245_s1, %s9604_s4 }
  0x65   :  { %p9251_p2 = pnand %p9249_p1, %p9246_p0 }
  0x67   :  { %9254 = shalt.err (!%p9251_p2)
}
  0x68   :  { %s9255_s0 = scalar_lea.vmem %s202_s23, 16  ;;  %s9259_s30 = scalar_lea.vmem %s202_s23, 32 }
  0x69   :  { %p9256_p3 = scmp.ne.s32.totalorder %s202_s23, %s9255_s0  ;;  %p9260_p4 = scmp.lt.s32.totalorder %s202_s23, %s202_s23 }
  0x6a   :  { %p9261_p5 = scmp.lt.s32.totalorder %s9259_s30, %s9255_s0 }
  0x6c   :  { %p9262_p6 = por %p9261_p5, %p9260_p4 }
  0x6e   :  { %p9263_p7 = pnand %p9262_p6, %p9256_p3 }
  0x70   :  { %9266 = shalt.err (!%p9263_p7)
}
  0x71   :  { %204 = dma.hbm_to_vmem [thread:$0]  %s9604_s4, 16, %s202_s23, [#allocation6]  }
  0x72   :  { %s9267_s2 = scalar_lea.hbm %s9594_s6, 16 }
  0x73   :  { %p9268_p8 = scmp.ne.s32.totalorder %s9594_s6, %s9267_s2  ;;  %p9271_p9 = scmp.lt.u32.totalorder %s9267_s2, %s9594_s6 }
  0x75   :  { %p9273_p10 = pnand %p9271_p9, %p9268_p8 }
  0x77   :  { %9276 = shalt.err (!%p9273_p10)
}
  0x78   :  { %s9277_s7 = scalar_lea.vmem %s190_s28, 16  ;;  %s9281_s10 = scalar_lea.vmem %s190_s28, 32 }
  0x79   :  { %p9278_p11 = scmp.ne.s32.totalorder %s190_s28, %s9277_s7  ;;  %p9282_p12 = scmp.lt.s32.totalorder %s190_s28, %s190_s28 }
  0x7a   :  { %p9283_p13 = scmp.lt.s32.totalorder %s9281_s10, %s9277_s7 }
  0x7c   :  { %p9284_p0 = por %p9283_p13, %p9282_p12 }
  0x7e   :  { %p9285_p1 = pnand %p9284_p0, %p9278_p11 }
  0x80   :  { %9288 = shalt.err (!%p9285_p1)
}
  0x81   :  { %192 = dma.hbm_to_vmem [thread:$0]  %s9594_s6, 16, %s190_s28, [#allocation4]  }
  0x82   :  { %s9388_s11 = smov [#allocation7]   ;;  %s9389_s16 = smov [#allocation8]  }
  0x83   :  { %s211_s4 = sshll.u32 %s9388_s11, 4  ;;  %s223_s15 = sshll.u32 %s9389_s16, 4  ;;  %s212_s4 = int_to_ptr.vmem [resolvable:$true] %s211_s4  ;;  %s224_s15 = int_to_ptr.vmem [resolvable:$true] %s223_s15 }
  0x84   :  { %s9289_s18 = scalar_lea.hbm %s9609_s12, 16 }
  0x85   :  { %p9290_p2 = scmp.ne.s32.totalorder %s9609_s12, %s9289_s18  ;;  %p9293_p3 = scmp.lt.u32.totalorder %s9289_s18, %s9609_s12 }
  0x87   :  { %p9295_p4 = pnand %p9293_p3, %p9290_p2 }
  0x89   :  { %9298 = shalt.err (!%p9295_p4)
}
  0x8a   :  { %s9299_s22 = scalar_lea.vmem %s212_s4, 16  ;;  %s9303_s23 = scalar_lea.vmem %s212_s4, 32 }
  0x8b   :  { %p9300_p5 = scmp.ne.s32.totalorder %s212_s4, %s9299_s22  ;;  %p9304_p6 = scmp.lt.s32.totalorder %s212_s4, %s212_s4 }
  0x8c   :  { %p9305_p7 = scmp.lt.s32.totalorder %s9303_s23, %s9299_s22 }
  0x8e   :  { %p9306_p8 = por %p9305_p7, %p9304_p6 }
  0x90   :  { %p9307_p9 = pnand %p9306_p8, %p9300_p5 }
  0x92   :  { %9310 = shalt.err (!%p9307_p9)
}
  0x93   :  { %214 = dma.hbm_to_vmem [thread:$0]  %s9609_s12, 16, %s212_s4, [#allocation6]  }
  0x94   :  { %s9311_s6 = scalar_lea.hbm %s9619_s27, 16 }
  0x95   :  { %p9312_p10 = scmp.ne.s32.totalorder %s9619_s27, %s9311_s6  ;;  %p9315_p11 = scmp.lt.u32.totalorder %s9311_s6, %s9619_s27 }
  0x97   :  { %p9317_p12 = pnand %p9315_p11, %p9312_p10 }
  0x99   :  { %9320 = shalt.err (!%p9317_p12)
}
  0x9a   :  { %s9321_s26 = scalar_lea.vmem %s224_s15, 16  ;;  %s9325_s28 = scalar_lea.vmem %s224_s15, 32 }
  0x9b   :  { %p9322_p13 = scmp.ne.s32.totalorder %s224_s15, %s9321_s26  ;;  %p9326_p0 = scmp.lt.s32.totalorder %s224_s15, %s224_s15 }
  0x9c   :  { %p9327_p1 = scmp.lt.s32.totalorder %s9325_s28, %s9321_s26 }
  0x9e   :  { %p9328_p2 = por %p9327_p1, %p9326_p0 }
  0xa0   :  { %p9329_p3 = pnand %p9328_p2, %p9322_p13 }
  0xa2   :  { %9332 = shalt.err (!%p9329_p3)
}
  0xa3   :  { %226 = dma.hbm_to_vmem [thread:$0]  %s9619_s27, 16, %s224_s15, [#allocation9]  }
  0xa4   :  { %9333 = dma.done.wait [#allocation4], 16  }
  0xa5   :  { %9334 = vsyncadd [#allocation4], 4294967280 }
  0xa6   :  { %9335 = dma.done.wait [#allocation6], 32  }
  0xa7   :  { %9336 = vsyncadd [#allocation6], 4294967264 }
  0xa8   :  { %9337 = dma.done.wait [#allocation9], 16  }
  0xa9   :  { %9338 = vsyncadd [#allocation9], 4294967280  ;;  %vm525_vm0 = vcmask 1040384   ;;  %vm10857_vm1 = vcmask 7168   ;;  %v370_v1 = vlaneseq  ;;  %v252_v2 = vld [vmem:[%s9404_s9 + $0x1] sm:$0x1] }
  0xaa   :  { %v9652_v3 = vld [vmem:[%s9399_s5] sm:$0xff]  ;;  %v9655_v4 = vld [vmem:[%s9399_s5 + $0x8] sm:$0xff]  ;;  %8126 = vmatprep.subr.msk.mxu0 %vm525_vm0, %v252_v2  ;;  %v9663_v6 = vld [vmem:[%s9399_s5 + $0x10] sm:$0xff]  ;;  %vm10858_vm8 = vcmask 64512   ;;  %vm1611_vm9 = vcmask 523264   ;;  %s10923_s12 = sld [smem:[#allocation21_spill]] }
  0xab   :  { %8128 = vmatprep.mubr.msk.f32.mxu0 %vm10857_vm1, %v9652_v3  ;;  %v251_v5 = vld [vmem:[%s9404_s9] sm:$0x1]  ;;  %8127 = vmatpush3.msk.msra.mxu0 %vm525_vm0, %v252_v2  ;;  %v9666_v7 = vshrl.u32 %v370_v1, 7  ;;  %v9677_v8 = vld [vmem:[%s9399_s5 + $0x18] sm:$0xff]  ;;  %v253_v11 = vld [vmem:[%s9404_s9 + $0x2] sm:$0x1] }
  0xac   :  { %8170 = vmatprep.mubr.msk.f32.mxu1 %vm10857_vm1, %v9652_v3  ;;  %8129 = vmatmul.mubr.msk.f32.vlgmr.msra.gmra.mrb[0].mxu0 %vm10857_vm1, %v9655_v4  ;;  %v9680_v9 = vld [vmem:[%s9399_s5 + $0x38] sm:$0xff]  ;;  %v9683_v10 = vld [vmem:[%s9399_s5 + $0x20] sm:$0xff]  ;;  %v362_v12 = vrot.slane %v9652_v3, 7  ;;  %v257_v16 = vld [vmem:[%s9419_s21 + $0x8] sm:$0xff]  ;;  %v363_v22 = vrot.slane %v9655_v4, 7  ;;  %v364_v23 = vrot.slane %v9663_v6, 7 }
  0xad   :  { %8140 = vmatprep.subr.msk.mxu0 %vm525_vm0, %v251_v5  ;;  %8131 = vmatprep.mubr.msk.f32.mxu0 %vm10857_vm1, %v9663_v6  ;;  %v369_v13 = vrot.slane %v9680_v9, 7  ;;  %v392_v14 = vand.u32 31, %v9666_v7  ;;  %v261_v15 = vld [vmem:[%s9434_s3] sm:$0x1]  ;;  %vm372_vm2 = vcmp.lt.s32.totalorder %v9666_v7, 1  ;;  %v9699_v17 = vld [vmem:[%s9399_s5 + $0x28] sm:$0xff] }
  0xae   :  { %8141 = vmatpush3.msk.msra.mxu0 %vm525_vm0, %v251_v5  ;;  %8168 = vmatprep.subr.msk.mxu1 %vm525_vm0, %v261_v15  ;;  %v9703_v18 = vld [vmem:[%s9399_s5 + $0x30] sm:$0xff]  ;;  %v9714_v21 = vadd.s32 32, %v9666_v7  ;;  %v366_v25 = vrot.slane %v9683_v10, 7  ;;  %v365_v27 = vrot.slane %v9677_v8, 7  ;;  %v379_v28 = vsel %vm372_vm2, %v362_v12, %v363_v22  ;;  %v256_v63 = vld [vmem:[%s9419_s21] sm:$0xff]  ;;  %s10901_s5 = sld [smem:[#allocation15_spill]] }
  0xaf   :  { %8154 = vmatprep.subr.msk.mxu0 %vm525_vm0, %v253_v11  ;;  %8169 = vmatpush3.msk.msra.mxu1 %vm525_vm0, %v261_v15  ;;  %v380_v19 = vsel %vm372_vm2, %v369_v13, %v362_v12  ;;  %vm9709_vm3 = vcmp.eq.s32.totalorder %v392_v14, 0  ;;  %v378_v29 = vsel %vm372_vm2, %v363_v22, %v364_v23  ;;  %v367_v32 = vrot.slane %v9699_v17, 7  ;;  %s10906_s9 = sld [smem:[#allocation13_spill]]  ;;  %s10912_s3 = sld [smem:[#allocation25_spill]] }
  0xb0   :  { %8132 = vmatmul.mubr.msk.f32.gmra.mrb[2].mxu0 %vm10857_vm1, %v9677_v8  ;;  %8171 = vmatmul.mubr.msk.f32.vlgmr.msra.gmra.mrb[0].mxu1 %vm10857_vm1, %v9655_v4  ;;  %v492_v24 = vsel %vm9709_vm3, 0.0, %v380_v19  ;;  %v420_v26 = vand.u32 31, %v9714_v21  ;;  %v376_v30 = vsel %vm372_vm2, %v365_v27, %v366_v25  ;;  %v377_v33 = vsel %vm372_vm2, %v364_v23, %v365_v27  ;;  %s10925_s27 = sld [smem:[#allocation23_spill]]  ;;  %s10926_s1 = sld [smem:[#allocation26_spill]] }
  0xb1   :  { %8134 = vmatprep.mubr.msk.f32.mxu0 %vm10857_vm1, %v9683_v10  ;;  %8182 = vmatprep.subr.mxu1 %v257_v16  ;;  %v368_v34 = vrot.slane %v9703_v18, 7  ;;  %v375_v36 = vsel %vm372_vm2, %v366_v25, %v367_v32  ;;  %v766_v37 = vrot.slane %v9652_v3, 1  ;;  %v767_v38 = vrot.slane %v9655_v4, 1  ;;  %s10927_s0 = sld [smem:[#allocation24_spill]]  ;;  %s10928_s30 = sld [smem:[#allocation29_spill]] }
  0xb2   :  { %8173 = vmatprep.mubr.msk.f32.mxu1 %vm10857_vm1, %v9663_v6  ;;  %8183 = vmatpush3.msra.mxu1 %v257_v16  ;;  %vm9744_vm4 = vcmp.eq.s32.totalorder %v420_v26, 0  ;;  %v9770_v40 = vadd.s32 24, %v9666_v7  ;;  %vm774_vm5 = vcmp.lt.s32.totalorder %v9666_v7, 7  ;;  %v768_v41 = vrot.slane %v9663_v6, 1  ;;  %s10929_s2 = sld [smem:[#allocation28_spill]]  ;;  %s10930_s7 = sld [smem:[#allocation35_spill]] }
  0xb3   :  { %v496_v35 = vsel %vm9744_vm4, 0.0, %v376_v30  ;;  %v374_v39 = vsel %vm372_vm2, %v367_v32, %v368_v34  ;;  %v373_v42 = vsel %vm372_vm2, %v368_v34, %v369_v13  ;;  %v769_v43 = vrot.slane %v9677_v8, 1  ;;  %8196 = vmatprep.subr.mxu1 %v256_v63  ;;  %v258_v34 = vld [vmem:[%s9419_s21 + $0x10] sm:$0xff]  ;;  %s10909_s21 = sld [smem:[#allocation18_spill]]  ;;  %s10931_s10 = sld [smem:[#allocation32_spill]] }
  0xb4   :  { %8135 = vmatmul.mubr.msk.f32.gmra.mrb[4].mxu0 %vm10857_vm1, %v9699_v17  ;;  %8174 = vmatmul.mubr.msk.f32.gmra.mrb[2].mxu1 %vm10857_vm1, %v9677_v8  ;;  %v770_v44 = vrot.slane %v9683_v10, 1  ;;  %v781_v45 = vsel %vm774_vm5, %v766_v37, %v767_v38  ;;  %v413_v46 = vand.u32 31, %v9770_v40  ;;  %v780_v47 = vsel %vm774_vm5, %v767_v38, %v768_v41  ;;  %s10932_s11 = sld [smem:[#allocation30_spill]]  ;;  %s10933_s4 = sld [smem:[#allocation31_spill]] }
  0xb5   :  { %8137 = vmatprep.mubr.msk.f32.mxu0 %vm10857_vm1, %v9703_v18  ;;  %8176 = vmatprep.mubr.msk.f32.mxu1 %vm10857_vm1, %v9683_v10  ;;  %v9788_v48 = vadd.s32 56, %v9666_v7  ;;  %v771_v49 = vrot.slane %v9699_v17, 1  ;;  %v779_v50 = vsel %vm774_vm5, %v768_v41, %v769_v43  ;;  %v772_v53 = vrot.slane %v9703_v18, 1  ;;  %v7422_v10 = vld [vmem:[%s9409_s13] ss:$0 sm:$0xff]  ;;  %s10907_s13 = sld [smem:[#allocation14_spill]] }
  0xb6   :  { %v778_v51 = vsel %vm774_vm5, %v769_v43, %v770_v44  ;;  %vm9795_vm6 = vcmp.eq.s32.totalorder %v413_v46, 31  ;;  %v773_v55 = vrot.slane %v9680_v9, 1  ;;  %s10934_s16 = sld [smem:[#allocation37_spill]]  ;;  %s10935_s15 = sld [smem:[#allocation33_spill]] }
  0xb7   :  { %v794_v54 = vsel %vm9795_vm6, 0.0, %v778_v51  ;;  %v777_v56 = vsel %vm774_vm5, %v770_v44, %v771_v49  ;;  %v441_v57 = vand.u32 31, %v9788_v48  ;;  %v776_v58 = vsel %vm774_vm5, %v771_v49, %v772_v53  ;;  %s10936_s18 = sld [smem:[#allocation36_spill]]  ;;  %s10937_s22 = sld [smem:[#allocation34_spill]] }
  0xb8   :  { %8138 = vmatmul.mubr.msk.f32.gmra.mrb[6].mxu0 %vm10857_vm1, %v9680_v9  ;;  %8177 = vmatmul.mubr.msk.f32.gmra.mrb[4].mxu1 %vm10857_vm1, %v9699_v17  ;;  %v775_v59 = vsel %vm774_vm5, %v772_v53, %v773_v55  ;;  %v782_v60 = vsel %vm774_vm5, %v773_v55, %v766_v37  ;;  %s10938_s23 = sld [smem:[#allocation39_spill]]  ;;  %s10939_s6 = sld [smem:[#allocation38_spill]] }
  0xb9   :  { %8142 = vmatprep.mubr.msk.f32.mxu0 %vm10857_vm1, %v492_v24  ;;  %8179 = vmatprep.mubr.msk.f32.mxu1 %vm10857_vm1, %v9703_v18  ;;  %vm9816_vm7 = vcmp.eq.s32.totalorder %v441_v57, 31  ;;  %s10940_s26 = sld [smem:[#allocation42_spill]]  ;;  %s10995_s28 = sld [smem:[#allocation41_spill]] }
  0xba   :  { %v798_v62 = vsel %vm9816_vm7, 0.0, %v782_v60 }
  0xbc   :  { %8143 = vmatmul.mubr.msk.f32.vlgmr.msra.gmra.mrb[0].mxu0 %vm10857_vm1, %v379_v28  ;;  %8180 = vmatmul.mubr.msk.f32.gmra.mrb[6].mxu1 %vm10857_vm1, %v9680_v9 }
  0xbd   :  { %8155 = vmatpush3.msk.msra.mxu0 %vm525_vm0, %v253_v11  ;;  %8145 = vmatprep.mubr.msk.f32.mxu0 %vm10857_vm1, %v378_v29  ;;  %v7423_v11 = vld [vmem:[%s9414_s17] ss:$0 sm:$0xff]  ;;  %s10908_s17 = sld [smem:[#allocation16_spill]] }
  0xc0   :  { %8146 = vmatmul.mubr.msk.f32.gmra.mrb[2].mxu0 %vm10857_vm1, %v377_v33 }
  0xc1   :  { %8148 = vmatprep.mubr.msk.f32.mxu0 %vm10857_vm1, %v496_v35 }
  0xc4   :  { %8149 = vmatmul.mubr.msk.f32.gmra.mrb[4].mxu0 %vm10857_vm1, %v375_v36 }
  0xc5   :  { %8151 = vmatprep.mubr.msk.f32.mxu0 %vm10857_vm1, %v374_v39 }
  0xc8   :  { %8152 = vmatmul.mubr.msk.f32.gmra.mrb[6].mxu0 %vm10857_vm1, %v373_v42 }
  0xc9   :  { %8156 = vmatprep.mubr.msk.f32.mxu0 %vm10857_vm1, %v781_v45 }
  0xcc   :  { %8157 = vmatmul.mubr.msk.f32.vlgmr.msra.gmra.mrb[0].mxu0 %vm10857_vm1, %v780_v47 }
  0xcd   :  { %8159 = vmatprep.mubr.msk.f32.mxu0 %vm10857_vm1, %v779_v50 }
  0xd0   :  { %8160 = vmatmul.mubr.msk.f32.gmra.mrb[2].mxu0 %vm10857_vm1, %v794_v54 }
  0xd1   :  { %8162 = vmatprep.mubr.msk.f32.mxu0 %vm10857_vm1, %v777_v56 }
  0xd4   :  { %8163 = vmatmul.mubr.msk.f32.gmra.mrb[4].mxu0 %vm10857_vm1, %v776_v58 }
  0xd5   :  { %8165 = vmatprep.mubr.msk.f32.mxu0 %vm10857_vm1, %v775_v59 }
  0xd8   :  { %8166 = vmatmul.mubr.msk.f32.gmra.mrb[6].mxu0 %vm10857_vm1, %v798_v62 }
 0x183   :  { %v9826_v0 = vpop.f32.mrb[0].mxu1 }
 0x184   :  { %v9828_v2 = vpop.f32.mrb[1].mxu1 }
 0x187   :  { %v9830_v3 = vpop.f32.mrb[2].mxu1 }
 0x188   :  { %v9832_v4 = vpop.f32.mrb[3].mxu1 }
 0x18b   :  { %v9834_v5 = vpop.f32.mrb[4].mxu1 }
 0x18c   :  { %v9836_v6 = vpop.f32.mrb[5].mxu1 }
 0x18f   :  { %v9838_v8 = vpop.f32.mrb[6].mxu1 }
 0x190   :  { %v9840_v9 = vpop.f32.mrb[7].mxu1 }
 0x19f   :  { %v8158_v12 = vpop.f32.mrb[0].mxu0 }
 0x1a0   :  { %v946_v13 = vmul.f32 %v8158_v12, %v7422_v10  ;;  %v892_v14 = vpop.f32.mrb[1].mxu0 }
 0x1a1   :  { %v945_v15 = vmul.f32 %v7422_v10, %v892_v14 }
 0x1a2   :  { %v960_v16 = vadd.f32 %v7423_v11, %v946_v13 }
 0x1a3   :  { %v959_v17 = vadd.f32 %v7423_v11, %v945_v15  ;;  %v8161_v18 = vpop.f32.mrb[2].mxu0 }
 0x1a4   :  { %v968_v19 = vmax.f32 %v960_v16, 0.0  ;;  %v948_v22 = vmul.f32 %v8161_v18, %v7422_v10  ;;  %v902_v23 = vpop.f32.mrb[3].mxu0 }
 0x1a5   :  { %v967_v24 = vmax.f32 %v959_v17, 0.0  ;;  %v947_v25 = vmul.f32 %v7422_v10, %v902_v23 }
 0x1a6   :  { %v1098_v26 = vrot.slane %v968_v19, 7  ;;  %v1381_v27 = vrot.slane %v968_v19, 1  ;;  %v962_v28 = vadd.f32 %v7423_v11, %v948_v22 }
 0x1a7   :  { %v1097_v29 = vrot.slane %v967_v24, 7  ;;  %v1380_v30 = vrot.slane %v967_v24, 1  ;;  %v961_v32 = vadd.f32 %v7423_v11, %v947_v25  ;;  %v8164_v33 = vpop.f32.mrb[4].mxu0  ;;  %8184 = vmatprep.mubr.msk.f32.mxu1 %vm10858_vm8, %v967_v24 }
 0x1a8   :  { %v970_v35 = vmax.f32 %v962_v28, 0.0  ;;  %v950_v36 = vmul.f32 %v8164_v33, %v7422_v10  ;;  %v912_v37 = vpop.f32.mrb[5].mxu0  ;;  %8185 = vmatmul.mubr.msk.f32.vlgmr.msra.gmra.mrb[8].mxu1 %vm10858_vm8, %v968_v19 }
 0x1a9   :  { %v969_v38 = vmax.f32 %v961_v32, 0.0  ;;  %v949_v39 = vmul.f32 %v7422_v10, %v912_v37  ;;  %8197 = vmatpush3.msra.mxu1 %v256_v63  ;;  %v1111_v41 = vsel %vm372_vm2, %v1097_v29, %v1098_v26  ;;  %v1394_v42 = vsel %vm774_vm5, %v1380_v30, %v1381_v27 }
 0x1aa   :  { %v1100_v43 = vrot.slane %v970_v35, 7  ;;  %v964_v44 = vadd.f32 %v7423_v11, %v950_v36  ;;  %8210 = vmatprep.subr.mxu1 %v258_v34  ;;  %v1383_v45 = vrot.slane %v970_v35, 1  ;;  %v9910_v37 = vand.u32 127, %v370_v1 }
 0x1ab   :  { %v1099_v46 = vrot.slane %v969_v38, 7  ;;  %v1382_v47 = vrot.slane %v969_v38, 1  ;;  %v963_v49 = vadd.f32 %v7423_v11, %v949_v39  ;;  %v8167_v50 = vpop.f32.mrb[6].mxu0  ;;  %8187 = vmatprep.mubr.msk.f32.mxu1 %vm10858_vm8, %v969_v38  ;;  %v1587_v38 = vmul.u32 2, %v9666_v7 }
 0x1ac   :  { %v972_v51 = vmax.f32 %v964_v44, 0.0  ;;  %v952_v53 = vmul.f32 %v8167_v50, %v7422_v10  ;;  %v922_v54 = vpop.f32.mrb[7].mxu0  ;;  %8188 = vmatmul.mubr.msk.f32.gmra.mrb[10].mxu1 %vm10858_vm8, %v970_v35  ;;  %v9390_v39 = vmov 0.0   ;;  %v7459_v44 = vld [vmem:[%s9429_s29] ss:$0 sm:$0xff]  ;;  %s10911_s29 = sld [smem:[#allocation19_spill]] }
 0x1ad   :  { %v971_v55 = vmax.f32 %v963_v49, 0.0  ;;  %v951_v56 = vmul.f32 %v7422_v10, %v922_v54  ;;  %v1110_v57 = vsel %vm372_vm2, %v1098_v26, %v1099_v46  ;;  %v1109_v58 = vsel %vm372_vm2, %v1099_v46, %v1100_v43 }
 0x1ae   :  { %v1102_v59 = vrot.slane %v972_v51, 7  ;;  %v1385_v60 = vrot.slane %v972_v51, 1  ;;  %v966_v62 = vadd.f32 %v7423_v11, %v952_v53  ;;  %v1393_v63 = vsel %vm774_vm5, %v1381_v27, %v1382_v47 }
 0x1af   :  { %v1101_v12 = vrot.slane %v971_v55, 7  ;;  %v1384_v13 = vrot.slane %v971_v55, 1  ;;  %v965_v14 = vadd.f32 %v7423_v11, %v951_v56  ;;  %8190 = vmatprep.mubr.msk.f32.mxu1 %vm10858_vm8, %v971_v55  ;;  %v1392_v10 = vsel %vm774_vm5, %v1382_v47, %v1383_v45 }
 0x1b0   :  { %v974_v15 = vmax.f32 %v966_v62, 0.0  ;;  %8191 = vmatmul.mubr.msk.f32.gmra.mrb[12].mxu1 %vm10858_vm8, %v972_v51  ;;  %vm1591_vm10 = vcmp.eq.s32.totalorder %v9910_v37, %v1587_v38 }
 0x1b1   :  { %v973_v16 = vmax.f32 %v965_v14, 0.0  ;;  %v1108_v17 = vsel %vm372_vm2, %v1100_v43, %v1101_v12  ;;  %v1107_v18 = vsel %vm372_vm2, %v1101_v12, %v1102_v59  ;;  %v1391_v19 = vsel %vm774_vm5, %v1383_v45, %v1384_v13  ;;  %v7433_v43 = vld [vmem:[%s9439_s8] ss:$0 sm:$0xff]  ;;  %s10915_s8 = sld [smem:[#allocation22_spill]] }
 0x1b2   :  { %v1104_v22 = vrot.slane %v974_v15, 7  ;;  %v1387_v11 = vrot.slane %v974_v15, 1  ;;  %v1390_v25 = vsel %vm774_vm5, %v1384_v13, %v1385_v60  ;;  %v1090_v49 = vadd.f32 %v9826_v0, %v7433_v43 }
 0x1b3   :  { %v1103_v23 = vrot.slane %v973_v16, 7  ;;  %v1386_v24 = vrot.slane %v973_v16, 1  ;;  %8193 = vmatprep.mubr.msk.f32.mxu1 %vm10858_vm8, %v973_v16  ;;  %v1089_v51 = vadd.f32 %v7433_v43, %v9828_v2  ;;  %v1091_v12 = vadd.f32 %v7433_v43, %v9832_v4 }
 0x1b4   :  { %8194 = vmatmul.mubr.msk.f32.gmra.mrb[14].mxu1 %vm10858_vm8, %v974_v15  ;;  %v1112_v26 = vsel %vm372_vm2, %v1104_v22, %v1097_v29  ;;  %v1395_v27 = vsel %vm774_vm5, %v1387_v11, %v1380_v30  ;;  %v1117_v30 = vsel %vm9744_vm4, 0.0, %v1108_v17 }
 0x1b5   :  { %v1113_v28 = vsel %vm9709_vm3, 0.0, %v1112_v26  ;;  %v1106_v32 = vsel %vm372_vm2, %v1102_v59, %v1103_v23  ;;  %v1105_v33 = vsel %vm372_vm2, %v1103_v23, %v1104_v22  ;;  %v1389_v35 = vsel %vm774_vm5, %v1385_v60, %v1386_v24 }
 0x1b6   :  { %8198 = vmatprep.mubr.msk.f32.mxu1 %vm10858_vm8, %v1113_v28  ;;  %v1388_v29 = vsel %vm774_vm5, %v1386_v24, %v1387_v11  ;;  %v1403_v36 = vsel %vm9816_vm7, 0.0, %v1395_v27  ;;  %v1092_v60 = vadd.f32 %v9830_v3, %v7433_v43  ;;  %v1093_v11 = vadd.f32 %v7433_v43, %v9836_v6 }
 0x1b8   :  { %8199 = vmatmul.mubr.msk.f32.vlgmr.msra.gmra.mrb[8].mxu1 %vm10858_vm8, %v1111_v41  ;;  %v9917_v41 = vsel %vm1591_vm10, 1.0, %v9390_v39 }
 0x1b9   :  { %8201 = vmatprep.mubr.msk.f32.mxu1 %vm10858_vm8, %v1110_v57  ;;  %8211 = vmatpush3.msra.mxu1 %v258_v34  ;;  %v1399_v34 = vsel %vm9795_vm6, 0.0, %v1391_v19  ;;  %v1094_v19 = vadd.f32 %v9834_v5, %v7433_v43  ;;  %v9943_v5 = vadd.s32 8, %v9666_v7 }
 0x1ba   :  { %8240 = vmatprep.mubr.msk.f32.mxu0 %vm1611_vm9, %v9917_v41 }
 0x1bc   :  { %8202 = vmatmul.mubr.msk.f32.gmra.mrb[10].mxu1 %vm10858_vm8, %v1109_v58 }
 0x1bd   :  { %8204 = vmatprep.mubr.msk.f32.mxu1 %vm10858_vm8, %v1117_v30  ;;  %v9949_v30 = vadd.s32 16, %v9666_v7 }
 0x1c0   :  { %8205 = vmatmul.mubr.msk.f32.gmra.mrb[12].mxu1 %vm10858_vm8, %v1107_v18 }
 0x1c1   :  { %8207 = vmatprep.mubr.msk.f32.mxu1 %vm10858_vm8, %v1106_v32 }
 0x1c4   :  { %8208 = vmatmul.mubr.msk.f32.gmra.mrb[14].mxu1 %vm10858_vm8, %v1105_v33 }
 0x1c5   :  { %8212 = vmatprep.mubr.msk.f32.mxu1 %vm10858_vm8, %v1394_v42  ;;  %v7458_v42 = vld [vmem:[%s9424_s25] ss:$0 sm:$0xff]  ;;  %s10910_s25 = sld [smem:[#allocation17_spill]] }
 0x1c8   :  { %8213 = vmatmul.mubr.msk.f32.vlgmr.msra.gmra.mrb[8].mxu1 %vm10858_vm8, %v1393_v63 }
 0x1c9   :  { %8215 = vmatprep.mubr.msk.f32.mxu1 %vm10858_vm8, %v1392_v10 }
 0x1cc   :  { %8216 = vmatmul.mubr.msk.f32.gmra.mrb[10].mxu1 %vm10858_vm8, %v1399_v34  ;;  %v1095_v34 = vadd.f32 %v7433_v43, %v9840_v9 }
 0x1cd   :  { %8218 = vmatprep.mubr.msk.f32.mxu1 %vm10858_vm8, %v1390_v25 }
 0x1d0   :  { %8219 = vmatmul.mubr.msk.f32.gmra.mrb[12].mxu1 %vm10858_vm8, %v1389_v35  ;;  %v1096_v35 = vadd.f32 %v9838_v8, %v7433_v43  ;;  %v1588_v8 = vmul.u32 2, %v9943_v5  ;;  %v1590_v43 = vmul.u32 2, %v9770_v40 }
 0x1d1   :  { %8221 = vmatprep.mubr.msk.f32.mxu1 %vm10858_vm8, %v1388_v29 }
 0x1d2   :  { %vm1592_vm11 = vcmp.eq.s32.totalorder %v9910_v37, %v1588_v8  ;;  %vm1594_vm13 = vcmp.eq.s32.totalorder %v9910_v37, %v1590_v43 }
 0x1d4   :  { %8222 = vmatmul.mubr.msk.f32.gmra.mrb[14].mxu1 %vm10858_vm8, %v1403_v36 }
 0x29b   :  { %v8214_v45 = vpop.f32.mrb[8].mxu1 }
 0x29c   :  { %v1548_v1 = vmul.f32 %v8214_v45, %v7458_v42  ;;  %v1494_v46 = vpop.f32.mrb[9].mxu1 }
 0x29d   :  { %v1547_v47 = vmul.f32 %v7458_v42, %v1494_v46 }
 0x29e   :  { %v1562_v50 = vadd.f32 %v7459_v44, %v1548_v1 }
 0x29f   :  { %v1561_v53 = vadd.f32 %v7459_v44, %v1547_v47  ;;  %v8217_v54 = vpop.f32.mrb[10].mxu1 }
 0x2a0   :  { %v1570_v55 = vadd.f32 %v1562_v50, %v1090_v49  ;;  %v1550_v56 = vmul.f32 %v8217_v54, %v7458_v42  ;;  %v1504_v57 = vpop.f32.mrb[11].mxu1  ;;  %v1589_v49 = vmul.u32 2, %v9949_v30 }
 0x2a1   :  { %v1569_v58 = vadd.f32 %v1561_v53, %v1089_v51  ;;  %v1549_v59 = vmul.f32 %v7458_v42, %v1504_v57  ;;  %v9970_v51 = vsel %vm1592_vm11, 1.0, %v9390_v39  ;;  %v1602_v57 = vadd.s32 1, %v1590_v43 }
 0x2a2   :  { %v9927_v62 = vmax.f32 %v1570_v55, 0.0  ;;  %v1564_v63 = vadd.f32 %v7459_v44, %v1550_v56  ;;  %vm1593_vm12 = vcmp.eq.s32.totalorder %v9910_v37, %v1589_v49  ;;  %v1600_v55 = vadd.s32 1, %v1588_v8 }
 0x2a3   :  { %v9930_v13 = vmax.f32 %v1569_v58, 0.0  ;;  %v1563_v0 = vadd.f32 %v7459_v44, %v1549_v59  ;;  %v8220_v14 = vpop.f32.mrb[12].mxu1  ;;  %v1597_v53 = vsel %vm1593_vm12, 1.0, %v9390_v39  ;;  %v1601_v56 = vadd.s32 1, %v1589_v49 }
 0x2a4   :  { %v1572_v10 = vadd.f32 %v1564_v63, %v1092_v60  ;;  %v1552_v2 = vmul.f32 %v8220_v14, %v7458_v42  ;;  %v1514_v15 = vpop.f32.mrb[13].mxu1  ;;  %vm1604_vm15 = vcmp.eq.s32.totalorder %v9910_v37, %v1600_v55  ;;  %vm1606_vm10 = vcmp.eq.s32.totalorder %v9910_v37, %v1602_v57  ;;  %v264_v63 = vld [vmem:[%s9444_s14 + $0x8] sm:$0xff] }
 0x2a5   :  { %v1571_v16 = vadd.f32 %v1563_v0, %v1091_v12  ;;  %v1551_v17 = vmul.f32 %v7458_v42, %v1514_v15  ;;  %v8793_v18 = vpack.c.bf16 %v9927_v62, %v9930_v13  ;;  %vm1605_vm0 = vcmp.eq.s32.totalorder %v9910_v37, %v1601_v56  ;;  %8268 = vmatprep.subr.mxu1 %v264_v63  ;;  %v276_v12 = vld [vmem:[%s9474_s20] sm:$0xff]  ;;  %s10924_s20 = sld [smem:[#allocation27_spill]] }
 0x2a6   :  { %v9935_v3 = vmax.f32 %v1572_v10, 0.0  ;;  %v1566_v22 = vadd.f32 %v7459_v44, %v1552_v2  ;;  %v9988_v58 = vsel %vm1604_vm15, 1.0, %v9390_v39  ;;  %v1609_v59 = vsel %vm1605_vm0, 1.0, %v9390_v39  ;;  %8269 = vmatpush3.msra.mxu1 %v264_v63  ;;  %v263_v0 = vld [vmem:[%s9444_s14] sm:$0xff] }
 0x2a7   :  { %v9938_v4 = vmax.f32 %v1571_v16, 0.0  ;;  %v1565_v23 = vadd.f32 %v7459_v44, %v1551_v17  ;;  %v8223_v24 = vpop.f32.mrb[14].mxu1  ;;  %8794 = vmatprep.subr.bf16.mxu0 %v8793_v18  ;;  %v1610_v60 = vsel %vm1606_vm10, 1.0, %v9390_v39  ;;  %8276 = vmatprep.subr.mxu1 %v263_v0  ;;  %v1843_v63 = vand.u32 15, %v9770_v40 }
 0x2a8   :  { %v1574_v25 = vadd.f32 %v1566_v22, %v1094_v19  ;;  %v1554_v26 = vmul.f32 %v8223_v24, %v7458_v42  ;;  %v1524_v27 = vpop.f32.mrb[15].mxu1  ;;  %8796 = vmatpush3.bf16.msra.mxu0 %v8793_v18  ;;  %vm2652_vm15 = vcmask 261120  }
 0x2a9   :  { %v1573_v28 = vadd.f32 %v1565_v23, %v1093_v11  ;;  %v1553_v32 = vmul.f32 %v7458_v42, %v1524_v27  ;;  %v8797_v33 = vpack.c.bf16 %v9935_v3, %v9938_v4  ;;  %v1822_v11 = vand.u32 15, %v9666_v7 }
 0x2aa   :  { %v9946_v6 = vmax.f32 %v1574_v25, 0.0  ;;  %v1568_v29 = vadd.f32 %v7459_v44, %v1554_v26  ;;  %v265_v26 = vld [vmem:[%s9444_s14 + $0x10] sm:$0xff]  ;;  %s10922_s14 = sld [smem:[#allocation20_spill]] }
 0x2ab   :  { %v9952_v36 = vmax.f32 %v1573_v28, 0.0  ;;  %v1567_v45 = vadd.f32 %v7459_v44, %v1553_v32  ;;  %8798 = vmatprep.subr.bf16.mxu0 %v8797_v33  ;;  %v1599_v44 = vadd.s32 1, %v1587_v38  ;;  %v1598_v38 = vsel %vm1594_vm13, 1.0, %v9390_v39 }
 0x2ac   :  { %v1576_v42 = vadd.f32 %v1568_v29, %v1096_v35  ;;  %8800 = vmatpush3.bf16.msra.mxu0 %v8797_v33  ;;  %vm10053_vm13 = vcmp.eq.s32.totalorder %v1843_v63, 15 }
 0x2ad   :  { %v1575_v1 = vadd.f32 %v1567_v45, %v1095_v34  ;;  %v8801_v46 = vpack.c.bf16 %v9946_v6, %v9952_v36  ;;  %vm1603_vm14 = vcmp.eq.s32.totalorder %v9910_v37, %v1599_v44 }
 0x2ae   :  { %v9957_v47 = vmax.f32 %v1576_v42, 0.0  ;;  %v9980_v54 = vsel %vm1603_vm14, 1.0, %v9390_v39  ;;  %vm2316_vm14 = vcmask 130048  }
 0x2af   :  { %v9960_v50 = vmax.f32 %v1575_v1, 0.0  ;;  %8802 = vmatprep.subr.bf16.mxu0 %v8801_v46 }
 0x2b0   :  { %8804 = vmatpush3.bf16.msra.mxu0 %v8801_v46 }
 0x2b1   :  { %v8805_v9 = vpack.c.bf16 %v9957_v47, %v9960_v50 }
 0x2b3   :  { %8806 = vmatprep.subr.bf16.mxu0 %v8805_v9 }
 0x2b4   :  { %8808 = vmatpush3.bf16.msra.mxu0 %v8805_v9 }
 0x2b5   :  { %8810 = vmatprep.subr.bf16.mxu0 %v8793_v18 }
 0x2b7   :  { %8241 = vmatmul.mubr.msk.f32.vlgmr.msra.gmra.mrb[8].mxu0 %vm1611_vm9, %v9970_v51 }
 0x2b8   :  { %8812 = vmatpush3.bf16.msra.mxu0 %v8793_v18  ;;  %8243 = vmatprep.mubr.msk.f32.mxu0 %vm1611_vm9, %v1597_v53 }
 0x2b9   :  { %8814 = vmatprep.subr.bf16.mxu0 %v8797_v33 }
 0x2bb   :  { %8244 = vmatmul.mubr.msk.f32.gmra.mrb[10].mxu0 %vm1611_vm9, %v1598_v38 }
 0x2bc   :  { %8816 = vmatpush3.bf16.msra.mxu0 %v8797_v33  ;;  %8262 = vmatprep.mubr.msk.f32.mxu0 %vm1611_vm9, %v9980_v54  ;;  %v1836_v33 = vand.u32 15, %v9949_v30 }
 0x2bd   :  { %8818 = vmatprep.subr.bf16.mxu0 %v8801_v46 }
 0x2be   :  { %vm10021_vm11 = vcmp.eq.s32.totalorder %v1836_v33, 0 }
 0x2c0   :  { %8820 = vmatpush3.bf16.msra.mxu0 %v8801_v46 }
 0x2c1   :  { %8822 = vmatprep.subr.bf16.mxu0 %v8805_v9 }
 0x2c4   :  { %8824 = vmatpush3.bf16.msra.mxu0 %v8805_v9 }
 0x2c5   :  { %8292 = vmatprep.subr.mxu0 %v276_v12 }
 0x2c7   :  { %8263 = vmatmul.mubr.msk.f32.vlgmr.msra.gmra.mrb[12].mxu0 %vm1611_vm9, %v9988_v58 }
 0x2c8   :  { %8265 = vmatprep.mubr.msk.f32.mxu0 %vm1611_vm9, %v1609_v59  ;;  %8293 = vmatpush3.msra.mxu0 %v276_v12  ;;  %v1829_v59 = vand.u32 15, %v9943_v5 }
 0x2ca   :  { %vm10044_vm12 = vcmp.eq.s32.totalorder %v1829_v59, 15 }
 0x2cb   :  { %8266 = vmatmul.mubr.msk.f32.gmra.mrb[14].mxu0 %vm1611_vm9, %v1610_v60  ;;  %vm10011_vm9 = vcmp.eq.s32.totalorder %v1822_v11, 0  ;;  %v7584_v60 = vld [vmem:[%s10935_s15] ss:$0 sm:$0xff] }
 0x38a   :  { %v8242_v14 = vpop.f32.mrb[8].mxu0 }
 0x38b   :  { %v1690_v10 = vpop.f32.mrb[9].mxu0 }
 0x38e   :  { %v8245_v2 = vpop.f32.mrb[10].mxu0 }
 0x38f   :  { %v1700_v15 = vpop.f32.mrb[11].mxu0 }
 0x39a   :  { %v8264_v16 = vpop.f32.mrb[12].mxu0 }
 0x39b   :  { %v1807_v17 = vmax.f32 %v8242_v14, %v8264_v16  ;;  %v1787_v18 = vpop.f32.mrb[13].mxu0  ;;  %v268_v16 = vld [vmem:[%s10901_s5] sm:$0xff] }
 0x39c   :  { %v1806_v19 = vmax.f32 %v1690_v10, %v1787_v18  ;;  %v270_v10 = vld [vmem:[%s10901_s5 + $0x10] sm:$0xff] }
 0x39d   :  { %v1811_v22 = vrot.slane %v1807_v17, 7  ;;  %v2069_v23 = vrot.slane %v1807_v17, 1 }
 0x39e   :  { %v1810_v24 = vrot.slane %v1806_v19, 7  ;;  %v8267_v25 = vpop.f32.mrb[14].mxu0  ;;  %8270 = vmatprep.mubr.msk.f32.mxu1 %vm10858_vm8, %v1806_v19  ;;  %8294 = vmatprep.mubr.msk.f32.mxu0 %vm10858_vm8, %v1806_v19  ;;  %v2068_v27 = vrot.slane %v1806_v19, 1 }
 0x39f   :  { %v1809_v28 = vmax.f32 %v8245_v2, %v8267_v25  ;;  %v1797_v32 = vpop.f32.mrb[15].mxu0  ;;  %8271 = vmatmul.mubr.msk.f32.vlgmr.msra.gmra.mrb[16].mxu1 %vm10858_vm8, %v1807_v17  ;;  %8295 = vmatmul.mubr.msk.f32.vlgmr.msra.gmra.mrb[16].mxu0 %vm10858_vm8, %v1807_v17  ;;  %v271_v2 = vld [vmem:[%s10901_s5 + $0x18] sm:$0xff]  ;;  %v269_v17 = vld [vmem:[%s10901_s5 + $0x8] sm:$0xff]  ;;  %v7481_v25 = vld [vmem:[%s10907_s13] ss:$0 sm:$0xff] }
 0x3a0   :  { %v1808_v35 = vmax.f32 %v1700_v15, %v1797_v32  ;;  %8277 = vmatpush3.msra.mxu1 %v263_v0  ;;  %v1816_v29 = vsel %vm372_vm2, %v1810_v24, %v1811_v22  ;;  %v2074_v34 = vsel %vm774_vm5, %v2068_v27, %v2069_v23  ;;  %v8825_v15 = vpack.c.bf16 %v271_v2, %v270_v10 }
 0x3a1   :  { %v1813_v45 = vrot.slane %v1809_v28, 7  ;;  %8284 = vmatprep.subr.mxu1 %v265_v26  ;;  %v2071_v1 = vrot.slane %v1809_v28, 1  ;;  %v8829_v18 = vpack.c.bf16 %v269_v17, %v268_v16 }
 0x3a2   :  { %v1812_v46 = vrot.slane %v1808_v35, 7  ;;  %v2070_v8 = vrot.slane %v1808_v35, 1  ;;  %8273 = vmatprep.mubr.msk.f32.mxu1 %vm10858_vm8, %v1808_v35  ;;  %8297 = vmatprep.mubr.msk.f32.mxu0 %vm10858_vm8, %v1808_v35 }
 0x3a3   :  { %8274 = vmatmul.mubr.msk.f32.gmra.mrb[18].mxu1 %vm10858_vm8, %v1809_v28  ;;  %8298 = vmatmul.mubr.msk.f32.gmra.mrb[18].mxu0 %vm10858_vm8, %v1809_v28  ;;  %v1817_v49 = vsel %vm372_vm2, %v1813_v45, %v1810_v24  ;;  %v2075_v43 = vsel %vm774_vm5, %v2071_v1, %v2068_v27  ;;  %v7480_v24 = vld [vmem:[%s10906_s9] ss:$0 sm:$0xff] }
 0x3a4   :  { %v1870_v44 = vsel %vm10011_vm9, 0.0, %v1817_v49  ;;  %v1815_v53 = vsel %vm372_vm2, %v1811_v22, %v1812_v46  ;;  %v1814_v38 = vsel %vm372_vm2, %v1812_v46, %v1813_v45  ;;  %v2073_v55 = vsel %vm774_vm5, %v2069_v23, %v2070_v8  ;;  %8826 = vmatprep.subr.bf16.mxu0 %v8825_v15  ;;  %v273_v45 = vld [vmem:[%s10901_s5 + $0x28] sm:$0xff] }
 0x3a5   :  { %8278 = vmatprep.mubr.msk.f32.mxu1 %vm10858_vm8, %v1870_v44  ;;  %v2072_v56 = vsel %vm774_vm5, %v2070_v8, %v2071_v1  ;;  %v1872_v57 = vsel %vm10021_vm11, 0.0, %v1815_v53  ;;  %v2081_v12 = vsel %vm10044_vm12, 0.0, %v2073_v55  ;;  %v2083_v14 = vsel %vm10053_vm13, 0.0, %v2075_v43  ;;  %8828 = vmatpush3.bf16.msra.mxu0 %v8825_v15 }
 0x3a6   :  { %8830 = vmatprep.subr.bf16.mxu0 %v8829_v18 }
 0x3a7   :  { %8279 = vmatmul.mubr.msk.f32.vlgmr.msra.gmra.mrb[16].mxu1 %vm10858_vm8, %v1816_v29 }
 0x3a8   :  { %8281 = vmatprep.mubr.msk.f32.mxu1 %vm10858_vm8, %v1872_v57  ;;  %8285 = vmatpush3.msra.mxu1 %v265_v26 }
 0x3ab   :  { %8282 = vmatmul.mubr.msk.f32.gmra.mrb[18].mxu1 %vm10858_vm8, %v1814_v38 }
 0x3ac   :  { %8286 = vmatprep.mubr.msk.f32.mxu1 %vm10858_vm8, %v2074_v34  ;;  %v272_v34 = vld [vmem:[%s10901_s5 + $0x20] sm:$0xff]  ;;  %s11001_s5 = sld [smem:[#allocation40_spill]] }
 0x3ad   :  { %v8833_v55 = vpack.c.bf16 %v273_v45, %v272_v34  ;;  %v7499_v34 = vld [vmem:[%s10908_s17] ss:$0 sm:$0xff] }
 0x3ae   :  { %v7486_v45 = vld [vmem:[%s10909_s21] ss:$0 sm:$0xff] }
 0x3af   :  { %8287 = vmatmul.mubr.msk.f32.vlgmr.msra.gmra.mrb[16].mxu1 %vm10858_vm8, %v2081_v12 }
 0x3b0   :  { %8289 = vmatprep.mubr.msk.f32.mxu1 %vm10858_vm8, %v2072_v56 }
 0x3b3   :  { %8290 = vmatmul.mubr.msk.f32.gmra.mrb[18].mxu1 %vm10858_vm8, %v2083_v14 }
 0x3b4   :  { %8338 = vmatprep.mubr.msk.f32.mxu1 %vm2652_vm15, %v9917_v41 }
 0x472   :  { %v10065_v19 = vpop.f32.mrb[16].mxu0 }
 0x473   :  { %v10067_v22 = vpop.f32.mrb[17].mxu0 }
 0x476   :  { %v10069_v11 = vpop.f32.mrb[18].mxu0 }
 0x477   :  { %v10071_v23 = vpop.f32.mrb[19].mxu0  ;;  %v2303_v41 = vadd.f32 %v10069_v11, %v7486_v45 }
 0x482   :  { %v8288_v26 = vpop.f32.mrb[16].mxu1 }
 0x483   :  { %v2192_v27 = vmul.f32 %v8288_v26, %v7480_v24  ;;  %v2162_v28 = vpop.f32.mrb[17].mxu1 }
 0x484   :  { %v2191_v32 = vmul.f32 %v7480_v24, %v2162_v28 }
 0x485   :  { %v2202_v33 = vadd.f32 %v7481_v25, %v2192_v27 }
 0x486   :  { %v2201_v35 = vadd.f32 %v7481_v25, %v2191_v32  ;;  %v8291_v29 = vpop.f32.mrb[18].mxu1 }
 0x487   :  { %v2206_v1 = vmax.f32 %v2202_v33, 0.0  ;;  %v2194_v46 = vmul.f32 %v8291_v29, %v7480_v24  ;;  %v2172_v8 = vpop.f32.mrb[19].mxu1 }
 0x488   :  { %v2205_v49 = vmax.f32 %v2201_v35, 0.0  ;;  %v2193_v43 = vmul.f32 %v7480_v24, %v2172_v8 }
 0x489   :  { %v2305_v44 = vrot.slane %v2206_v1, 7  ;;  %v2512_v53 = vrot.slane %v2206_v1, 1  ;;  %v2204_v38 = vadd.f32 %v7481_v25, %v2194_v46 }
 0x48a   :  { %v2304_v56 = vrot.slane %v2205_v49, 7  ;;  %v2511_v57 = vrot.slane %v2205_v49, 1  ;;  %v2203_v59 = vadd.f32 %v7481_v25, %v2193_v43  ;;  %8304 = vmatprep.mubr.msk.f32.mxu0 %vm2316_vm14, %v2205_v49 }
 0x48b   :  { %v2208_v63 = vmax.f32 %v2204_v38, 0.0  ;;  %8305 = vmatmul.mubr.msk.f32.vlgmr.msra.gmra.mrb[20].mxu0 %vm2316_vm14, %v2206_v1  ;;  %v7500_v1 = vld [vmem:[%s10910_s25] ss:$0 sm:$0xff]  ;;  %v2300_v38 = vadd.f32 %v7486_v45, %v10067_v22 }
 0x48c   :  { %v2207_v12 = vmax.f32 %v2203_v59, 0.0  ;;  %8832 = vmatpush3.bf16.msra.mxu0 %v8829_v18  ;;  %v2310_v14 = vsel %vm372_vm2, %v2304_v56, %v2305_v44  ;;  %v2517_v10 = vsel %vm774_vm5, %v2511_v57, %v2512_v53 }
 0x48d   :  { %v2307_v2 = vrot.slane %v2208_v63, 7  ;;  %v2514_v15 = vrot.slane %v2208_v63, 1  ;;  %8834 = vmatprep.subr.bf16.mxu0 %v8833_v55 }
 0x48e   :  { %v2306_v16 = vrot.slane %v2207_v12, 7  ;;  %v2513_v17 = vrot.slane %v2207_v12, 1  ;;  %8307 = vmatprep.mubr.msk.f32.mxu0 %vm2316_vm14, %v2207_v12 }
 0x48f   :  { %8308 = vmatmul.mubr.msk.f32.gmra.mrb[22].mxu0 %vm2316_vm14, %v2208_v63  ;;  %v2311_v24 = vsel %vm372_vm2, %v2307_v2, %v2304_v56  ;;  %v2518_v18 = vsel %vm774_vm5, %v2514_v15, %v2511_v57 }
 0x490   :  { %v2312_v25 = vsel %vm10011_vm9, 0.0, %v2311_v24  ;;  %v2309_v26 = vsel %vm372_vm2, %v2305_v44, %v2306_v16  ;;  %v2308_v27 = vsel %vm372_vm2, %v2306_v16, %v2307_v2  ;;  %v2516_v28 = vsel %vm774_vm5, %v2512_v53, %v2513_v17 }
 0x491   :  { %8314 = vmatprep.mubr.msk.f32.mxu0 %vm2316_vm14, %v2312_v25  ;;  %v2515_v32 = vsel %vm774_vm5, %v2513_v17, %v2514_v15  ;;  %v2314_v33 = vsel %vm10021_vm11, 0.0, %v2309_v26  ;;  %v2520_v35 = vsel %vm10044_vm12, 0.0, %v2516_v28  ;;  %v2522_v29 = vsel %vm10053_vm13, 0.0, %v2518_v18  ;;  %v281_v26 = vld [vmem:[%s10911_s29 + $0x18] sm:$0xff] }
 0x492   :  { %v2301_v44 = vadd.f32 %v10065_v19, %v7486_v45  ;;  %v2302_v15 = vadd.f32 %v7486_v45, %v10071_v23  ;;  %v280_v23 = vld [vmem:[%s10911_s29 + $0x10] sm:$0xff] }
 0x493   :  { %8315 = vmatmul.mubr.msk.f32.vlgmr.msra.gmra.mrb[20].mxu0 %vm2316_vm14, %v2310_v14  ;;  %v8853_v28 = vpack.c.bf16 %v281_v26, %v280_v23  ;;  %v290_v23 = vld [vmem:[%s10915_s8 + $0x20] sm:$0xff]  ;;  %v291_v26 = vld [vmem:[%s10915_s8 + $0x28] sm:$0xff] }
 0x494   :  { %8317 = vmatprep.mubr.msk.f32.mxu0 %vm2316_vm14, %v2314_v33  ;;  %8836 = vmatpush3.bf16.msra.mxu0 %v8833_v55 }
 0x497   :  { %8318 = vmatmul.mubr.msk.f32.gmra.mrb[22].mxu0 %vm2316_vm14, %v2308_v27  ;;  %v300_v27 = vld [vmem:[%s10912_s3] sm:$0xff] }
 0x498   :  { %8324 = vmatprep.mubr.msk.f32.mxu0 %vm2316_vm14, %v2517_v10 }
 0x49b   :  { %8325 = vmatmul.mubr.msk.f32.vlgmr.msra.gmra.mrb[20].mxu0 %vm2316_vm14, %v2520_v35  ;;  %v279_v35 = vld [vmem:[%s10911_s29 + $0x8] sm:$0xff] }
 0x49c   :  { %8327 = vmatprep.mubr.msk.f32.mxu0 %vm2316_vm14, %v2515_v32  ;;  %v301_v32 = vld [vmem:[%s10912_s3 + $0x8] sm:$0xff] }
 0x49d   :  { %v8865_v33 = vpack.c.bf16 %v301_v32, %v300_v27  ;;  %v8869_v27 = vpack.c.bf16 %v291_v26, %v290_v23  ;;  %v293_v32 = vld [vmem:[%s10915_s8 + $0x38] sm:$0xff] }
 0x49f   :  { %8328 = vmatmul.mubr.msk.f32.gmra.mrb[22].mxu0 %vm2316_vm14, %v2522_v29  ;;  %8866 = vmatprep.subr.bf16.mxu0 %v8865_v33 }
 0x4a0   :  { %8868 = vmatpush3.bf16.msra.mxu0 %v8865_v33 }
 0x4a1   :  { %8870 = vmatprep.subr.bf16.mxu0 %v8869_v27 }
 0x56e   :  { %v8326_v46 = vpop.f32.mrb[20].mxu0 }
 0x56f   :  { %v2631_v8 = vmul.f32 %v8326_v46, %v7499_v34  ;;  %v2601_v49 = vpop.f32.mrb[21].mxu0  ;;  %v283_v46 = vld [vmem:[%s10911_s29 + $0x28] sm:$0xff] }
 0x570   :  { %v2630_v43 = vmul.f32 %v7499_v34, %v2601_v49 }
 0x571   :  { %v2641_v53 = vadd.f32 %v7500_v1, %v2631_v8 }
 0x572   :  { %v2640_v55 = vadd.f32 %v7500_v1, %v2630_v43  ;;  %v8329_v56 = vpop.f32.mrb[22].mxu0 }
 0x573   :  { %v2645_v57 = vadd.f32 %v2641_v53, %v2301_v44  ;;  %v2633_v59 = vmul.f32 %v8329_v56, %v7499_v34  ;;  %v2611_v63 = vpop.f32.mrb[23].mxu0 }
 0x574   :  { %v2644_v12 = vadd.f32 %v2640_v55, %v2300_v38  ;;  %v2632_v14 = vmul.f32 %v7499_v34, %v2611_v63 }
 0x575   :  { %v10121_v10 = vmax.f32 %v2645_v57, 0.0  ;;  %v2643_v2 = vadd.f32 %v7500_v1, %v2633_v59  ;;  %v2828_v59 = vand.u32 7, %v9943_v5 }
 0x576   :  { %v10124_v16 = vmax.f32 %v2644_v12, 0.0  ;;  %v2642_v19 = vadd.f32 %v7500_v1, %v2632_v14  ;;  %v282_v1 = vld [vmem:[%s10911_s29 + $0x20] sm:$0xff] }
 0x577   :  { %v2647_v17 = vadd.f32 %v2643_v2, %v2303_v41  ;;  %v8861_v38 = vpack.c.bf16 %v283_v46, %v282_v1  ;;  %vm10169_vm10 = vcmp.eq.s32.totalorder %v2828_v59, 0  ;;  %vm10183_vm8 = vcmp.eq.s32.totalorder %v2828_v59, 7 }
 0x578   :  { %v2646_v24 = vadd.f32 %v2642_v19, %v2302_v15  ;;  %v8837_v22 = vpack.c.bf16 %v10121_v10, %v10124_v16  ;;  %v303_v15 = vld [vmem:[%s10924_s20] sm:$0xff]  ;;  %v305_v19 = vld [vmem:[%s10924_s20 + $0x10] sm:$0xff] }
 0x579   :  { %v10128_v18 = vmax.f32 %v2647_v17, 0.0 }
 0x57a   :  { %v10130_v25 = vmax.f32 %v2646_v24, 0.0  ;;  %8838 = vmatprep.subr.bf16.mxu1 %v8837_v22 }
 0x57b   :  { %8840 = vmatpush3.bf16.msra.mxu1 %v8837_v22 }
 0x57c   :  { %v8841_v11 = vpack.c.bf16 %v10128_v18, %v10130_v25 }
 0x57e   :  { %8842 = vmatprep.subr.bf16.mxu1 %v8841_v11 }
 0x57f   :  { %8844 = vmatpush3.bf16.msra.mxu1 %v8841_v11 }
 0x580   :  { %8846 = vmatprep.subr.bf16.mxu1 %v8837_v22 }
 0x582   :  { %8339 = vmatmul.mubr.msk.f32.vlgmr.msra.gmra.mrb[20].mxu1 %vm2652_vm15, %v9970_v51  ;;  %v278_v51 = vld [vmem:[%s10911_s29] sm:$0xff] }
 0x583   :  { %8848 = vmatpush3.bf16.msra.mxu1 %v8837_v22  ;;  %8349 = vmatprep.mubr.msk.f32.mxu1 %vm2652_vm15, %v9980_v54  ;;  %v8857_v54 = vpack.c.bf16 %v279_v35, %v278_v51  ;;  %v286_v51 = vld [vmem:[%s10915_s8] sm:$0xff]  ;;  %v287_v35 = vld [vmem:[%s10915_s8 + $0x8] sm:$0xff] }
 0x584   :  { %8850 = vmatprep.subr.bf16.mxu1 %v8841_v11 }
 0x587   :  { %8852 = vmatpush3.bf16.msra.mxu1 %v8841_v11 }
 0x588   :  { %8854 = vmatprep.subr.bf16.mxu1 %v8853_v28 }
 0x58a   :  { %8350 = vmatmul.mubr.msk.f32.vlgmr.msra.gmra.mrb[22].mxu1 %vm2652_vm15, %v9988_v58  ;;  %v2821_v58 = vand.u32 7, %v9666_v7 }
 0x58b   :  { %8856 = vmatpush3.bf16.msra.mxu1 %v8853_v28  ;;  %v292_v28 = vld [vmem:[%s10915_s8 + $0x30] sm:$0xff] }
 0x58c   :  { %8858 = vmatprep.subr.bf16.mxu1 %v8857_v54  ;;  %vm10151_vm0 = vcmp.eq.s32.totalorder %v2821_v58, 0  ;;  %vm10173_vm1 = vcmp.eq.s32.totalorder %v2821_v58, 7  ;;  %v8873_v33 = vpack.c.bf16 %v293_v32, %v292_v28  ;;  %v7512_v58 = vld [vmem:[%s10923_s12] ss:$0 sm:$0xff]  ;;  %v296_v32 = vld [vmem:[%s10915_s8 + $0x50] sm:$0xff] }
 0x655   :  { %v8340_v29 = vpop.f32.mrb[20].mxu1 }
 0x656   :  { %v2723_v34 = vpop.f32.mrb[21].mxu1 }
 0x65d   :  { %v8351_v45 = vpop.f32.mrb[22].mxu1 }
 0x65e   :  { %v2812_v8 = vmax.f32 %v8340_v29, %v8351_v45  ;;  %v2802_v49 = vpop.f32.mrb[23].mxu1  ;;  %v7511_v45 = vld [vmem:[%s10922_s14] ss:$0 sm:$0xff] }
 0x65f   :  { %v2811_v43 = vmax.f32 %v2723_v34, %v2802_v49 }
 0x660   :  { %v2814_v44 = vrot.slane %v2812_v8, 7  ;;  %v3008_v53 = vrot.slane %v2812_v8, 1 }
 0x661   :  { %v2813_v55 = vrot.slane %v2811_v43, 7  ;;  %v3007_v56 = vrot.slane %v2811_v43, 1  ;;  %8356 = vmatprep.mubr.msk.f32.mxu1 %vm2316_vm14, %v2811_v43  ;;  %8377 = vmatprep.mubr.msk.f32.mxu0 %vm2316_vm14, %v2811_v43 }
 0x662   :  { %8357 = vmatmul.mubr.msk.f32.vlgmr.msra.gmra.mrb[24].mxu1 %vm2316_vm14, %v2812_v8  ;;  %8378 = vmatmul.mubr.msk.f32.vlgmr.msra.gmra.mrb[24].mxu0 %vm2316_vm14, %v2812_v8 }
 0x663   :  { %8860 = vmatpush3.bf16.msra.mxu1 %v8857_v54  ;;  %v2816_v63 = vsel %vm372_vm2, %v2814_v44, %v2813_v55  ;;  %v2815_v12 = vsel %vm372_vm2, %v2813_v55, %v2814_v44  ;;  %v3009_v14 = vsel %vm774_vm5, %v3007_v56, %v3008_v53  ;;  %v3010_v41 = vsel %vm774_vm5, %v3008_v53, %v3007_v56  ;;  %v288_v53 = vld [vmem:[%s10915_s8 + $0x10] sm:$0xff] }
 0x664   :  { %v2843_v2 = vsel %vm10151_vm0, 0.0, %v2816_v63  ;;  %8862 = vmatprep.subr.bf16.mxu1 %v8861_v38  ;;  %v2844_v17 = vsel %vm10169_vm10, 0.0, %v2815_v12  ;;  %v3013_v24 = vsel %vm10173_vm1, 0.0, %v3009_v14  ;;  %v3014_v11 = vsel %vm10183_vm8, 0.0, %v3010_v41  ;;  %8872 = vmatpush3.bf16.msra.mxu0 %v8869_v27 }
 0x665   :  { %8363 = vmatprep.mubr.msk.f32.mxu1 %vm2316_vm14, %v2843_v2  ;;  %8874 = vmatprep.subr.bf16.mxu0 %v8873_v33  ;;  %v8877_v54 = vpack.c.bf16 %v287_v35, %v286_v51  ;;  %v294_v2 = vld [vmem:[%s10915_s8 + $0x40] sm:$0xff] }
 0x668   :  { %8876 = vmatpush3.bf16.msra.mxu0 %v8873_v33  ;;  %v297_v33 = vld [vmem:[%s10915_s8 + $0x58] sm:$0xff] }
 0x669   :  { %8878 = vmatprep.subr.bf16.mxu0 %v8877_v54  ;;  %v8889_v51 = vpack.c.bf16 %v297_v33, %v296_v32  ;;  %v316_v32 = vld [vmem:[%s10928_s30 + $0x20] sm:$0xff]  ;;  %v317_v33 = vld [vmem:[%s10928_s30 + $0x28] sm:$0xff] }
 0x66a   :  { %8364 = vmatmul.mubr.msk.f32.vlgmr.msra.gmra.mrb[24].mxu1 %vm2316_vm14, %v2844_v17  ;;  %v295_v17 = vld [vmem:[%s10915_s8 + $0x48] sm:$0xff] }
 0x66b   :  { %8864 = vmatpush3.bf16.msra.mxu1 %v8861_v38  ;;  %8370 = vmatprep.mubr.msk.f32.mxu1 %vm2316_vm14, %v3013_v24  ;;  %v289_v38 = vld [vmem:[%s10915_s8 + $0x18] sm:$0xff]  ;;  %v8885_v28 = vpack.c.bf16 %v295_v17, %v294_v2 }
 0x66c   :  { %v8881_v12 = vpack.c.bf16 %v289_v38, %v288_v53  ;;  %v7523_v53 = vld [vmem:[%s10927_s0] ss:$0 sm:$0xff] }
 0x672   :  { %8371 = vmatmul.mubr.msk.f32.vlgmr.msra.gmra.mrb[24].mxu1 %vm2316_vm14, %v3014_v11 }
 0x735   :  { %v10196_v29 = vpop.f32.mrb[24].mxu0 }
 0x736   :  { %v10198_v34 = vpop.f32.mrb[25].mxu0 }
 0x745   :  { %v8372_v1 = vpop.f32.mrb[24].mxu1 }
 0x746   :  { %v3105_v46 = vmul.f32 %v8372_v1, %v7511_v45  ;;  %v3087_v8 = vpop.f32.mrb[25].mxu1  ;;  %v306_v1 = vld [vmem:[%s10924_s20 + $0x18] sm:$0xff] }
 0x747   :  { %v3104_v49 = vmul.f32 %v7511_v45, %v3087_v8  ;;  %v304_v45 = vld [vmem:[%s10924_s20 + $0x8] sm:$0xff]  ;;  %v307_v8 = vld [vmem:[%s10924_s20 + $0x20] sm:$0xff] }
 0x748   :  { %v3113_v43 = vadd.f32 %v7512_v58, %v3105_v46  ;;  %v8897_v46 = vpack.c.bf16 %v306_v1, %v305_v19 }
 0x749   :  { %v3112_v44 = vadd.f32 %v7512_v58, %v3104_v49  ;;  %v8893_v58 = vpack.c.bf16 %v304_v45, %v303_v15  ;;  %v308_v49 = vld [vmem:[%s10924_s20 + $0x28] sm:$0xff] }
 0x74a   :  { %v3115_v55 = vmax.f32 %v3113_v43, 0.0  ;;  %v8901_v22 = vpack.c.bf16 %v308_v49, %v307_v8  ;;  %v7522_v43 = vld [vmem:[%s10925_s27] ss:$0 sm:$0xff] }
 0x74b   :  { %v3114_v56 = vmax.f32 %v3112_v44, 0.0  ;;  %8894 = vmatprep.subr.bf16.mxu1 %v8893_v58  ;;  %v7515_v44 = vld [vmem:[%s10926_s1] ss:$0 sm:$0xff] }
 0x74c   :  { %v3200_v59 = vrot.slane %v3115_v55, 7  ;;  %v3368_v63 = vrot.slane %v3115_v55, 1  ;;  %8896 = vmatpush3.bf16.msra.mxu1 %v8893_v58  ;;  %v334_v49 = vld [vmem:[%s10930_s7] sm:$0xff] }
 0x74d   :  { %v3199_v14 = vrot.slane %v3114_v56, 7  ;;  %v3367_v41 = vrot.slane %v3114_v56, 1  ;;  %8388 = vmatprep.mubr.msk.f32.mxu0 %vm2652_vm15, %v3114_v56  ;;  %8898 = vmatprep.subr.bf16.mxu1 %v8897_v46 }
 0x74e   :  { %8389 = vmatmul.mubr.msk.f32.vlgmr.msra.gmra.mrb[26].mxu0 %vm2652_vm15, %v3115_v55 }
 0x74f   :  { %8880 = vmatpush3.bf16.msra.mxu0 %v8877_v54  ;;  %v3202_v24 = vsel %vm372_vm2, %v3200_v59, %v3199_v14  ;;  %v3201_v11 = vsel %vm372_vm2, %v3199_v14, %v3200_v59  ;;  %v3369_v23 = vsel %vm774_vm5, %v3367_v41, %v3368_v63  ;;  %v3370_v26 = vsel %vm774_vm5, %v3368_v63, %v3367_v41 }
 0x750   :  { %v3203_v27 = vsel %vm10151_vm0, 0.0, %v3202_v24  ;;  %8882 = vmatprep.subr.bf16.mxu0 %v8881_v12  ;;  %v3204_v35 = vsel %vm10169_vm10, 0.0, %v3201_v11  ;;  %v3371_v57 = vsel %vm10173_vm1, 0.0, %v3369_v23  ;;  %v3372_v54 = vsel %vm10183_vm8, 0.0, %v3370_v26  ;;  %8900 = vmatpush3.bf16.msra.mxu1 %v8897_v46  ;;  %v309_v24 = vld [vmem:[%s10924_s20 + $0x30] sm:$0xff]  ;;  %v310_v11 = vld [vmem:[%s10924_s20 + $0x38] sm:$0xff] }
 0x751   :  { %8399 = vmatprep.mubr.msk.f32.mxu0 %vm2652_vm15, %v3203_v27  ;;  %8902 = vmatprep.subr.bf16.mxu1 %v8901_v22  ;;  %v3198_v63 = vadd.f32 %v10196_v29, %v7515_v44  ;;  %v3197_v14 = vadd.f32 %v7515_v44, %v10198_v34  ;;  %v8905_v27 = vpack.c.bf16 %v310_v11, %v309_v24  ;;  %v10248_v29 = vmul.u32 2, %v9910_v37  ;;  %v7524_v37 = vld [vmem:[%s10929_s2] ss:$0 sm:$0xff] }
 0x753   :  { %8884 = vmatpush3.bf16.msra.mxu0 %v8881_v12  ;;  %v10251_v34 = vadd.s32 1, %v10248_v29 }
 0x754   :  { %8886 = vmatprep.subr.bf16.mxu0 %v8885_v28 }
 0x755   :  { %vm3648_vm1 = vcmp.eq.s32.totalorder %v9666_v7, %v10251_v34  ;;  %vm3649_vm8 = vcmp.eq.s32.totalorder %v9943_v5, %v10251_v34  ;;  %vm3650_vm0 = vcmp.eq.s32.totalorder %v9949_v30, %v10251_v34  ;;  %vm3651_vm10 = vcmp.eq.s32.totalorder %v9770_v40, %v10251_v34 }
 0x756   :  { %8400 = vmatmul.mubr.msk.f32.vlgmr.msra.gmra.mrb[26].mxu0 %vm2652_vm15, %v3204_v35  ;;  %v10273_v44 = vsel %vm3650_vm0, 1.0, %v9390_v39  ;;  %vm3641_vm0 = vcmp.eq.s32.totalorder %v9949_v30, %v10248_v29  ;;  %v312_v30 = vld [vmem:[%s10928_s30] sm:$0xff] }
 0x757   :  { %8888 = vmatpush3.bf16.msra.mxu0 %v8885_v28  ;;  %8410 = vmatprep.mubr.msk.f32.mxu0 %vm2652_vm15, %v3371_v57  ;;  %v10256_v28 = vsel %vm3648_vm1, 1.0, %v9390_v39  ;;  %vm3639_vm1 = vcmp.eq.s32.totalorder %v9666_v7, %v10248_v29 }
 0x758   :  { %8890 = vmatprep.subr.bf16.mxu0 %v8889_v51 }
 0x75b   :  { %8892 = vmatpush3.bf16.msra.mxu0 %v8889_v51  ;;  %v8917_v51 = vpack.c.bf16 %v317_v33, %v316_v32 }
 0x75d   :  { %8918 = vmatprep.subr.bf16.mxu0 %v8917_v51 }
 0x75e   :  { %8411 = vmatmul.mubr.msk.f32.vlgmr.msra.gmra.mrb[26].mxu0 %vm2652_vm15, %v3372_v54 }
 0x75f   :  { %8920 = vmatpush3.bf16.msra.mxu0 %v8917_v51 }
 0x831   :  { %v8412_v38 = vpop.f32.mrb[26].mxu0 }
 0x832   :  { %v3463_v55 = vmul.f32 %v8412_v38, %v7522_v43  ;;  %v3445_v56 = vpop.f32.mrb[27].mxu0  ;;  %v10284_v38 = vsel %vm3651_vm10, 1.0, %v9390_v39  ;;  %vm3642_vm10 = vcmp.eq.s32.totalorder %v9770_v40, %v10248_v29 }
 0x833   :  { %v3462_v59 = vmul.f32 %v7522_v43, %v3445_v56  ;;  %v10270_v43 = vsel %vm3649_vm8, 1.0, %v9390_v39  ;;  %vm3640_vm8 = vcmp.eq.s32.totalorder %v9943_v5, %v10248_v29  ;;  %v10310_v5 = vsel %vm3642_vm10, 1.0, %v9390_v39 }
 0x834   :  { %v3471_v12 = vadd.f32 %v7523_v53, %v3463_v55  ;;  %v10287_v55 = vsel %vm3639_vm1, 1.0, %v9390_v39  ;;  %v10298_v56 = vsel %vm3640_vm8, 1.0, %v9390_v39  ;;  %vm10941_vm10 = vcmask 64512  }
 0x835   :  { %v3470_v41 = vadd.f32 %v7523_v53, %v3462_v59  ;;  %v10301_v59 = vsel %vm3641_vm0, 1.0, %v9390_v39  ;;  %vm5238_vm0 = vcmp.eq.s32.totalorder %v9788_v48, %v10248_v29 }
 0x836   :  { %v3473_v2 = vadd.f32 %v3471_v12, %v3198_v63  ;;  %v313_v63 = vld [vmem:[%s10928_s30 + $0x8] sm:$0xff] }
 0x837   :  { %v3472_v17 = vadd.f32 %v3470_v41, %v3197_v14  ;;  %v8921_v12 = vpack.c.bf16 %v313_v63, %v312_v30  ;;  %v336_v14 = vld [vmem:[%s10930_s7 + $0x10] sm:$0xff]  ;;  %v337_v41 = vld [vmem:[%s10930_s7 + $0x18] sm:$0xff] }
 0x838   :  { %v3475_v26 = vmax.f32 %v3473_v2, 0.0  ;;  %v8945_v40 = vpack.c.bf16 %v337_v41, %v336_v14  ;;  %v320_v2 = vld [vmem:[%s10928_s30 + $0x40] sm:$0xff]  ;;  %v314_v41 = vld [vmem:[%s10928_s30 + $0x10] sm:$0xff] }
 0x839   :  { %v3474_v23 = vmax.f32 %v3472_v17, 0.0  ;;  %8922 = vmatprep.subr.bf16.mxu0 %v8921_v12  ;;  %v321_v17 = vld [vmem:[%s10928_s30 + $0x48] sm:$0xff] }
 0x83b   :  { %8421 = vmatprep.mubr.msk.f32.mxu1 %vm2652_vm15, %v3474_v23 }
 0x83c   :  { %8422 = vmatmul.mubr.msk.f32.vlgmr.msra.gmra.mrb[26].mxu1 %vm2652_vm15, %v3475_v26 }
 0x83d   :  { %8904 = vmatpush3.bf16.msra.mxu1 %v8901_v22  ;;  %8432 = vmatprep.mubr.msk.f32.mxu1 %vm2652_vm15, %v3474_v23  ;;  %v335_v22 = vld [vmem:[%s10930_s7 + $0x8] sm:$0xff] }
 0x83e   :  { %8906 = vmatprep.subr.bf16.mxu1 %v8905_v27  ;;  %v8941_v53 = vpack.c.bf16 %v335_v22, %v334_v49 }
 0x841   :  { %8908 = vmatpush3.bf16.msra.mxu1 %v8905_v27  ;;  %v8925_v27 = vpack.c.bf16 %v321_v17, %v320_v2 }
 0x844   :  { %8433 = vmatmul.mubr.msk.f32.vlgmr.msra.gmra.mrb[28].mxu1 %vm2652_vm15, %v3475_v26 }
 0x845   :  { %8439 = vmatprep.mubr.msk.f32.mxu1 %vm2316_vm14, %v10256_v28 }
 0x90f   :  { %v8423_v35 = vpop.f32.mrb[26].mxu1 }
 0x910   :  { %v3560_v57 = vadd.f32 %v8423_v35, %v7524_v37  ;;  %v3554_v54 = vpop.f32.mrb[27].mxu1 }
 0x911   :  { %v3555_v15 = vadd.f32 %v7524_v37, %v3554_v54 }
 0x913   :  { %v8913_v45 = vpack.c.bf16 %v3560_v57, %v3555_v15 }
 0x917   :  { %v8434_v58 = vpop.f32.mrb[28].mxu1 }
 0x918   :  { %v3635_v19 = vadd.f32 %v8434_v58, %v7524_v37  ;;  %v3629_v1 = vpop.f32.mrb[29].mxu1 }
 0x919   :  { %v3630_v46 = vadd.f32 %v7524_v37, %v3629_v1  ;;  %v319_v1 = vld [vmem:[%s10928_s30 + $0x38] sm:$0xff] }
 0x91b   :  { %v8909_v8 = vpack.c.bf16 %v3635_v19, %v3630_v46  ;;  %v318_v19 = vld [vmem:[%s10928_s30 + $0x30] sm:$0xff] }
 0x91c   :  { %v8929_v63 = vpack.c.bf16 %v319_v1, %v318_v19  ;;  %v4377_v19 = vrot.slane %v10130_v25, 1 }
 0x91d   :  { %8910 = vmatprep.subr.bf16.mxu1 %v8909_v8 }
 0x91e   :  { %8912 = vmatpush3.bf16.msra.mxu1 %v8909_v8 }
 0x91f   :  { %8914 = vmatprep.subr.bf16.mxu1 %v8913_v45 }
 0x921   :  { %8440 = vmatmul.mubr.msk.f32.vlgmr.msra.gmra.mrb[30].mxu1 %vm2316_vm14, %v10270_v43 }
 0x922   :  { %8916 = vmatpush3.bf16.msra.mxu1 %v8913_v45  ;;  %8442 = vmatprep.mubr.msk.f32.mxu1 %vm2316_vm14, %v10273_v44 }
 0x923   :  { %8942 = vmatprep.subr.bf16.mxu1 %v8941_v53 }
 0x925   :  { %8443 = vmatmul.mubr.msk.f32.gmra.mrb[32].mxu1 %vm2316_vm14, %v10284_v38 }
 0x926   :  { %8449 = vmatprep.mubr.msk.f32.mxu1 %vm2316_vm14, %v10287_v55 }
 0x929   :  { %8450 = vmatmul.mubr.msk.f32.vlgmr.msra.gmra.mrb[30].mxu1 %vm2316_vm14, %v10298_v56 }
 0x92a   :  { %8452 = vmatprep.mubr.msk.f32.mxu1 %vm2316_vm14, %v10301_v59  ;;  %8944 = vmatpush3.bf16.msra.mxu1 %v8941_v53 }
 0x92b   :  { %8946 = vmatprep.subr.bf16.mxu1 %v8945_v40 }
 0x92d   :  { %8453 = vmatmul.mubr.msk.f32.gmra.mrb[32].mxu1 %vm2316_vm14, %v10310_v5 }
 0x9fc   :  { %v8451_v24 = vpop.f32.mrb[30].mxu1 }
 0x9fd   :  { %v3851_v11 = vrot.slane %v8451_v24, 7  ;;  %v4057_v23 = vrot.slane %v8451_v24, 1  ;;  %v3831_v26 = vpop.f32.mrb[31].mxu1 }
 0x9fe   :  { %v3850_v32 = vrot.slane %v3831_v26, 7  ;;  %v4056_v33 = vrot.slane %v3831_v26, 1  ;;  %8459 = vmatprep.mubr.msk.f32.mxu0 %vm2316_vm14, %v3831_v26  ;;  %8519 = vmatprep.mubr.msk.f32.mxu1 %vm2316_vm14, %v3831_v26  ;;  %v4172_v26 = vrot.slane %v10128_v18, 7 }
 0x9ff   :  { %8460 = vmatmul.mubr.msk.f32.vlgmr.msra.gmra.mrb[28].mxu0 %vm2316_vm14, %v8451_v24  ;;  %8520 = vmatmul.mubr.msk.f32.vlgmr.msra.gmra.mrb[34].mxu1 %vm2316_vm14, %v8451_v24 }
 0xa00   :  { %v8454_v51 = vpop.f32.mrb[32].mxu1  ;;  %8924 = vmatpush3.bf16.msra.mxu0 %v8921_v12  ;;  %8948 = vmatpush3.bf16.msra.mxu1 %v8945_v40  ;;  %v3856_v37 = vsel %vm372_vm2, %v3850_v32, %v3851_v11  ;;  %v4062_v35 = vsel %vm774_vm5, %v4056_v33, %v4057_v23  ;;  %v315_v40 = vld [vmem:[%s10928_s30 + $0x18] sm:$0xff] }
 0xa01   :  { %v3853_v57 = vrot.slane %v8454_v51, 7  ;;  %v4059_v54 = vrot.slane %v8454_v51, 1  ;;  %v3841_v15 = vpop.f32.mrb[33].mxu1  ;;  %8926 = vmatprep.subr.bf16.mxu0 %v8925_v27  ;;  %v8933_v2 = vpack.c.bf16 %v315_v40, %v314_v41 }
 0xa02   :  { %v3852_v45 = vrot.slane %v3841_v15, 7  ;;  %v4058_v58 = vrot.slane %v3841_v15, 1  ;;  %8462 = vmatprep.mubr.msk.f32.mxu0 %vm2316_vm14, %v3841_v15  ;;  %8522 = vmatprep.mubr.msk.f32.mxu1 %vm2316_vm14, %v3841_v15 }
 0xa03   :  { %8463 = vmatmul.mubr.msk.f32.gmra.mrb[30].mxu0 %vm2316_vm14, %v8454_v51  ;;  %8523 = vmatmul.mubr.msk.f32.gmra.mrb[36].mxu1 %vm2316_vm14, %v8454_v51  ;;  %v3857_v46 = vsel %vm372_vm2, %v3853_v57, %v3850_v32  ;;  %v4063_v8 = vsel %vm774_vm5, %v4059_v54, %v4056_v33  ;;  %v4169_v32 = vrot.slane %v10124_v16, 7  ;;  %v4171_v51 = vrot.slane %v10130_v25, 7 }
 0xa04   :  { %8529 = vmatprep.mubr.msk.f32.mxu1 %vm2316_vm14, %v10124_v16  ;;  %v3858_v49 = vsel %vm10011_vm9, 0.0, %v3857_v46  ;;  %v3855_v22 = vsel %vm372_vm2, %v3851_v11, %v3852_v45  ;;  %v3854_v53 = vsel %vm372_vm2, %v3852_v45, %v3853_v57  ;;  %v4061_v30 = vsel %vm774_vm5, %v4057_v23, %v4058_v58  ;;  %v322_v11 = vld [vmem:[%s10928_s30 + $0x50] sm:$0xff]  ;;  %v323_v23 = vld [vmem:[%s10928_s30 + $0x58] sm:$0xff] }
 0xa05   :  { %8469 = vmatprep.mubr.msk.f32.mxu0 %vm2316_vm14, %v3858_v49  ;;  %v4060_v12 = vsel %vm774_vm5, %v4058_v58, %v4059_v54  ;;  %v3860_v14 = vsel %vm10021_vm11, 0.0, %v3855_v22  ;;  %v4065_v17 = vsel %vm10044_vm12, 0.0, %v4061_v30  ;;  %v4067_v24 = vsel %vm10053_vm13, 0.0, %v4063_v8 }
 0xa06   :  { %v4176_v33 = vsel %vm372_vm2, %v4172_v26, %v4169_v32  ;;  %v4375_v45 = vrot.slane %v10124_v16, 1  ;;  %v4376_v58 = vrot.slane %v10121_v10, 1  ;;  %v4173_v1 = vsel %vm372_vm2, %v4171_v51, %v4172_v26 }
 0xa07   :  { %8470 = vmatmul.mubr.msk.f32.vlgmr.msra.gmra.mrb[28].mxu0 %vm2316_vm14, %v3856_v37  ;;  %8530 = vmatmul.mubr.msk.f32.vlgmr.msra.gmra.mrb[34].mxu1 %vm2316_vm14, %v10121_v10  ;;  %v4170_v37 = vrot.slane %v10121_v10, 7 }
 0xa08   :  { %8472 = vmatprep.mubr.msk.f32.mxu0 %vm2316_vm14, %v3860_v14  ;;  %8928 = vmatpush3.bf16.msra.mxu0 %v8925_v27  ;;  %v8937_v27 = vpack.c.bf16 %v323_v23, %v322_v11  ;;  %v4381_v46 = vsel %vm774_vm5, %v4375_v45, %v4376_v58  ;;  %v7562_v11 = vld [vmem:[%s10933_s4] ss:$0 sm:$0xff] }
 0xa09   :  { %8532 = vmatprep.mubr.msk.f32.mxu1 %vm2316_vm14, %v10130_v25  ;;  %8930 = vmatprep.subr.bf16.mxu0 %v8929_v63  ;;  %v4174_v57 = vsel %vm372_vm2, %v4170_v37, %v4171_v51  ;;  %v4175_v54 = vsel %vm372_vm2, %v4169_v32, %v4170_v37 }
 0xa0a   :  { %v4179_v15 = vsel %vm10021_vm11, 0.0, %v4174_v57  ;;  %v331_v57 = vld [vmem:[%s10931_s10 + $0x28] sm:$0xff] }
 0xa0b   :  { %8473 = vmatmul.mubr.msk.f32.gmra.mrb[30].mxu0 %vm2316_vm14, %v3854_v53  ;;  %8533 = vmatmul.mubr.msk.f32.gmra.mrb[36].mxu1 %vm2316_vm14, %v10128_v18  ;;  %v329_v53 = vld [vmem:[%s10931_s10 + $0x18] sm:$0xff] }
 0xa0c   :  { %8479 = vmatprep.mubr.msk.f32.mxu0 %vm2316_vm14, %v4062_v35  ;;  %v4177_v35 = vsel %vm10011_vm9, 0.0, %v4176_v33 }
 0xa0f   :  { %8480 = vmatmul.mubr.msk.f32.vlgmr.msra.gmra.mrb[28].mxu0 %vm2316_vm14, %v4065_v17 }
 0xa10   :  { %8482 = vmatprep.mubr.msk.f32.mxu0 %vm2316_vm14, %v4060_v12  ;;  %8932 = vmatpush3.bf16.msra.mxu0 %v8929_v63  ;;  %v326_v63 = vld [vmem:[%s10931_s10] sm:$0xff]  ;;  %v327_v12 = vld [vmem:[%s10931_s10 + $0x8] sm:$0xff] }
 0xa11   :  { %8934 = vmatprep.subr.bf16.mxu0 %v8933_v2  ;;  %v8953_v14 = vpack.c.bf16 %v327_v12, %v326_v63 }
 0xa13   :  { %8483 = vmatmul.mubr.msk.f32.gmra.mrb[30].mxu0 %vm2316_vm14, %v4067_v24  ;;  %v7561_v24 = vld [vmem:[%s10932_s11] ss:$0 sm:$0xff] }
 0xa14   :  { %8489 = vmatprep.mubr.msk.f32.mxu0 %vm2316_vm14, %v10124_v16  ;;  %v4380_v16 = vsel %vm774_vm5, %v4376_v58, %v4377_v19 }
 0xa17   :  { %8490 = vmatmul.mubr.msk.f32.vlgmr.msra.gmra.mrb[28].mxu0 %vm2316_vm14, %v10121_v10  ;;  %v4378_v10 = vrot.slane %v10128_v18, 1 }
 0xa18   :  { %8492 = vmatprep.mubr.msk.f32.mxu0 %vm2316_vm14, %v10130_v25  ;;  %8936 = vmatpush3.bf16.msra.mxu0 %v8933_v2  ;;  %v4384_v25 = vsel %vm10044_vm12, 0.0, %v4380_v16 }
 0xa19   :  { %8938 = vmatprep.subr.bf16.mxu0 %v8937_v27  ;;  %v4379_v8 = vsel %vm774_vm5, %v4377_v19, %v4378_v10  ;;  %v4382_v49 = vsel %vm774_vm5, %v4378_v10, %v4375_v45 }
 0xa1a   :  { %v4386_v22 = vsel %vm10053_vm13, 0.0, %v4382_v49 }
 0xa1b   :  { %8493 = vmatmul.mubr.msk.f32.gmra.mrb[30].mxu0 %vm2316_vm14, %v10128_v18  ;;  %v328_v18 = vld [vmem:[%s10931_s10 + $0x10] sm:$0xff] }
 0xa1c   :  { %8499 = vmatprep.mubr.msk.f32.mxu0 %vm2316_vm14, %v4177_v35  ;;  %v8949_v30 = vpack.c.bf16 %v329_v53, %v328_v18  ;;  %v330_v35 = vld [vmem:[%s10931_s10 + $0x20] sm:$0xff] }
 0xa1d   :  { %v8957_v10 = vpack.c.bf16 %v331_v57, %v330_v35  ;;  %v341_v35 = vld [vmem:[%s10934_s16 + $0x10] sm:$0xff]  ;;  %v342_v57 = vld [vmem:[%s10934_s16 + $0x18] sm:$0xff] }
 0xa1e   :  { %8950 = vmatprep.subr.bf16.mxu1 %v8949_v30 }
 0xa1f   :  { %8500 = vmatmul.mubr.msk.f32.vlgmr.msra.gmra.mrb[28].mxu0 %vm2316_vm14, %v4175_v54  ;;  %8952 = vmatpush3.bf16.msra.mxu1 %v8949_v30 }
 0xa20   :  { %8502 = vmatprep.mubr.msk.f32.mxu0 %vm2316_vm14, %v4179_v15  ;;  %8940 = vmatpush3.bf16.msra.mxu0 %v8937_v27 }
 0xa21   :  { %8954 = vmatprep.subr.bf16.mxu1 %v8953_v14 }
 0xa23   :  { %8503 = vmatmul.mubr.msk.f32.gmra.mrb[30].mxu0 %vm2316_vm14, %v4173_v1 }
 0xa24   :  { %8509 = vmatprep.mubr.msk.f32.mxu0 %vm2316_vm14, %v4381_v46 }
 0xa27   :  { %8510 = vmatmul.mubr.msk.f32.vlgmr.msra.gmra.mrb[28].mxu0 %vm2316_vm14, %v4384_v25 }
 0xa28   :  { %8512 = vmatprep.mubr.msk.f32.mxu0 %vm2316_vm14, %v4379_v8 }
 0xa2b   :  { %8513 = vmatmul.mubr.msk.f32.gmra.mrb[30].mxu0 %vm2316_vm14, %v4386_v22 }
 0xada   :  { %v10426_v41 = vpop.f32.mrb[34].mxu1 }
 0xadb   :  { %v10428_v40 = vpop.f32.mrb[35].mxu1 }
 0xade   :  { %v10430_v2 = vpop.f32.mrb[36].mxu1 }
 0xadf   :  { %v10432_v17 = vpop.f32.mrb[37].mxu1 }
 0xafa   :  { %v8511_v23 = vpop.f32.mrb[28].mxu0 }
 0xafb   :  { %v4499_v26 = vmul.f32 %v8511_v23, %v7561_v24  ;;  %v4465_v27 = vpop.f32.mrb[29].mxu0 }
 0xafc   :  { %v4498_v32 = vmul.f32 %v7561_v24, %v4465_v27 }
 0xafd   :  { %v4509_v33 = vadd.f32 %v7562_v11, %v4499_v26 }
 0xafe   :  { %v4508_v51 = vadd.f32 %v7562_v11, %v4498_v32  ;;  %v8514_v37 = vpop.f32.mrb[30].mxu0 }
 0xaff   :  { %v4513_v54 = vmax.f32 %v4509_v33, 0.0  ;;  %v4501_v15 = vmul.f32 %v8514_v37, %v7561_v24  ;;  %v4475_v45 = vpop.f32.mrb[31].mxu0 }
 0xb00   :  { %v4512_v58 = vmax.f32 %v4508_v51, 0.0  ;;  %v4500_v19 = vmul.f32 %v7561_v24, %v4475_v45  ;;  %v340_v45 = vld [vmem:[%s10934_s16 + $0x8] sm:$0xff] }
 0xb01   :  { %v4701_v1 = vrot.slane %v4513_v54, 7  ;;  %v4907_v46 = vrot.slane %v4513_v54, 1  ;;  %v4511_v16 = vadd.f32 %v7562_v11, %v4501_v15  ;;  %v8965_v15 = vpack.c.bf16 %v342_v57, %v341_v35 }
 0xb02   :  { %v4700_v25 = vrot.slane %v4512_v58, 7  ;;  %v4906_v8 = vrot.slane %v4512_v58, 1  ;;  %v4510_v49 = vadd.f32 %v7562_v11, %v4500_v19  ;;  %8539 = vmatprep.mubr.msk.f32.mxu1 %vm2316_vm14, %v4512_v58  ;;  %v7567_v19 = vld [vmem:[%s10936_s18] ss:$0 sm:$0xff] }
 0xb03   :  { %v4515_v22 = vmax.f32 %v4511_v16, 0.0  ;;  %8540 = vmatmul.mubr.msk.f32.vlgmr.msra.gmra.mrb[38].mxu1 %vm2316_vm14, %v4513_v54  ;;  %v339_v54 = vld [vmem:[%s10934_s16] sm:$0xff] }
 0xb04   :  { %v4514_v18 = vmax.f32 %v4510_v49, 0.0  ;;  %8956 = vmatpush3.bf16.msra.mxu1 %v8953_v14  ;;  %v4706_v53 = vsel %vm372_vm2, %v4700_v25, %v4701_v1  ;;  %v4912_v30 = vsel %vm774_vm5, %v4906_v8, %v4907_v46  ;;  %v8961_v58 = vpack.c.bf16 %v340_v45, %v339_v54 }
 0xb05   :  { %v4703_v63 = vrot.slane %v4515_v22, 7  ;;  %v4909_v12 = vrot.slane %v4515_v22, 1  ;;  %8958 = vmatprep.subr.bf16.mxu1 %v8957_v10  ;;  %v8986_v49 = vadd.f32 %v7567_v19, %v10428_v40 }
 0xb06   :  { %v4702_v24 = vrot.slane %v4514_v18, 7  ;;  %v4908_v23 = vrot.slane %v4514_v18, 1  ;;  %8542 = vmatprep.mubr.msk.f32.mxu1 %vm2316_vm14, %v4514_v18  ;;  %8962 = vmatprep.subr.bf16.mxu0 %v8961_v58 }
 0xb07   :  { %8543 = vmatmul.mubr.msk.f32.gmra.mrb[40].mxu1 %vm2316_vm14, %v4515_v22  ;;  %v4707_v11 = vsel %vm372_vm2, %v4703_v63, %v4700_v25  ;;  %v4913_v14 = vsel %vm774_vm5, %v4909_v12, %v4906_v8  ;;  %8964 = vmatpush3.bf16.msra.mxu0 %v8961_v58  ;;  %v8985_v25 = vadd.f32 %v10426_v41, %v7567_v19 }
 0xb08   :  { %v4708_v26 = vsel %vm10011_vm9, 0.0, %v4707_v11  ;;  %v4705_v27 = vsel %vm372_vm2, %v4701_v1, %v4702_v24  ;;  %v4704_v32 = vsel %vm372_vm2, %v4702_v24, %v4703_v63  ;;  %v4911_v33 = vsel %vm774_vm5, %v4907_v46, %v4908_v23  ;;  %v7585_v1 = vld [vmem:[%s10937_s22] ss:$0 sm:$0xff] }
 0xb09   :  { %8549 = vmatprep.mubr.msk.f32.mxu1 %vm2316_vm14, %v4708_v26  ;;  %v4910_v51 = vsel %vm774_vm5, %v4908_v23, %v4909_v12  ;;  %v4710_v42 = vsel %vm10021_vm11, 0.0, %v4705_v27  ;;  %v4915_v37 = vsel %vm10044_vm12, 0.0, %v4911_v33  ;;  %v4917_v9 = vsel %vm10053_vm13, 0.0, %v4913_v14 }
 0xb0a   :  { %v8987_v23 = vadd.f32 %v10430_v2, %v7567_v19  ;;  %v8988_v14 = vadd.f32 %v7567_v19, %v10432_v17  ;;  %v346_v17 = vld [vmem:[%s10938_s23 + $0x10] sm:$0xff]  ;;  %vm5243_vm9 = vcmp.eq.s32.totalorder %v9714_v21, %v10251_v34  ;;  %vm5246_vm13 = vcmp.eq.s32.totalorder %v9788_v48, %v10251_v34 }
 0xb0b   :  { %8550 = vmatmul.mubr.msk.f32.vlgmr.msra.gmra.mrb[38].mxu1 %vm2316_vm14, %v4706_v53 }
 0xb0c   :  { %8552 = vmatprep.mubr.msk.f32.mxu1 %vm2316_vm14, %v4710_v42  ;;  %8960 = vmatpush3.bf16.msra.mxu1 %v8957_v10 }
 0xb0d   :  { %8966 = vmatprep.subr.bf16.mxu1 %v8965_v15 }
 0xb0f   :  { %8553 = vmatmul.mubr.msk.f32.gmra.mrb[40].mxu1 %vm2316_vm14, %v4704_v32 }
 0xb10   :  { %8559 = vmatprep.mubr.msk.f32.mxu1 %vm2316_vm14, %v4912_v30 }
 0xb13   :  { %8560 = vmatmul.mubr.msk.f32.vlgmr.msra.gmra.mrb[38].mxu1 %vm2316_vm14, %v4915_v37 }
 0xb14   :  { %8562 = vmatprep.mubr.msk.f32.mxu1 %vm2316_vm14, %v4910_v51  ;;  %8968 = vmatpush3.bf16.msra.mxu1 %v8965_v15  ;;  %v7586_v51 = vld [vmem:[%s10939_s6] ss:$0 sm:$0xff] }
 0xb15   :  { %8625 = vmatprep.subr.mxu1 %v346_v17 }
 0xb17   :  { %8563 = vmatmul.mubr.msk.f32.gmra.mrb[40].mxu1 %vm2316_vm14, %v4917_v9 }
 0xbe6   :  { %v8561_v46 = vpop.f32.mrb[38].mxu1 }
 0xbe7   :  { %v5026_v16 = vmul.f32 %v8561_v46, %v7584_v60  ;;  %v4996_v10 = vpop.f32.mrb[39].mxu1 }
 0xbe8   :  { %v5025_v0 = vmul.f32 %v7584_v60, %v4996_v10 }
 0xbe9   :  { %v5036_v8 = vadd.f32 %v7585_v1, %v5026_v16 }
 0xbea   :  { %v5035_v22 = vadd.f32 %v7585_v1, %v5025_v0  ;;  %v8564_v18 = vpop.f32.mrb[40].mxu1 }
 0xbeb   :  { %v5040_v53 = vadd.f32 %v8985_v25, %v5036_v8  ;;  %v5028_v30 = vmul.f32 %v8564_v18, %v7584_v60  ;;  %v5006_v63 = vpop.f32.mrb[41].mxu1  ;;  %v386_v18 = vadd.s32 48, %v9666_v7 }
 0xbec   :  { %v5039_v12 = vadd.f32 %v8986_v49, %v5035_v22  ;;  %v5027_v24 = vmul.f32 %v7584_v60, %v5006_v63  ;;  %v385_v22 = vadd.s32 40, %v9666_v7 }
 0xbed   :  { %v5038_v11 = vadd.f32 %v7585_v1, %v5028_v30  ;;  %v5044_v32 = vmax.f32 %v5040_v53, 0.0  ;;  %v5247_v53 = vsel %vm5243_vm9, 1.0, %v9390_v39  ;;  %vm5245_vm12 = vcmp.eq.s32.totalorder %v386_v18, %v10251_v34  ;;  %vm10942_vm9 = vmmov %vm10941_vm10 }
 0xbee   :  { %v5043_v26 = vmax.f32 %v5039_v12, 0.0  ;;  %v5037_v27 = vadd.f32 %v7585_v1, %v5027_v24  ;;  %vm5244_vm11 = vcmp.eq.s32.totalorder %v385_v22, %v10251_v34  ;;  %vm5236_vm1 = vcmp.eq.s32.totalorder %v385_v22, %v10248_v29 }
 0xbef   :  { %v5042_v41 = vadd.f32 %v8987_v23, %v5038_v11  ;;  %v5248_v30 = vsel %vm5244_vm11, 1.0, %v9390_v39  ;;  %vm5237_vm8 = vcmp.eq.s32.totalorder %v386_v18, %v10248_v29  ;;  %vm10944_vm11 = vmmov %vm10942_vm9 }
 0xbf0   :  { %v5041_v33 = vadd.f32 %v8988_v14, %v5037_v27  ;;  %8569 = vmatprep.mubr.msk.f32.mxu0 %vm2316_vm14, %v5043_v26  ;;  %8579 = vmatprep.mubr.msk.f32.mxu1 %vm2316_vm14, %v5043_v26 }
 0xbf1   :  { %8570 = vmatmul.mubr.msk.f32.vlgmr.msra.gmra.mrb[32].mxu0 %vm2316_vm14, %v5044_v32  ;;  %8580 = vmatmul.mubr.msk.f32.vlgmr.msra.gmra.mrb[42].mxu1 %vm2316_vm14, %v5044_v32  ;;  %v5046_v2 = vmax.f32 %v5042_v41, 0.0 }
 0xbf2   :  { %v5045_v40 = vmax.f32 %v5041_v33, 0.0  ;;  %8626 = vmatpush3.msra.mxu1 %v346_v17 }
 0xbf4   :  { %8572 = vmatprep.mubr.msk.f32.mxu0 %vm2316_vm14, %v5045_v40  ;;  %8582 = vmatprep.mubr.msk.f32.mxu1 %vm2316_vm14, %v5045_v40 }
 0xbf5   :  { %8573 = vmatmul.mubr.msk.f32.gmra.mrb[34].mxu0 %vm2316_vm14, %v5046_v2  ;;  %8583 = vmatmul.mubr.msk.f32.gmra.mrb[44].mxu1 %vm2316_vm14, %v5046_v2  ;;  %vm5235_vm14 = vcmp.eq.s32.totalorder %v9714_v21, %v10248_v29  ;;  %v5240_v21 = vsel %vm5236_vm1, 1.0, %v9390_v39  ;;  %vm10948_vm1 = vmmov %vm10942_vm9 }
 0xbf6   :  { %8593 = vmatprep.mubr.msk.f32.mxu0 %vm2652_vm15, %v10256_v28  ;;  %v5239_v34 = vsel %vm5235_vm14, 1.0, %v9390_v39  ;;  %vm10947_vm14 = vmmov %vm10942_vm9 }
 0xcc4   :  { %v8571_v42 = vpop.f32.mrb[32].mxu0  ;;  %v8581_v37 = vpop.f32.mrb[42].mxu1 }
 0xcc5   :  { %v5137_v9 = vadd.f32 %v8571_v42, %v7586_v51  ;;  %v5222_v35 = vadd.f32 %v8581_v37, %v7586_v51  ;;  %v5131_v57 = vpop.f32.mrb[33].mxu0  ;;  %v5216_v54 = vpop.f32.mrb[43].mxu1 }
 0xcc6   :  { %v5132_v15 = vadd.f32 %v7586_v51, %v5131_v57  ;;  %v5217_v45 = vadd.f32 %v7586_v51, %v5216_v54 }
 0xcc8   :  { %v8977_v58 = vpack.c.bf16 %v5137_v9, %v5132_v15  ;;  %v8969_v60 = vpack.c.bf16 %v5222_v35, %v5217_v45  ;;  %v8574_v19 = vpop.f32.mrb[34].mxu0  ;;  %v8584_v1 = vpop.f32.mrb[44].mxu1 }
 0xcc9   :  { %v5147_v46 = vadd.f32 %v8574_v19, %v7586_v51  ;;  %v5232_v16 = vadd.f32 %v8584_v1, %v7586_v51  ;;  %v5141_v10 = vpop.f32.mrb[35].mxu0  ;;  %v5226_v28 = vpop.f32.mrb[45].mxu1 }
 0xcca   :  { %v5142_v0 = vadd.f32 %v7586_v51, %v5141_v10  ;;  %v5227_v25 = vadd.f32 %v7586_v51, %v5226_v28  ;;  %8970 = vmatprep.subr.bf16.mxu0 %v8969_v60 }
 0xccb   :  { %8972 = vmatpush3.bf16.msra.mxu0 %v8969_v60 }
 0xccc   :  { %v8981_v8 = vpack.c.bf16 %v5147_v46, %v5142_v0  ;;  %v8973_v49 = vpack.c.bf16 %v5232_v16, %v5227_v25 }
 0xcce   :  { %8974 = vmatprep.subr.bf16.mxu0 %v8973_v49 }
 0xccf   :  { %8976 = vmatpush3.bf16.msra.mxu0 %v8973_v49 }
 0xcd0   :  { %8978 = vmatprep.subr.bf16.mxu0 %v8977_v58 }
 0xcd2   :  { %8594 = vmatmul.mubr.msk.f32.vlgmr.msra.gmra.mrb[36].mxu0 %vm2652_vm15, %v10270_v43  ;;  %v5249_v43 = vsel %vm5245_vm12, 1.0, %v9390_v39  ;;  %vm10945_vm12 = vmmov %vm10942_vm9 }
 0xcd3   :  { %8980 = vmatpush3.bf16.msra.mxu0 %v8977_v58  ;;  %8596 = vmatprep.mubr.msk.f32.mxu0 %vm2652_vm15, %v10273_v44  ;;  %v5250_v44 = vsel %vm5246_vm13, 1.0, %v9390_v39  ;;  %vm10946_vm13 = vmmov %vm10942_vm9 }
 0xcd4   :  { %8982 = vmatprep.subr.bf16.mxu0 %v8981_v8 }
 0xcd6   :  { %8597 = vmatmul.mubr.msk.f32.gmra.mrb[38].mxu0 %vm2652_vm15, %v10284_v38  ;;  %v5241_v38 = vsel %vm5237_vm8, 1.0, %v9390_v39  ;;  %vm10949_vm8 = vmmov %vm10948_vm1 }
 0xcd7   :  { %8984 = vmatpush3.bf16.msra.mxu0 %v8981_v8  ;;  %8599 = vmatprep.mubr.msk.f32.mxu0 %vm2652_vm15, %v5247_v53 }
 0xcda   :  { %8600 = vmatmul.mubr.msk.f32.gmra.mrb[40].mxu0 %vm2652_vm15, %v5248_v30 }
 0xcdb   :  { %8602 = vmatprep.mubr.msk.f32.mxu0 %vm2652_vm15, %v5249_v43  ;;  %v347_v43 = vld [vmem:[%s10938_s23 + $0x18] sm:$0xff] }
 0xcde   :  { %8603 = vmatmul.mubr.msk.f32.gmra.mrb[42].mxu0 %vm2652_vm15, %v5250_v44 }
 0xcdf   :  { %8613 = vmatprep.mubr.msk.f32.mxu0 %vm2652_vm15, %v10287_v55  ;;  %v5242_v55 = vsel %vm5238_vm0, 1.0, %v9390_v39  ;;  %v348_v39 = vld [vmem:[%s10938_s23 + $0x20] sm:$0xff]  ;;  %vm10950_vm0 = vmmov %vm10948_vm1 }
 0xce2   :  { %8614 = vmatmul.mubr.msk.f32.vlgmr.msra.gmra.mrb[36].mxu0 %vm2652_vm15, %v10298_v56  ;;  %v357_v56 = vld [vmem:[%s10940_s26] sm:$0xff] }
 0xce3   :  { %8616 = vmatprep.mubr.msk.f32.mxu0 %vm2652_vm15, %v10301_v59  ;;  %8709 = vmatprep.subr.mxu0 %v357_v56  ;;  %v344_v59 = vld [vmem:[%s10938_s23] sm:$0xff] }
 0xce4   :  { %8710 = vmatpush3.msra.mxu0 %v357_v56  ;;  %8639 = vmatprep.subr.mxu1 %v344_v59  ;;  %v5951_v56 = vrot.slane %v9957_v47, 7 }
 0xce6   :  { %8617 = vmatmul.mubr.msk.f32.gmra.mrb[38].mxu0 %vm2652_vm15, %v10310_v5  ;;  %v358_v5 = vld [vmem:[%s10940_s26 + $0x8] sm:$0xff] }
 0xce7   :  { %8619 = vmatprep.mubr.msk.f32.mxu0 %vm2652_vm15, %v5239_v34  ;;  %8723 = vmatprep.subr.mxu0 %v358_v5  ;;  %v345_v34 = vld [vmem:[%s10938_s23 + $0x8] sm:$0xff] }
 0xcea   :  { %8620 = vmatmul.mubr.msk.f32.gmra.mrb[40].mxu0 %vm2652_vm15, %v5240_v21 }
 0xceb   :  { %8622 = vmatprep.mubr.msk.f32.mxu0 %vm2652_vm15, %v5241_v38 }
 0xcee   :  { %8623 = vmatmul.mubr.msk.f32.gmra.mrb[42].mxu0 %vm2652_vm15, %v5242_v55  ;;  %vm10943_vm15 = vmmov %vm10942_vm9  ;;  %v349_v55 = vld [vmem:[%s10938_s23 + $0x28] sm:$0xff] }
 0xdb5   :  { %v8615_v63 = vpop.f32.mrb[36].mxu0 }
 0xdb6   :  { %v5502_v12 = vrot.slane %v8615_v63, 7  ;;  %v5784_v24 = vrot.slane %v8615_v63, 1  ;;  %v5462_v48 = vpop.f32.mrb[37].mxu0 }
 0xdb7   :  { %v5501_v29 = vrot.slane %v5462_v48, 7  ;;  %v5783_v23 = vrot.slane %v5462_v48, 1  ;;  %8627 = vmatprep.mubr.msk.f32.mxu1 %vm10941_vm10, %v5462_v48  ;;  %8711 = vmatprep.mubr.msk.f32.mxu0 %vm10942_vm9, %v5462_v48  ;;  %vm10951_vm10 = vmmov %vm10950_vm0  ;;  %v5948_v48 = vrot.slane %v9952_v36, 7 }
 0xdb8   :  { %8628 = vmatmul.mubr.msk.f32.vlgmr.msra.gmra.mrb[46].mxu1 %vm10943_vm15, %v8615_v63  ;;  %8712 = vmatmul.mubr.msk.f32.vlgmr.msra.gmra.mrb[44].mxu0 %vm10944_vm11, %v8615_v63  ;;  %vm10952_vm9 = vmmov %vm10950_vm0  ;;  %v5945_v63 = vrot.slane %v9927_v62, 7 }
 0xdb9   :  { %v8618_v11 = vpop.f32.mrb[38].mxu0  ;;  %8640 = vmatpush3.msra.mxu1 %v344_v59  ;;  %8724 = vmatpush3.msra.mxu0 %v358_v5  ;;  %v5515_v14 = vsel %vm372_vm2, %v5501_v29, %v5502_v12  ;;  %v10553_v26 = vsel %vm774_vm5, %v5783_v23, %v5784_v24  ;;  %vm10953_vm15 = vmmov %vm10950_vm0  ;;  %v5944_v59 = vrot.slane %v9930_v13, 7 }
 0xdba   :  { %v5504_v27 = vrot.slane %v8618_v11, 7  ;;  %v5786_v32 = vrot.slane %v8618_v11, 1  ;;  %v5472_v41 = vpop.f32.mrb[39].mxu0  ;;  %8653 = vmatprep.subr.mxu1 %v348_v39  ;;  %vm10954_vm11 = vmmov %vm10950_vm0 }
 0xdbb   :  { %v5503_v33 = vrot.slane %v5472_v41, 7  ;;  %v5785_v40 = vrot.slane %v5472_v41, 1  ;;  %8630 = vmatprep.mubr.msk.f32.mxu1 %vm10945_vm12, %v5472_v41  ;;  %8714 = vmatprep.mubr.msk.f32.mxu0 %vm10946_vm13, %v5472_v41  ;;  %vm10955_vm12 = vmmov %vm10950_vm0  ;;  %v5959_v5 = vsel %vm372_vm2, %v5951_v56, %v5944_v59 }
 0xdbc   :  { %8631 = vmatmul.mubr.msk.f32.gmra.mrb[48].mxu1 %vm10947_vm14, %v8618_v11  ;;  %8715 = vmatmul.mubr.msk.f32.gmra.mrb[46].mxu0 %vm10948_vm1, %v8618_v11  ;;  %vm10956_vm13 = vmmov %vm10950_vm0 }
 0xdbd   :  { %v8621_v2 = vpop.f32.mrb[40].mxu0  ;;  %v5514_v17 = vsel %vm372_vm2, %v5502_v12, %v5503_v33  ;;  %v5513_v51 = vsel %vm372_vm2, %v5503_v33, %v5504_v27  ;;  %v5796_v42 = vsel %vm774_vm5, %v5784_v24, %v5785_v40  ;;  %v5795_v37 = vsel %vm774_vm5, %v5785_v40, %v5786_v32  ;;  %vm10957_vm14 = vmmov %vm10950_vm0 }
 0xdbe   :  { %v5506_v9 = vrot.slane %v8621_v2, 7  ;;  %v5788_v35 = vrot.slane %v8621_v2, 1  ;;  %v5482_v57 = vpop.f32.mrb[41].mxu0  ;;  %vm10958_vm1 = vmmov %vm10950_vm0  ;;  %v5960_v12 = vsel %vm9709_vm3, 0.0, %v5959_v5  ;;  %v5946_v24 = vrot.slane %v9938_v4, 7 }
 0xdbf   :  { %v5505_v54 = vrot.slane %v5482_v57, 7  ;;  %v5787_v15 = vrot.slane %v5482_v57, 1  ;;  %8633 = vmatprep.mubr.msk.f32.mxu1 %vm10949_vm8, %v5482_v57  ;;  %8717 = vmatprep.mubr.msk.f32.mxu0 %vm10950_vm0, %v5482_v57  ;;  %vm10959_vm8 = vmmov %vm10950_vm0  ;;  %v6226_v40 = vrot.slane %v9930_v13, 1 }
 0xdc0   :  { %8634 = vmatmul.mubr.msk.f32.gmra.mrb[50].mxu1 %vm10951_vm10, %v8621_v2  ;;  %8718 = vmatmul.mubr.msk.f32.gmra.mrb[48].mxu0 %vm10952_vm9, %v8621_v2  ;;  %vm10960_vm10 = vmmov %vm10950_vm0  ;;  %v6227_v2 = vrot.slane %v9927_v62, 1 }
 0xdc1   :  { %v8624_v45 = vpop.f32.mrb[42].mxu0  ;;  %v5512_v58 = vsel %vm372_vm2, %v5504_v27, %v5505_v54  ;;  %v5511_v60 = vsel %vm372_vm2, %v5505_v54, %v5506_v9  ;;  %v5794_v19 = vsel %vm774_vm5, %v5786_v32, %v5787_v15  ;;  %v5793_v1 = vsel %vm774_vm5, %v5787_v15, %v5788_v35  ;;  %vm10961_vm9 = vmmov %vm10950_vm0 }
 0xdc2   :  { %v5508_v46 = vrot.slane %v8624_v45, 7  ;;  %v5790_v16 = vrot.slane %v8624_v45, 1  ;;  %v5492_v10 = vpop.f32.mrb[43].mxu0  ;;  %v5521_v44 = vsel %vm9744_vm4, 0.0, %v5512_v58  ;;  %v5802_v21 = vsel %vm9795_vm6, 0.0, %v5794_v19  ;;  %v352_v58 = vld [vmem:[%s10995_s28] sm:$0xff] }
 0xdc3   :  { %v5507_v28 = vrot.slane %v5492_v10, 7  ;;  %v5789_v0 = vrot.slane %v5492_v10, 1  ;;  %8636 = vmatprep.mubr.msk.f32.mxu1 %vm10953_vm15, %v5492_v10  ;;  %8720 = vmatprep.mubr.msk.f32.mxu0 %vm10954_vm11, %v5492_v10  ;;  %vm10962_vm15 = vmmov %vm10950_vm0  ;;  %v5950_v32 = vrot.slane %v9960_v50, 7  ;;  %v6233_v54 = vrot.slane %v9957_v47, 1 }
 0xdc4   :  { %8637 = vmatmul.mubr.msk.f32.gmra.mrb[52].mxu1 %vm10955_vm12, %v8624_v45  ;;  %8721 = vmatmul.mubr.msk.f32.gmra.mrb[50].mxu0 %vm10956_vm13, %v8624_v45  ;;  %v5516_v25 = vsel %vm372_vm2, %v5508_v46, %v5501_v29  ;;  %v5798_v8 = vsel %vm774_vm5, %v5790_v16, %v5783_v23  ;;  %vm10963_vm11 = vmmov %vm10950_vm0  ;;  %v5958_v29 = vsel %vm372_vm2, %v5944_v59, %v5945_v63  ;;  %v5947_v23 = vrot.slane %v9935_v3, 7 }
 0xdc5   :  { %8725 = vmatprep.mubr.msk.f32.mxu0 %vm10957_vm14, %v9930_v13  ;;  %v5517_v49 = vsel %vm9709_vm3, 0.0, %v5516_v25  ;;  %v5510_v22 = vsel %vm372_vm2, %v5506_v9, %v5507_v28  ;;  %v5509_v18 = vsel %vm372_vm2, %v5507_v28, %v5508_v46  ;;  %v5792_v53 = vsel %vm774_vm5, %v5788_v35, %v5789_v0  ;;  %vm10964_vm12 = vmmov %vm10950_vm0 }
 0xdc6   :  { %8641 = vmatprep.mubr.msk.f32.mxu1 %vm10958_vm1, %v5517_v49  ;;  %v5791_v30 = vsel %vm774_vm5, %v5789_v0, %v5790_v16  ;;  %vm10965_vm13 = vmmov %vm10950_vm0  ;;  %v5806_v38 = vsel %vm9816_vm7, 0.0, %v5798_v8  ;;  %v5955_v11 = vsel %vm372_vm2, %v5947_v23, %v5948_v48  ;;  %v6230_v9 = vrot.slane %v9952_v36, 1  ;;  %v7659_v8 = vld [vmem:[%s11001_s5] ss:$0 sm:$0xff]  ;;  %v7660_v49 = vld [vmem:[#allocation3] ss:$0 sm:$0xff] }
 0xdc7   :  { %vm10966_vm14 = vmmov %vm10950_vm0  ;;  %v5964_v27 = vsel %vm9744_vm4, 0.0, %v5955_v11  ;;  %v6231_v35 = vrot.slane %v9946_v6, 1 }
 0xdc8   :  { %8642 = vmatmul.mubr.msk.f32.vlgmr.msra.gmra.mrb[46].mxu1 %vm10959_vm8, %v5515_v14  ;;  %8726 = vmatmul.mubr.msk.f32.vlgmr.msra.gmra.mrb[44].mxu0 %vm10950_vm0, %v9927_v62  ;;  %vm10967_vm1 = vmmov %vm10950_vm0  ;;  %v5956_v14 = vsel %vm372_vm2, %v5946_v24, %v5947_v23 }
 0xdc9   :  { %8644 = vmatprep.mubr.msk.f32.mxu1 %vm10960_vm10, %v5514_v17  ;;  %8654 = vmatpush3.msra.mxu1 %v348_v39  ;;  %vm10968_vm8 = vmmov %vm10950_vm0  ;;  %v5957_v39 = vsel %vm372_vm2, %v5945_v63, %v5946_v24  ;;  %v5952_v17 = vsel %vm372_vm2, %v5950_v32, %v5951_v56  ;;  %v6236_v57 = vsel %vm774_vm5, %v6230_v9, %v6231_v35 }
 0xdca   :  { %8728 = vmatprep.mubr.msk.f32.mxu0 %vm10961_vm9, %v9938_v4  ;;  %8667 = vmatprep.subr.mxu1 %v347_v43  ;;  %vm10969_vm10 = vmmov %vm10950_vm0 }
 0xdcb   :  { %vm10970_vm9 = vmmov %vm10950_vm0 }
 0xdcc   :  { %8645 = vmatmul.mubr.msk.f32.gmra.mrb[48].mxu1 %vm10962_vm15, %v5513_v51  ;;  %8729 = vmatmul.mubr.msk.f32.gmra.mrb[46].mxu0 %vm10963_vm11, %v9935_v3  ;;  %vm10971_vm15 = vmmov %vm10950_vm0  ;;  %v6228_v51 = vrot.slane %v9938_v4, 1 }
 0xdcd   :  { %8647 = vmatprep.mubr.msk.f32.mxu1 %vm10964_vm12, %v5521_v44  ;;  %8731 = vmatprep.mubr.msk.f32.mxu0 %vm10965_vm13, %v9952_v36  ;;  %vm10972_vm11 = vmmov %vm10950_vm0 }
 0xdce   :  { %vm10973_vm12 = vmmov %vm10950_vm0 }
 0xdcf   :  { %vm10974_vm13 = vmmov %vm10950_vm0 }
 0xdd0   :  { %8648 = vmatmul.mubr.msk.f32.gmra.mrb[50].mxu1 %vm10966_vm14, %v5511_v60  ;;  %8732 = vmatmul.mubr.msk.f32.gmra.mrb[48].mxu0 %vm10967_vm1, %v9946_v6  ;;  %vm10975_vm14 = vmmov %vm10950_vm0  ;;  %v360_v60 = vld [vmem:[%s9624_s19] sm:$0xff] }
 0xdd1   :  { %8650 = vmatprep.mubr.msk.f32.mxu1 %vm10968_vm8, %v5510_v22  ;;  %8734 = vmatprep.mubr.msk.f32.mxu0 %vm10950_vm0, %v9960_v50  ;;  %vm10976_vm1 = vmmov %vm10950_vm0 }
 0xdd2   :  { %vm10977_vm8 = vmmov %vm10950_vm0 }
 0xdd4   :  { %8651 = vmatmul.mubr.msk.f32.gmra.mrb[52].mxu1 %vm10969_vm10, %v5509_v18  ;;  %8735 = vmatmul.mubr.msk.f32.gmra.mrb[50].mxu0 %vm10970_vm9, %v9957_v47  ;;  %vm10978_vm10 = vmmov %vm10950_vm0 }
 0xdd5   :  { %8655 = vmatprep.mubr.msk.f32.mxu1 %vm10971_vm15, %v10553_v26  ;;  %vm10979_vm9 = vmmov %vm10950_vm0  ;;  %v5949_v26 = vrot.slane %v9946_v6, 7 }
 0xdd6   :  { %vm10980_vm15 = vmmov %vm10950_vm0 }
 0xdd7   :  { %v5954_v41 = vsel %vm372_vm2, %v5948_v48, %v5949_v26  ;;  %v5953_v33 = vsel %vm372_vm2, %v5949_v26, %v5950_v32 }
 0xdd8   :  { %8656 = vmatmul.mubr.msk.f32.vlgmr.msra.gmra.mrb[46].mxu1 %vm10972_vm11, %v5796_v42  ;;  %vm10981_vm11 = vmmov %vm10950_vm0  ;;  %v6240_v42 = vsel %vm774_vm5, %v6226_v40, %v6227_v2 }
 0xdd9   :  { %8658 = vmatprep.mubr.msk.f32.mxu1 %vm10973_vm12, %v5795_v37  ;;  %8668 = vmatpush3.msra.mxu1 %v347_v43  ;;  %vm10982_vm12 = vmmov %vm10950_vm0  ;;  %v6229_v37 = vrot.slane %v9935_v3, 1 }
 0xdda   :  { %8681 = vmatprep.subr.mxu1 %v345_v34 }
 0xddc   :  { %8659 = vmatmul.mubr.msk.f32.gmra.mrb[48].mxu1 %vm10974_vm13, %v5802_v21  ;;  %vm10983_vm13 = vmmov %vm10950_vm0 }
 0xddd   :  { %8661 = vmatprep.mubr.msk.f32.mxu1 %vm10975_vm14, %v5793_v1  ;;  %vm10984_vm14 = vmmov %vm10950_vm0 }
 0xde0   :  { %8662 = vmatmul.mubr.msk.f32.gmra.mrb[50].mxu1 %vm10976_vm1, %v5792_v53  ;;  %vm10985_vm1 = vmmov %vm10950_vm0 }
 0xde1   :  { %8664 = vmatprep.mubr.msk.f32.mxu1 %vm10977_vm8, %v5791_v30  ;;  %vm10986_vm8 = vmmov %vm10950_vm0 }
 0xde4   :  { %8665 = vmatmul.mubr.msk.f32.gmra.mrb[52].mxu1 %vm10950_vm0, %v5806_v38 }
 0xde5   :  { %8669 = vmatprep.mubr.msk.f32.mxu1 %vm10978_vm10, %v9930_v13  ;;  %vm10987_vm10 = vmmov %vm10950_vm0  ;;  %v6238_v13 = vsel %vm774_vm5, %v6228_v51, %v6229_v37 }
 0xde8   :  { %8670 = vmatmul.mubr.msk.f32.vlgmr.msra.gmra.mrb[46].mxu1 %vm10979_vm9, %v9927_v62  ;;  %vm10988_vm9 = vmmov %vm10950_vm0  ;;  %v6239_v62 = vsel %vm774_vm5, %v6227_v2, %v6228_v51 }
 0xde9   :  { %8672 = vmatprep.mubr.msk.f32.mxu1 %vm10980_vm15, %v9938_v4  ;;  %8682 = vmatpush3.msra.mxu1 %v345_v34  ;;  %vm10989_vm15 = vmmov %vm10950_vm0  ;;  %v6237_v4 = vsel %vm774_vm5, %v6229_v37, %v6230_v9 }
 0xdea   :  { %8695 = vmatprep.subr.mxu1 %v349_v55 }
 0xdec   :  { %8673 = vmatmul.mubr.msk.f32.gmra.mrb[48].mxu1 %vm10981_vm11, %v9935_v3  ;;  %vm10990_vm11 = vmmov %vm10950_vm0  ;;  %v6245_v3 = vsel %vm9795_vm6, 0.0, %v6237_v4 }
 0xded   :  { %8675 = vmatprep.mubr.msk.f32.mxu1 %vm10982_vm12, %v9952_v36  ;;  %vm10991_vm12 = vmmov %vm10950_vm0  ;;  %v6232_v36 = vrot.slane %v9960_v50, 1 }
 0xdef   :  { %v6234_v15 = vsel %vm774_vm5, %v6232_v36, %v6233_v54 }
 0xdf0   :  { %8676 = vmatmul.mubr.msk.f32.gmra.mrb[50].mxu1 %vm10983_vm13, %v9946_v6  ;;  %vm10992_vm13 = vmmov %vm10950_vm0  ;;  %v6235_v6 = vsel %vm774_vm5, %v6231_v35, %v6232_v36 }
 0xdf1   :  { %8678 = vmatprep.mubr.msk.f32.mxu1 %vm10984_vm14, %v9960_v50  ;;  %vm10993_vm14 = vmmov %vm10950_vm0  ;;  %v6241_v50 = vsel %vm774_vm5, %v6233_v54, %v6226_v40 }
 0xdf2   :  { %v6249_v45 = vsel %vm9816_vm7, 0.0, %v6241_v50 }
 0xdf4   :  { %8679 = vmatmul.mubr.msk.f32.gmra.mrb[52].mxu1 %vm10985_vm1, %v9957_v47  ;;  %vm10994_vm1 = vmmov %vm10950_vm0  ;;  %v353_v47 = vld [vmem:[%s10995_s28 + $0x8] sm:$0xff] }
 0xdf5   :  { %8683 = vmatprep.mubr.msk.f32.mxu1 %vm10986_vm8, %v5960_v12  ;;  %vm10996_vm8 = vmmov %vm10950_vm0  ;;  %8737 = vmatprep.subr.mxu0 %v353_v47 }
 0xdf6   :  { %8738 = vmatpush3.msra.mxu0 %v353_v47 }
 0xdf7   :  { %8751 = vmatprep.subr.mxu0 %v352_v58 }
 0xdf8   :  { %8684 = vmatmul.mubr.msk.f32.vlgmr.msra.gmra.mrb[46].mxu1 %vm10950_vm0, %v5958_v29 }
 0xdf9   :  { %8686 = vmatprep.mubr.msk.f32.mxu1 %vm10987_vm10, %v5957_v39  ;;  %8696 = vmatpush3.msra.mxu1 %v349_v55  ;;  %vm10997_vm10 = vmmov %vm10950_vm0  ;;  %v354_v39 = vld [vmem:[%s10995_s28 + $0x10] sm:$0xff] }
 0xdfa   :  { %8779 = vmatprep.subr.mxu1 %v360_v60 }
 0xdfc   :  { %8687 = vmatmul.mubr.msk.f32.gmra.mrb[48].mxu1 %vm10988_vm9, %v5956_v14  ;;  %vm10998_vm9 = vmmov %vm10950_vm0 }
 0xdfd   :  { %8689 = vmatprep.mubr.msk.f32.mxu1 %vm10989_vm15, %v5964_v27  ;;  %vm10999_vm15 = vmmov %vm10950_vm0 }
 0xe00   :  { %8690 = vmatmul.mubr.msk.f32.gmra.mrb[50].mxu1 %vm10990_vm11, %v5954_v41  ;;  %vm11000_vm11 = vmmov %vm10950_vm0 }
 0xe01   :  { %8692 = vmatprep.mubr.msk.f32.mxu1 %vm10991_vm12, %v5953_v33  ;;  %vm11002_vm12 = vmmov %vm10950_vm0 }
 0xe04   :  { %8693 = vmatmul.mubr.msk.f32.gmra.mrb[52].mxu1 %vm10992_vm13, %v5952_v17  ;;  %vm11003_vm13 = vmmov %vm10950_vm0 }
 0xe05   :  { %8697 = vmatprep.mubr.msk.f32.mxu1 %vm10993_vm14, %v6240_v42  ;;  %vm11004_vm14 = vmmov %vm10950_vm0 }
 0xe08   :  { %8698 = vmatmul.mubr.msk.f32.vlgmr.msra.gmra.mrb[46].mxu1 %vm10994_vm1, %v6239_v62  ;;  %vm11005_vm1 = vmmov %vm10950_vm0 }
 0xe09   :  { %8700 = vmatprep.mubr.msk.f32.mxu1 %vm10996_vm8, %v6238_v13  ;;  %8780 = vmatpush3.msra.mxu1 %v360_v60  ;;  %vm11006_vm8 = vmmov %vm10950_vm0 }
 0xe0c   :  { %8701 = vmatmul.mubr.msk.f32.gmra.mrb[48].mxu1 %vm10950_vm0, %v6245_v3 }
 0xe0d   :  { %8703 = vmatprep.mubr.msk.f32.mxu1 %vm10997_vm10, %v6236_v57  ;;  %vm11007_vm10 = vmmov %vm10950_vm0 }
 0xe10   :  { %8704 = vmatmul.mubr.msk.f32.gmra.mrb[50].mxu1 %vm10998_vm9, %v6235_v6  ;;  %vm11008_vm9 = vmmov %vm10950_vm0 }
 0xe11   :  { %8706 = vmatprep.mubr.msk.f32.mxu1 %vm10999_vm15, %v6234_v15  ;;  %vm11009_vm15 = vmmov %vm10950_vm0 }
 0xe14   :  { %8707 = vmatmul.mubr.msk.f32.gmra.mrb[52].mxu1 %vm11000_vm11, %v6249_v45  ;;  %vm11010_vm11 = vmmov %vm10950_vm0 }
 0xe9b   :  { %v10730_v19 = vpop.f32.mrb[44].mxu0 }
 0xe9c   :  { %v10732_v1 = vpop.f32.mrb[45].mxu0 }
 0xe9f   :  { %v10734_v46 = vpop.f32.mrb[46].mxu0 }
 0xea0   :  { %v10736_v16 = vpop.f32.mrb[47].mxu0 }
 0xea3   :  { %v10738_v10 = vpop.f32.mrb[48].mxu0 }
 0xea4   :  { %v10740_v28 = vpop.f32.mrb[49].mxu0 }
 0xea7   :  { %v10742_v0 = vpop.f32.mrb[50].mxu0 }
 0xea8   :  { %v10744_v25 = vpop.f32.mrb[51].mxu0 }
 0xedb   :  { %v8699_v22 = vpop.f32.mrb[46].mxu1 }
 0xedc   :  { %v6402_v18 = vmul.f32 %v8699_v22, %v7659_v8  ;;  %v6340_v53 = vpop.f32.mrb[47].mxu1 }
 0xedd   :  { %v6401_v30 = vmul.f32 %v7659_v8, %v6340_v53 }
 0xede   :  { %v6416_v43 = vadd.f32 %v7660_v49, %v6402_v18 }
 0xedf   :  { %v6415_v44 = vadd.f32 %v7660_v49, %v6401_v30  ;;  %v8702_v34 = vpop.f32.mrb[48].mxu1 }
 0xee0   :  { %v6424_v21 = vmax.f32 %v6416_v43, 0.0  ;;  %v6404_v38 = vmul.f32 %v8702_v34, %v7659_v8  ;;  %v6350_v55 = vpop.f32.mrb[49].mxu1 }
 0xee1   :  { %v6423_v56 = vmax.f32 %v6415_v44, 0.0  ;;  %v6403_v59 = vmul.f32 %v7659_v8, %v6350_v55 }
 0xee2   :  { %v6664_v5 = vrot.slane %v6424_v21, 7  ;;  %v6946_v63 = vrot.slane %v6424_v21, 1  ;;  %v6418_v12 = vadd.f32 %v7660_v49, %v6404_v38 }
 0xee3   :  { %v6663_v24 = vrot.slane %v6423_v56, 7  ;;  %v6945_v48 = vrot.slane %v6423_v56, 1  ;;  %v6417_v29 = vadd.f32 %v7660_v49, %v6403_v59  ;;  %v8705_v23 = vpop.f32.mrb[50].mxu1  ;;  %8739 = vmatprep.mubr.msk.f32.mxu0 %vm11002_vm12, %v6423_v56  ;;  %vm11011_vm12 = vmmov %vm10950_vm0 }
 0xee4   :  { %v6426_v11 = vmax.f32 %v6418_v12, 0.0  ;;  %v6406_v14 = vmul.f32 %v8705_v23, %v7659_v8  ;;  %v6360_v26 = vpop.f32.mrb[51].mxu1  ;;  %8740 = vmatmul.mubr.msk.f32.vlgmr.msra.gmra.mrb[52].mxu0 %vm11003_vm13, %v6424_v21  ;;  %vm11013_vm13 = vmmov %vm10950_vm0 }
 0xee5   :  { %v6425_v27 = vmax.f32 %v6417_v29, 0.0  ;;  %v6405_v32 = vmul.f32 %v7659_v8, %v6360_v26  ;;  %8752 = vmatpush3.msra.mxu0 %v352_v58  ;;  %v6677_v41 = vsel %vm372_vm2, %v6663_v24, %v6664_v5  ;;  %v6959_v33 = vsel %vm774_vm5, %v6945_v48, %v6946_v63  ;;  %v7703_v29 = vld [vmem:[#allocation7] ss:$0 sm:$0xff] }
 0xee6   :  { %v6666_v40 = vrot.slane %v6426_v11, 7  ;;  %v6420_v2 = vadd.f32 %v7660_v49, %v6406_v14  ;;  %8765 = vmatprep.subr.mxu0 %v354_v39  ;;  %v6948_v17 = vrot.slane %v6426_v11, 1 }
 0xee7   :  { %v6665_v51 = vrot.slane %v6425_v27, 7  ;;  %v6947_v42 = vrot.slane %v6425_v27, 1  ;;  %v6419_v37 = vadd.f32 %v7660_v49, %v6405_v32  ;;  %v8708_v9 = vpop.f32.mrb[52].mxu1  ;;  %8742 = vmatprep.mubr.msk.f32.mxu0 %vm11004_vm14, %v6425_v27  ;;  %vm11015_vm14 = vmmov %vm10950_vm0 }
 0xee8   :  { %v6428_v62 = vmax.f32 %v6420_v2, 0.0  ;;  %v6408_v13 = vmul.f32 %v8708_v9, %v7659_v8  ;;  %v6370_v4 = vpop.f32.mrb[53].mxu1  ;;  %8743 = vmatmul.mubr.msk.f32.gmra.mrb[54].mxu0 %vm11005_vm1, %v6426_v11  ;;  %vm11016_vm1 = vmmov %vm10950_vm0 }
 0xee9   :  { %v6427_v35 = vmax.f32 %v6419_v37, 0.0  ;;  %v6407_v3 = vmul.f32 %v7659_v8, %v6370_v4  ;;  %v6676_v36 = vsel %vm372_vm2, %v6664_v5, %v6665_v51  ;;  %v6675_v57 = vsel %vm372_vm2, %v6665_v51, %v6666_v40 }
 0xeea   :  { %v6668_v54 = vrot.slane %v6428_v62, 7  ;;  %v6950_v6 = vrot.slane %v6428_v62, 1  ;;  %v6422_v15 = vadd.f32 %v7660_v49, %v6408_v13  ;;  %v6958_v50 = vsel %vm774_vm5, %v6946_v63, %v6947_v42 }
 0xeeb   :  { %v6667_v45 = vrot.slane %v6427_v35, 7  ;;  %v6949_v47 = vrot.slane %v6427_v35, 1  ;;  %v6421_v58 = vadd.f32 %v7660_v49, %v6407_v3  ;;  %8745 = vmatprep.mubr.msk.f32.mxu0 %vm11006_vm8, %v6427_v35  ;;  %v6957_v60 = vsel %vm774_vm5, %v6947_v42, %v6948_v17  ;;  %vm11017_vm8 = vmmov %vm10950_vm0 }
 0xeec   :  { %v6430_v8 = vmax.f32 %v6422_v15, 0.0  ;;  %8746 = vmatmul.mubr.msk.f32.gmra.mrb[56].mxu0 %vm10950_vm0, %v6428_v62 }
 0xeed   :  { %v6429_v22 = vmax.f32 %v6421_v58, 0.0  ;;  %v6674_v18 = vsel %vm372_vm2, %v6666_v40, %v6667_v45  ;;  %v6673_v53 = vsel %vm372_vm2, %v6667_v45, %v6668_v54  ;;  %v6956_v30 = vsel %vm774_vm5, %v6948_v17, %v6949_v47 }
 0xeee   :  { %v6670_v43 = vrot.slane %v6430_v8, 7  ;;  %v6952_v49 = vrot.slane %v6430_v8, 1  ;;  %v6955_v21 = vsel %vm774_vm5, %v6949_v47, %v6950_v6  ;;  %v6683_v20 = vsel %vm9744_vm4, 0.0, %v6674_v18  ;;  %vm11020_vm4 = vmmov %vm10950_vm0 }
 0xeef   :  { %v6669_v44 = vrot.slane %v6429_v22, 7  ;;  %v6951_v34 = vrot.slane %v6429_v22, 1  ;;  %8748 = vmatprep.mubr.msk.f32.mxu0 %vm11007_vm10, %v6429_v22  ;;  %v6964_v7 = vsel %vm9795_vm6, 0.0, %v6956_v30  ;;  %vm11019_vm10 = vmmov %vm10950_vm0 }
 0xef0   :  { %8749 = vmatmul.mubr.msk.f32.gmra.mrb[58].mxu0 %vm11008_vm9, %v6430_v8  ;;  %v6678_v38 = vsel %vm372_vm2, %v6670_v43, %v6663_v24  ;;  %v6960_v55 = vsel %vm774_vm5, %v6952_v49, %v6945_v48  ;;  %vm11021_vm9 = vmmov %vm10950_vm0  ;;  %v7702_v24 = vld [vmem:[#allocation5] ss:$0 sm:$0xff]  ;;  %v7669_v48 = vld [vmem:[#allocation8] ss:$0 sm:$0xff] }
 0xef1   :  { %v6679_v56 = vsel %vm9709_vm3, 0.0, %v6678_v38  ;;  %v6672_v59 = vsel %vm372_vm2, %v6668_v54, %v6669_v44  ;;  %v6671_v5 = vsel %vm372_vm2, %v6669_v44, %v6670_v43  ;;  %v6954_v63 = vsel %vm774_vm5, %v6950_v6, %v6951_v34  ;;  %vm11012_vm3 = vmmov %vm10950_vm0 }
 0xef2   :  { %8753 = vmatprep.mubr.msk.f32.mxu0 %vm11009_vm15, %v6679_v56  ;;  %v6953_v12 = vsel %vm774_vm5, %v6951_v34, %v6952_v49  ;;  %vm11014_vm2 = vmmov %vm10950_vm0  ;;  %v6968_v31 = vsel %vm9816_vm7, 0.0, %v6960_v55  ;;  %v8989_v14 = vadd.f32 %v10730_v19, %v7669_v48  ;;  %v8990_v27 = vadd.f32 %v7669_v48, %v10732_v1 }
 0xef3   :  { %vm11018_vm5 = vmmov %vm10950_vm0  ;;  %v8991_v51 = vadd.f32 %v10734_v46, %v7669_v48  ;;  %v8992_v37 = vadd.f32 %v7669_v48, %v10736_v16  ;;  %v8994_v46 = vadd.f32 %v7669_v48, %v10740_v28  ;;  %v8995_v22 = vadd.f32 %v10742_v0, %v7669_v48  ;;  %v7704_v0 = vld [vmem:[#allocation2] ss:$0 sm:$0xff] }
 0xef4   :  { %8754 = vmatmul.mubr.msk.f32.vlgmr.msra.gmra.mrb[52].mxu0 %vm11010_vm11, %v6677_v41  ;;  %vm11022_vm15 = vmmov %vm10950_vm0 }
 0xef5   :  { %8756 = vmatprep.mubr.msk.f32.mxu0 %vm11011_vm12, %v6676_v36  ;;  %8766 = vmatpush3.msra.mxu0 %v354_v39  ;;  %vm11023_vm11 = vmmov %vm10950_vm0 }
 0xef6   :  { %vm11024_vm6 = vmmov %vm10950_vm0 }
 0xef7   :  { %vm11025_vm7 = vmmov %vm10950_vm0 }
 0xef8   :  { %8757 = vmatmul.mubr.msk.f32.gmra.mrb[54].mxu0 %vm11012_vm3, %v6675_v57  ;;  %v8993_v57 = vadd.f32 %v10738_v10, %v7669_v48  ;;  %vm11026_vm12 = vmmov %vm10950_vm0  ;;  %v8996_v10 = vadd.f32 %v7669_v48, %v10744_v25 }
 0xef9   :  { %8759 = vmatprep.mubr.msk.f32.mxu0 %vm11013_vm13, %v6683_v20  ;;  %vm11027_vm3 = vmmov %vm10950_vm0 }
 0xefa   :  { %vm11028_vm13 = vmmov %vm10950_vm0 }
 0xefc   :  { %8760 = vmatmul.mubr.msk.f32.gmra.mrb[56].mxu0 %vm11014_vm2, %v6673_v53  ;;  %vm11029_vm2 = vmmov %vm10950_vm0 }
 0xefd   :  { %8762 = vmatprep.mubr.msk.f32.mxu0 %vm11015_vm14, %v6672_v59  ;;  %vm11030_vm14 = vmmov %vm10950_vm0 }
 0xf00   :  { %8763 = vmatmul.mubr.msk.f32.gmra.mrb[58].mxu0 %vm11016_vm1, %v6671_v5  ;;  %vm11031_vm1 = vmmov %vm10950_vm0 }
 0xf01   :  { %8767 = vmatprep.mubr.msk.f32.mxu0 %vm11017_vm8, %v6959_v33  ;;  %vm11032_vm8 = vcmask 7168  }
 0xf04   :  { %8768 = vmatmul.mubr.msk.f32.vlgmr.msra.gmra.mrb[52].mxu0 %vm11018_vm5, %v6958_v50  ;;  %vm11033_vm5 = vmmov %vm11032_vm8 }
 0xf05   :  { %8770 = vmatprep.mubr.msk.f32.mxu0 %vm10950_vm0, %v6957_v60  ;;  %vm11034_vm0 = vmmov %vm11033_vm5 }
 0xf08   :  { %8771 = vmatmul.mubr.msk.f32.gmra.mrb[54].mxu0 %vm11019_vm10, %v6964_v7  ;;  %vm11035_vm10 = vmmov %vm11034_vm0 }
 0xf09   :  { %8773 = vmatprep.mubr.msk.f32.mxu0 %vm11020_vm4, %v6955_v21  ;;  %vm11036_vm4 = vmmov %vm11034_vm0 }
 0xf0c   :  { %8774 = vmatmul.mubr.msk.f32.gmra.mrb[56].mxu0 %vm11021_vm9, %v6954_v63  ;;  %vm11037_vm9 = vmmov %vm11034_vm0 }
 0xf0d   :  { %8776 = vmatprep.mubr.msk.f32.mxu0 %vm11022_vm15, %v6953_v12  ;;  %vm11038_vm15 = vmmov %vm11034_vm0 }
 0xf10   :  { %8777 = vmatmul.mubr.msk.f32.gmra.mrb[58].mxu0 %vm11023_vm11, %v6968_v31  ;;  %vm11039_vm11 = vmmov %vm11034_vm0 }
 0xfd7   :  { %v8769_v23 = vpop.f32.mrb[52].mxu0 }
 0xfd8   :  { %v7113_v39 = vmul.f32 %v8769_v23, %v7702_v24  ;;  %v7059_v52 = vpop.f32.mrb[53].mxu0 }
 0xfd9   :  { %v7112_v11 = vmul.f32 %v7702_v24, %v7059_v52 }
 0xfda   :  { %v7127_v26 = vadd.f32 %v7703_v29, %v7113_v39 }
 0xfdb   :  { %v7126_v32 = vadd.f32 %v7703_v29, %v7112_v11  ;;  %v8772_v41 = vpop.f32.mrb[54].mxu0 }
 0xfdc   :  { %v7135_v33 = vadd.f32 %v8989_v14, %v7127_v26  ;;  %v7115_v40 = vmul.f32 %v8772_v41, %v7702_v24  ;;  %v7069_v61 = vpop.f32.mrb[55].mxu0 }
 0xfdd   :  { %v7134_v2 = vadd.f32 %v8990_v27, %v7126_v32  ;;  %v7114_v17 = vmul.f32 %v7702_v24, %v7069_v61 }
 0xfde   :  { %v7129_v42 = vadd.f32 %v7703_v29, %v7115_v40  ;;  %v7143_v4 = vmax.f32 %v7135_v33, 0.0 }
 0xfdf   :  { %v7142_v9 = vmax.f32 %v7134_v2, 0.0  ;;  %v7128_v62 = vadd.f32 %v7703_v29, %v7114_v17  ;;  %v8775_v13 = vpop.f32.mrb[56].mxu0 }
 0xfe0   :  { %v7137_v19 = vadd.f32 %v8991_v51, %v7129_v42  ;;  %v7117_v35 = vmul.f32 %v8775_v13, %v7702_v24  ;;  %v7079_v3 = vpop.f32.mrb[57].mxu0 }
 0xfe1   :  { %v7136_v1 = vadd.f32 %v8992_v37, %v7128_v62  ;;  %v7116_v36 = vmul.f32 %v7702_v24, %v7079_v3  ;;  %8781 = vmatprep.mubr.msk.f32.mxu1 %vm11024_vm6, %v7142_v9 }
 0xfe2   :  { %v7131_v54 = vadd.f32 %v7703_v29, %v7117_v35  ;;  %8782 = vmatmul.mubr.msk.f32.vlgmr.msra.gmra.mrb[54].mxu1 %vm11025_vm7, %v7143_v4  ;;  %v7145_v50 = vmax.f32 %v7137_v19, 0.0 }
 0xfe3   :  { %v7144_v6 = vmax.f32 %v7136_v1, 0.0  ;;  %v7130_v16 = vadd.f32 %v7703_v29, %v7116_v36  ;;  %v8778_v15 = vpop.f32.mrb[58].mxu0 }
 0xfe4   :  { %v7139_v45 = vadd.f32 %v8993_v57, %v7131_v54  ;;  %v7119_v47 = vmul.f32 %v8778_v15, %v7702_v24  ;;  %v7089_v58 = vpop.f32.mrb[59].mxu0 }
 0xfe5   :  { %v7138_v60 = vadd.f32 %v8994_v46, %v7130_v16  ;;  %v7118_v8 = vmul.f32 %v7702_v24, %v7089_v58  ;;  %8784 = vmatprep.mubr.msk.f32.mxu1 %vm11026_vm12, %v7144_v6 }
 0xfe6   :  { %v7133_v18 = vadd.f32 %v7703_v29, %v7119_v47  ;;  %8785 = vmatmul.mubr.msk.f32.gmra.mrb[56].mxu1 %vm11027_vm3, %v7145_v50  ;;  %v7147_v30 = vmax.f32 %v7139_v45, 0.0 }
 0xfe7   :  { %v7146_v53 = vmax.f32 %v7138_v60, 0.0  ;;  %v7132_v28 = vadd.f32 %v7703_v29, %v7118_v8 }
 0xfe8   :  { %v7141_v43 = vadd.f32 %v8995_v22, %v7133_v18 }
 0xfe9   :  { %v7140_v49 = vadd.f32 %v8996_v10, %v7132_v28  ;;  %8787 = vmatprep.mubr.msk.f32.mxu1 %vm11028_vm13, %v7146_v53 }
 0xfea   :  { %8788 = vmatmul.mubr.msk.f32.gmra.mrb[58].mxu1 %vm11029_vm2, %v7147_v30  ;;  %v7149_v34 = vmax.f32 %v7141_v43, 0.0 }
 0xfeb   :  { %v7148_v44 = vmax.f32 %v7140_v49, 0.0 }
 0xfed   :  { %8790 = vmatprep.mubr.msk.f32.mxu1 %vm11030_vm14, %v7148_v44 }
 0xfee   :  { %8791 = vmatmul.mubr.msk.f32.gmra.mrb[60].mxu1 %vm11031_vm1, %v7149_v34 }
0x10b5   :  { %v8783_v21 = vpop.f32.mrb[54].mxu1 }
0x10b6   :  { %v7252_v38 = vadd.f32 %v8783_v21, %v7704_v0  ;;  %v7246_v55 = vpop.f32.mrb[55].mxu1 }
0x10b7   :  { %v7247_v25 = vadd.f32 %v7704_v0, %v7246_v55 }
0x10b8   :  { %v7714_v56 = vmul.f32 -1.442695, %v7252_v38 }
0x10b9   :  { %v7713_v59 = vmul.f32 -1.442695, %v7247_v25  ;;  %v8786_v5 = vpop.f32.mrb[56].mxu1 }
0x10ba   :  { %9213 = vpow2.f32 %v7714_v56  ;;  %v7262_v63 = vadd.f32 %v8786_v5, %v7704_v0  ;;  %v7256_v12 = vpop.f32.mrb[57].mxu1 }
0x10bb   :  { %9215 = vpow2.f32 %v7713_v59  ;;  %v7257_v20 = vadd.f32 %v7704_v0, %v7256_v12 }
0x10bc   :  { %v7716_v7 = vmul.f32 -1.442695, %v7262_v63 }
0x10bd   :  { %v7715_v31 = vmul.f32 -1.442695, %v7257_v20  ;;  %v8789_v24 = vpop.f32.mrb[58].mxu1 }
0x10be   :  { %9217 = vpow2.f32 %v7716_v7  ;;  %v7272_v48 = vadd.f32 %v8789_v24, %v7704_v0  ;;  %v7266_v29 = vpop.f32.mrb[59].mxu1 }
0x10bf   :  { %9219 = vpow2.f32 %v7715_v31  ;;  %v7267_v23 = vadd.f32 %v7704_v0, %v7266_v29 }
0x10c0   :  { %v7718_v39 = vmul.f32 -1.442695, %v7272_v48 }
0x10c1   :  { %v7717_v52 = vmul.f32 -1.442695, %v7267_v23  ;;  %v8792_v11 = vpop.f32.mrb[60].mxu1 }
0x10c2   :  { %9221 = vpow2.f32 %v7718_v39  ;;  %v7282_v14 = vadd.f32 %v8792_v11, %v7704_v0  ;;  %v7276_v26 = vpop.f32.mrb[61].mxu1 }
0x10c3   :  { %9223 = vpow2.f32 %v7717_v52  ;;  %v7277_v27 = vadd.f32 %v7704_v0, %v7276_v26 }
0x10c4   :  { %v9214_v32 = vpop.eup %9213  ;;  %v7720_v41 = vmul.f32 -1.442695, %v7282_v14 }
0x10c5   :  { %v9216_v33 = vpop.eup %9215  ;;  %v7310_v40 = vadd.f32 1.0, %v9214_v32  ;;  %v7719_v61 = vmul.f32 -1.442695, %v7277_v27 }
0x10c6   :  { %v7309_v2 = vadd.f32 1.0, %v9216_v33  ;;  %9225 = vpow2.f32 %v7720_v41 }
0x10c7   :  { %9227 = vrcp.f32 %v7310_v40 }
0x10c8   :  { %v9218_v17 = vpop.eup %9217  ;;  %9229 = vrcp.f32 %v7309_v2 }
0x10c9   :  { %v9220_v51 = vpop.eup %9219  ;;  %v7312_v42 = vadd.f32 1.0, %v9218_v17  ;;  %9231 = vpow2.f32 %v7719_v61 }
0x10ca   :  { %v7311_v37 = vadd.f32 1.0, %v9220_v51 }
0x10cb   :  { %9233 = vrcp.f32 %v7312_v42 }
0x10cc   :  { %v9222_v9 = vpop.eup %9221  ;;  %9235 = vrcp.f32 %v7311_v37 }
0x10cd   :  { %v9224_v62 = vpop.eup %9223  ;;  %v7314_v13 = vadd.f32 1.0, %v9222_v9 }
0x10ce   :  { %v7313_v4 = vadd.f32 1.0, %v9224_v62 }
0x10cf   :  { %9237 = vrcp.f32 %v7314_v13 }
0x10d0   :  { %v9226_v19 = vpop.eup %9225  ;;  %9239 = vrcp.f32 %v7313_v4 }
0x10d1   :  { %v9228_v35 = vpop.eup %9227  ;;  %v7316_v3 = vadd.f32 1.0, %v9226_v19 }
0x10d2   :  { %v9230_v1 = vpop.eup %9229  ;;  %7334 = vst.msk [vmem:[%s9632_s24 + $0x8] sm:$0xff] %vm11032_vm8, %v9228_v35 }
0x10d3   :  { %v9232_v36 = vpop.eup %9231  ;;  %7333 = vst.msk [vmem:[%s9632_s24] sm:$0xff] %vm11033_vm5, %v9230_v1  ;;  %9241 = vrcp.f32 %v7316_v3 }
0x10d4   :  { %v7315_v57 = vadd.f32 1.0, %v9232_v36 }
0x10d5   :  { %v9234_v54 = vpop.eup %9233 }
0x10d6   :  { %v9236_v46 = vpop.eup %9235  ;;  %7336 = vst.msk [vmem:[%s9632_s24 + $0x18] sm:$0xff] %vm11034_vm0, %v9234_v54  ;;  %9243 = vrcp.f32 %v7315_v57 }
0x10d7   :  { %7335 = vst.msk [vmem:[%s9632_s24 + $0x10] sm:$0xff] %vm11035_vm10, %v9236_v46 }
0x10d9   :  { %v9238_v6 = vpop.eup %9237 }
0x10da   :  { %v9240_v16 = vpop.eup %9239  ;;  %7338 = vst.msk [vmem:[%s9632_s24 + $0x28] sm:$0xff] %vm11036_vm4, %v9238_v6 }
0x10db   :  { %7337 = vst.msk [vmem:[%s9632_s24 + $0x20] sm:$0xff] %vm11037_vm9, %v9240_v16 }
0x10dd   :  { %v9242_v15 = vpop.eup %9241 }
0x10de   :  { %7340 = vst.msk [vmem:[%s9632_s24 + $0x38] sm:$0xff] %vm11038_vm15, %v9242_v15 }
0x10e0   :  { %v9244_v50 = vpop.eup %9243 }
0x10e1   :  { %7339 = vst.msk [vmem:[%s9632_s24 + $0x30] sm:$0xff] %vm11039_vm11, %v9244_v50 }
0x10e2   :  { %7345 = vsyncpa [#allocation4], 1 }
0x10e3   :  { %7346 = vsyncpa [#allocation6], 1 }
0x10e4   :  { %7347 = vsyncpa [#allocation9], 1 }

</bundles_post_ra>
